<compile_context>
chip_gen: v7x
topology: tpu7x:2x2x1
jax: 0.10.0
libtpu: 0.0.40
codegen_flags: <defaults>
</compile_context>

<pallas_src>
import jax
import jax.numpy as jnp
from jax import lax
import numpy as np
from jax.experimental import pallas as pl
from jax.experimental.pallas import tpu as pltpu


def _pick_block_batch(B, C, HW, bytes_per_elem=4, budget=4 << 20):
    """Largest Bt in {8,4,2,1} dividing B, preferring >=2 grid steps (megacore)
    and a per-step block comfortably inside VMEM."""
    cands = [bt for bt in (8, 4, 2, 1) if B % bt == 0]
    fits = [bt for bt in cands if bt * C * HW * bytes_per_elem <= budget]
    pool = fits if fits else [min(cands)]
    multi = [bt for bt in pool if B // bt >= 2]
    return (multi or pool)[0]


def _make_cbam_kernel(C, H, W, Bt):
    HW = H * W

    def kernel(x_ref, w1_ref, b1_ref, w2_ref, b2_ref, wcols_ref, o_ref,
               pooled_scr, maps_scr):
        # x_ref/o_ref : (Bt, C, HW) VMEM blocks (lane-dense, HW on lanes)
        # w1:(mid,C) b1:(mid,1) w2:(C,mid) b2:(C,1)     (channel-attention MLP)
        # wcols      : (2*Bt, 49) per-tap spatial weights (max rows | mean rows)
        # pooled_scr : (C, 2*Bt) VMEM scratch  [avg cols | max cols]
        # maps_scr   : (2*Bt, HW) VMEM scratch [max maps | mean maps]
        f32 = jnp.float32

        # ---- 1. per-image channel pooling (avg | max over HW) -> (C, 2*Bt) ----
        for b in range(Bt):
            xb = x_ref[b].astype(f32)                                    # (C, HW)
            pooled_scr[:, b:b + 1] = jnp.mean(xb, axis=1, keepdims=True)
            pooled_scr[:, Bt + b:Bt + b + 1] = jnp.max(xb, axis=1, keepdims=True)

        # ---- 2. shared-MLP channel attention, one fused matmul pair for the
        #         whole block (all Bt images x {avg, max}) ----------------------
        pooled = pooled_scr[...]                                         # (C, 2Bt)
        h = jnp.dot(w1_ref[...], pooled,
                    preferred_element_type=f32) + b1_ref[...]            # (mid, 2Bt)
        h = jnp.maximum(h, 0.0)
        z = jnp.dot(w2_ref[...], h,
                    preferred_element_type=f32) + b2_ref[...]            # (C, 2Bt)
        # b2 counted twice == mlp(avg) + mlp(max), exactly as in the reference.
        att_c = jax.nn.sigmoid(z[:, :Bt] + z[:, Bt:])                    # (C, Bt)

        # ---- 3. channel gate (x + x*att == x*(1+att)); build the stacked
        #         sublane-dense spatial max/mean maps ---------------------------
        for b in range(Bt):
            ca_b = x_ref[b].astype(f32) * (1.0 + att_c[:, b:b + 1])      # (C, HW)
            o_ref[b] = ca_b.astype(o_ref.dtype)        # stash ca; re-gated below
            maps_scr[b:b + 1, :] = jnp.max(ca_b, axis=0, keepdims=True)
            maps_scr[Bt + b:Bt + b + 1, :] = jnp.mean(ca_b, axis=0, keepdims=True)

        # ---- 4. 7x7 spatial conv on the (2*Bt, HW) slab, in registers:
        #         7 dy-rolls (XLU) + 49 FMA taps + 7 dx-rolls; zero padding is
        #         reproduced exactly by the row / column validity masks. --------
        slab = maps_scr[...]                                             # (2Bt, HW)
        lane2 = lax.broadcasted_iota(jnp.int32, (2 * Bt, HW), 1)
        lane1 = lax.broadcasted_iota(jnp.int32, (Bt, HW), 1)
        if (W & (W - 1)) == 0:                                           # W power of 2
            y2 = lane2 >> (W.bit_length() - 1)                           # pixel row
            x1 = lane1 & (W - 1)                                         # pixel col
        else:
            y2 = lane2 // W
            x1 = lane1 - (lane1 // W) * W

        shifted = []
        for ky in range(7):
            dy = ky - 3
            if dy == 0:
                shifted.append(slab)
            else:
                r = pltpu.roll(slab, (-dy * W) % HW, axis=1)
                yv = y2 + dy
                shifted.append(jnp.where((yv >= 0) & (yv < H), r, 0.0))

        att = jnp.zeros((Bt, HW), f32)
        for kx in range(7):
            dx = kx - 3
            s = jnp.zeros((2 * Bt, HW), f32)
            for ky in range(7):
                w_tap = wcols_ref[:, ky * 7 + kx: ky * 7 + kx + 1]       # (2Bt, 1)
                s = s + w_tap * shifted[ky]
            s = s[:Bt] + s[Bt:]                      # combine max-map + mean-map
            if dx != 0:
                s = pltpu.roll(s, (-dx) % HW, axis=1)
                xv = x1 + dx
                s = jnp.where((xv >= 0) & (xv < W), s, 0.0)
            att = att + s

        att_s = jax.nn.sigmoid(att)                                      # (Bt, HW)

        # ---- 5. spatial gate: out = ca * (1 + att_s) --------------------------
        for b in range(Bt):
            row = att_s[b:b + 1, :]                                      # (1, HW)
            o_ref[b] = (o_ref[b].astype(f32) * (1.0 + row)).astype(o_ref.dtype)

    return kernel


def cbam_pallas(x, w1, b1, w2, b2, w_sp):
    """x: (B, C, H, W); w1:(mid,C) b1:(mid,) w2:(C,mid) b2:(C,) w_sp:(1,2,7,7).
    Sequential CBAM forward (matches the default PyTorch module)."""
    B, C, H, W = x.shape
    mid = w1.shape[0]
    HW = H * W
    Bt = _pick_block_batch(B, C, HW)
    kernel = _make_cbam_kernel(C, H, W, Bt)

    x_flat = x.reshape(B, C, HW)                       # lane-dense layout (free)
    w1c = w1.astype(jnp.float32)
    b1c = b1.reshape(mid, 1).astype(jnp.float32)
    w2c = w2.astype(jnp.float32)
    b2c = b2.reshape(C, 1).astype(jnp.float32)
    # per-tap weight columns: rows [0:Bt) = max-map weights, [Bt:2Bt) = mean-map
    wcols = jnp.repeat(w_sp.reshape(2, 49).astype(jnp.float32), Bt, axis=0)

    out_flat = pl.pallas_call(
        kernel,
        out_shape=jax.ShapeDtypeStruct((B, C, HW), x.dtype),
        grid=(B // Bt,),
        in_specs=[
            pl.BlockSpec((Bt, C, HW), lambda i: (i, 0, 0)),
            pl.BlockSpec((mid, C), lambda i: (0, 0)),
            pl.BlockSpec((mid, 1), lambda i: (0, 0)),
            pl.BlockSpec((C, mid), lambda i: (0, 0)),
            pl.BlockSpec((C, 1), lambda i: (0, 0)),
            pl.BlockSpec((2 * Bt, 49), lambda i: (0, 0)),
        ],
        out_specs=pl.BlockSpec((Bt, C, HW), lambda i: (i, 0, 0)),
        scratch_shapes=[
            pltpu.VMEM((C, 2 * Bt), jnp.float32),      # pooled [avg|max] columns
            pltpu.VMEM((2 * Bt, HW), jnp.float32),     # stacked max/mean maps
        ],
        compiler_params=pltpu.CompilerParams(
            dimension_semantics=("parallel",),
            vmem_limit_bytes=32 * 1024 * 1024),
    )(x_flat, w1c, b1c, w2c, b2c, wcols)
    return out_flat.reshape(B, C, H, W)


def cbam_ref(x, w1, b1, w2, b2, w_sp):
    """Pure-JAX reference matching the PyTorch forward (sequential fusion)."""
    avg = x.mean(axis=(2, 3))                          # (B, C)
    mx = x.max(axis=(2, 3))                            # (B, C)

    def mlp(v):
        h = jnp.maximum(v @ w1.T + b1[None, :], 0.0)
        return h @ w2.T + b2[None, :]

    att_c = jax.nn.sigmoid(mlp(avg) + mlp(mx))         # (B, C)
    ca = x + x * att_c[:, :, None, None]

    sp_in = jnp.stack([ca.max(axis=1), ca.mean(axis=1)], axis=1)   # (B, 2, H, W)
    att_s = lax.conv_general_dilated(
        sp_in, w_sp, window_strides=(1, 1), padding=[(3, 3), (3, 3)],
        dimension_numbers=("NCHW", "OIHW", "NCHW"))
    att_s = jax.nn.sigmoid(att_s)                      # (B, 1, H, W)
    return ca + ca * att_s


if __name__ == "__main__":
    B, C, H, W, r = 16, 32, 16, 16, 16
    mid = max(1, C // r)

    key = jax.random.PRNGKey(0)
    kx, k1, kb1, k2, kb2, ks = jax.random.split(key, 6)
    x = jax.random.normal(kx, (B, C, H, W), jnp.float32)
    # _ChannelAttention.mlp: Conv2d(C,mid,1,bias) -> ReLU -> Conv2d(mid,C,1,bias)
    w1 = 0.3 * jax.random.normal(k1, (mid, C), jnp.float32)
    b1 = 0.1 * jax.random.normal(kb1, (mid,), jnp.float32)
    w2 = 0.3 * jax.random.normal(k2, (C, mid), jnp.float32)
    b2 = 0.1 * jax.random.normal(kb2, (C,), jnp.float32)
    # _SpatialAttention.conv: Conv2d(2, 1, kernel_size=7, padding=3, bias=False)
    w_sp = 0.1 * jax.random.normal(ks, (1, 2, 7, 7), jnp.float32)

    out = jax.block_until_ready(cbam_pallas(x, w1, b1, w2, b2, w_sp))
    ref = cbam_ref(x, w1, b1, w2, b2, w_sp)

    assert out.shape == x.shape and out.dtype == x.dtype
    np.testing.assert_allclose(np.asarray(out), np.asarray(ref),
                               atol=3e-5, rtol=3e-5)
    print("KERNEL_OK")
</pallas_src>

<mosaic_0001>
module attributes {stable_mosaic.version = 11 : i64} {
  func.func @kernel(%arg0: i32, %arg1: memref<8x32x256xf32, #tpu.memory_space<vmem>>, %arg2: memref<2x32xf32, #tpu.memory_space<vmem>>, %arg3: memref<2x1xf32, #tpu.memory_space<vmem>>, %arg4: memref<32x2xf32, #tpu.memory_space<vmem>>, %arg5: memref<32x1xf32, #tpu.memory_space<vmem>>, %arg6: memref<16x49xf32, #tpu.memory_space<vmem>>, %arg7: memref<8x32x256xf32, #tpu.memory_space<vmem>>, %arg8: memref<32x16xf32, #tpu.memory_space<vmem>>, %arg9: memref<16x256xf32, #tpu.memory_space<vmem>>) attributes {dimension_semantics = [#tpu.dimension_semantics<parallel>], iteration_bounds = array<i64: 2>, scalar_prefetch = 0 : i64, scratch_operands = 2 : i64, tpu.core_type = #tpu.core_type<tc>, window_params = [{transform_indices = @transform_0, window_bounds = array<i64: 8, 32, 256>}, {pipeline_mode = #tpu.pipeline_mode<synchronous>, transform_indices = @transform_1, window_bounds = array<i64: 2, 32>}, {pipeline_mode = #tpu.pipeline_mode<synchronous>, transform_indices = @transform_2, window_bounds = array<i64: 2, 1>}, {pipeline_mode = #tpu.pipeline_mode<synchronous>, transform_indices = @transform_3, window_bounds = array<i64: 32, 2>}, {pipeline_mode = #tpu.pipeline_mode<synchronous>, transform_indices = @transform_4, window_bounds = array<i64: 32, 1>}, {pipeline_mode = #tpu.pipeline_mode<synchronous>, transform_indices = @transform_5, window_bounds = array<i64: 16, 49>}, {transform_indices = @transform_6, window_bounds = array<i64: 8, 32, 256>}]} {
    %c0 = arith.constant 0 : index
    %c0_0 = arith.constant 0 : index
    %c0_1 = arith.constant 0 : index
    %0 = vector.load %arg1[%c0, %c0_0, %c0_1] : memref<8x32x256xf32, #tpu.memory_space<vmem>>, vector<1x32x256xf32>
    %1 = vector.shape_cast %0 : vector<1x32x256xf32> to vector<32x256xf32>
    %cst = arith.constant dense<0.000000e+00> : vector<32xf32>
    %2 = vector.multi_reduction <add>, %1, %cst [1] : vector<32x256xf32> to vector<32xf32>
    %3 = vector.shape_cast %2 : vector<32xf32> to vector<32x1xf32>
    %cst_2 = arith.constant 2.560000e+02 : f32
    %4 = vector.broadcast %cst_2 : f32 to vector<32x1xf32>
    %5 = arith.divf %3, %4 : vector<32x1xf32>
    %c0_3 = arith.constant 0 : index
    %c0_4 = arith.constant 0 : index
    %6 = vector.load %arg8[%c0_3, %c0_4] : memref<32x16xf32, #tpu.memory_space<vmem>>, vector<32x1xf32>
    tpu.vector_store %arg8[%c0_3, %c0_4], %5 {strides = array<i32>} : memref<32x16xf32, #tpu.memory_space<vmem>>, vector<32x1xf32>,
    %cst_5 = arith.constant dense<0xFF800000> : vector<32xf32>
    %7 = vector.multi_reduction <maximumf>, %1, %cst_5 [1] : vector<32x256xf32> to vector<32xf32>
    %8 = vector.shape_cast %7 : vector<32xf32> to vector<32x1xf32>
    %c0_6 = arith.constant 0 : index
    %c8 = arith.constant 8 : index
    %9 = vector.load %arg8[%c0_6, %c8] : memref<32x16xf32, #tpu.memory_space<vmem>>, vector<32x1xf32>
    tpu.vector_store %arg8[%c0_6, %c8], %8 {strides = array<i32>} : memref<32x16xf32, #tpu.memory_space<vmem>>, vector<32x1xf32>,
    %c1 = arith.constant 1 : index
    %c0_7 = arith.constant 0 : index
    %c0_8 = arith.constant 0 : index
    %10 = vector.load %arg1[%c1, %c0_7, %c0_8] : memref<8x32x256xf32, #tpu.memory_space<vmem>>, vector<1x32x256xf32>
    %11 = vector.shape_cast %10 : vector<1x32x256xf32> to vector<32x256xf32>
    %cst_9 = arith.constant dense<0.000000e+00> : vector<32xf32>
    %12 = vector.multi_reduction <add>, %11, %cst_9 [1] : vector<32x256xf32> to vector<32xf32>
    %13 = vector.shape_cast %12 : vector<32xf32> to vector<32x1xf32>
    %cst_10 = arith.constant 2.560000e+02 : f32
    %14 = vector.broadcast %cst_10 : f32 to vector<32x1xf32>
    %15 = arith.divf %13, %14 : vector<32x1xf32>
    %c0_11 = arith.constant 0 : index
    %c1_12 = arith.constant 1 : index
    %16 = vector.load %arg8[%c0_11, %c1_12] : memref<32x16xf32, #tpu.memory_space<vmem>>, vector<32x1xf32>
    tpu.vector_store %arg8[%c0_11, %c1_12], %15 {strides = array<i32>} : memref<32x16xf32, #tpu.memory_space<vmem>>, vector<32x1xf32>,
    %cst_13 = arith.constant dense<0xFF800000> : vector<32xf32>
    %17 = vector.multi_reduction <maximumf>, %11, %cst_13 [1] : vector<32x256xf32> to vector<32xf32>
    %18 = vector.shape_cast %17 : vector<32xf32> to vector<32x1xf32>
    %c0_14 = arith.constant 0 : index
    %c9 = arith.constant 9 : index
    %19 = vector.load %arg8[%c0_14, %c9] : memref<32x16xf32, #tpu.memory_space<vmem>>, vector<32x1xf32>
    tpu.vector_store %arg8[%c0_14, %c9], %18 {strides = array<i32>} : memref<32x16xf32, #tpu.memory_space<vmem>>, vector<32x1xf32>,
    %c2 = arith.constant 2 : index
    %c0_15 = arith.constant 0 : index
    %c0_16 = arith.constant 0 : index
    %20 = vector.load %arg1[%c2, %c0_15, %c0_16] : memref<8x32x256xf32, #tpu.memory_space<vmem>>, vector<1x32x256xf32>
    %21 = vector.shape_cast %20 : vector<1x32x256xf32> to vector<32x256xf32>
    %cst_17 = arith.constant dense<0.000000e+00> : vector<32xf32>
    %22 = vector.multi_reduction <add>, %21, %cst_17 [1] : vector<32x256xf32> to vector<32xf32>
    %23 = vector.shape_cast %22 : vector<32xf32> to vector<32x1xf32>
    %cst_18 = arith.constant 2.560000e+02 : f32
    %24 = vector.broadcast %cst_18 : f32 to vector<32x1xf32>
    %25 = arith.divf %23, %24 : vector<32x1xf32>
    %c0_19 = arith.constant 0 : index
    %c2_20 = arith.constant 2 : index
    %26 = vector.load %arg8[%c0_19, %c2_20] : memref<32x16xf32, #tpu.memory_space<vmem>>, vector<32x1xf32>
    tpu.vector_store %arg8[%c0_19, %c2_20], %25 {strides = array<i32>} : memref<32x16xf32, #tpu.memory_space<vmem>>, vector<32x1xf32>,
    %cst_21 = arith.constant dense<0xFF800000> : vector<32xf32>
    %27 = vector.multi_reduction <maximumf>, %21, %cst_21 [1] : vector<32x256xf32> to vector<32xf32>
    %28 = vector.shape_cast %27 : vector<32xf32> to vector<32x1xf32>
    %c0_22 = arith.constant 0 : index
    %c10 = arith.constant 10 : index
    %29 = vector.load %arg8[%c0_22, %c10] : memref<32x16xf32, #tpu.memory_space<vmem>>, vector<32x1xf32>
    tpu.vector_store %arg8[%c0_22, %c10], %28 {strides = array<i32>} : memref<32x16xf32, #tpu.memory_space<vmem>>, vector<32x1xf32>,
    %c3 = arith.constant 3 : index
    %c0_23 = arith.constant 0 : index
    %c0_24 = arith.constant 0 : index
    %30 = vector.load %arg1[%c3, %c0_23, %c0_24] : memref<8x32x256xf32, #tpu.memory_space<vmem>>, vector<1x32x256xf32>
    %31 = vector.shape_cast %30 : vector<1x32x256xf32> to vector<32x256xf32>
    %cst_25 = arith.constant dense<0.000000e+00> : vector<32xf32>
    %32 = vector.multi_reduction <add>, %31, %cst_25 [1] : vector<32x256xf32> to vector<32xf32>
    %33 = vector.shape_cast %32 : vector<32xf32> to vector<32x1xf32>
    %cst_26 = arith.constant 2.560000e+02 : f32
    %34 = vector.broadcast %cst_26 : f32 to vector<32x1xf32>
    %35 = arith.divf %33, %34 : vector<32x1xf32>
    %c0_27 = arith.constant 0 : index
    %c3_28 = arith.constant 3 : index
    %36 = vector.load %arg8[%c0_27, %c3_28] : memref<32x16xf32, #tpu.memory_space<vmem>>, vector<32x1xf32>
    tpu.vector_store %arg8[%c0_27, %c3_28], %35 {strides = array<i32>} : memref<32x16xf32, #tpu.memory_space<vmem>>, vector<32x1xf32>,
    %cst_29 = arith.constant dense<0xFF800000> : vector<32xf32>
    %37 = vector.multi_reduction <maximumf>, %31, %cst_29 [1] : vector<32x256xf32> to vector<32xf32>
    %38 = vector.shape_cast %37 : vector<32xf32> to vector<32x1xf32>
    %c0_30 = arith.constant 0 : index
    %c11 = arith.constant 11 : index
    %39 = vector.load %arg8[%c0_30, %c11] : memref<32x16xf32, #tpu.memory_space<vmem>>, vector<32x1xf32>
    tpu.vector_store %arg8[%c0_30, %c11], %38 {strides = array<i32>} : memref<32x16xf32, #tpu.memory_space<vmem>>, vector<32x1xf32>,
    %c4 = arith.constant 4 : index
    %c0_31 = arith.constant 0 : index
    %c0_32 = arith.constant 0 : index
    %40 = vector.load %arg1[%c4, %c0_31, %c0_32] : memref<8x32x256xf32, #tpu.memory_space<vmem>>, vector<1x32x256xf32>
    %41 = vector.shape_cast %40 : vector<1x32x256xf32> to vector<32x256xf32>
    %cst_33 = arith.constant dense<0.000000e+00> : vector<32xf32>
    %42 = vector.multi_reduction <add>, %41, %cst_33 [1] : vector<32x256xf32> to vector<32xf32>
    %43 = vector.shape_cast %42 : vector<32xf32> to vector<32x1xf32>
    %cst_34 = arith.constant 2.560000e+02 : f32
    %44 = vector.broadcast %cst_34 : f32 to vector<32x1xf32>
    %45 = arith.divf %43, %44 : vector<32x1xf32>
    %c0_35 = arith.constant 0 : index
    %c4_36 = arith.constant 4 : index
    %46 = vector.load %arg8[%c0_35, %c4_36] : memref<32x16xf32, #tpu.memory_space<vmem>>, vector<32x1xf32>
    tpu.vector_store %arg8[%c0_35, %c4_36], %45 {strides = array<i32>} : memref<32x16xf32, #tpu.memory_space<vmem>>, vector<32x1xf32>,
    %cst_37 = arith.constant dense<0xFF800000> : vector<32xf32>
    %47 = vector.multi_reduction <maximumf>, %41, %cst_37 [1] : vector<32x256xf32> to vector<32xf32>
    %48 = vector.shape_cast %47 : vector<32xf32> to vector<32x1xf32>
    %c0_38 = arith.constant 0 : index
    %c12 = arith.constant 12 : index
    %49 = vector.load %arg8[%c0_38, %c12] : memref<32x16xf32, #tpu.memory_space<vmem>>, vector<32x1xf32>
    tpu.vector_store %arg8[%c0_38, %c12], %48 {strides = array<i32>} : memref<32x16xf32, #tpu.memory_space<vmem>>, vector<32x1xf32>,
    %c5 = arith.constant 5 : index
    %c0_39 = arith.constant 0 : index
    %c0_40 = arith.constant 0 : index
    %50 = vector.load %arg1[%c5, %c0_39, %c0_40] : memref<8x32x256xf32, #tpu.memory_space<vmem>>, vector<1x32x256xf32>
    %51 = vector.shape_cast %50 : vector<1x32x256xf32> to vector<32x256xf32>
    %cst_41 = arith.constant dense<0.000000e+00> : vector<32xf32>
    %52 = vector.multi_reduction <add>, %51, %cst_41 [1] : vector<32x256xf32> to vector<32xf32>
    %53 = vector.shape_cast %52 : vector<32xf32> to vector<32x1xf32>
    %cst_42 = arith.constant 2.560000e+02 : f32
    %54 = vector.broadcast %cst_42 : f32 to vector<32x1xf32>
    %55 = arith.divf %53, %54 : vector<32x1xf32>
    %c0_43 = arith.constant 0 : index
    %c5_44 = arith.constant 5 : index
    %56 = vector.load %arg8[%c0_43, %c5_44] : memref<32x16xf32, #tpu.memory_space<vmem>>, vector<32x1xf32>
    tpu.vector_store %arg8[%c0_43, %c5_44], %55 {strides = array<i32>} : memref<32x16xf32, #tpu.memory_space<vmem>>, vector<32x1xf32>,
    %cst_45 = arith.constant dense<0xFF800000> : vector<32xf32>
    %57 = vector.multi_reduction <maximumf>, %51, %cst_45 [1] : vector<32x256xf32> to vector<32xf32>
    %58 = vector.shape_cast %57 : vector<32xf32> to vector<32x1xf32>
    %c0_46 = arith.constant 0 : index
    %c13 = arith.constant 13 : index
    %59 = vector.load %arg8[%c0_46, %c13] : memref<32x16xf32, #tpu.memory_space<vmem>>, vector<32x1xf32>
    tpu.vector_store %arg8[%c0_46, %c13], %58 {strides = array<i32>} : memref<32x16xf32, #tpu.memory_space<vmem>>, vector<32x1xf32>,
    %c6 = arith.constant 6 : index
    %c0_47 = arith.constant 0 : index
    %c0_48 = arith.constant 0 : index
    %60 = vector.load %arg1[%c6, %c0_47, %c0_48] : memref<8x32x256xf32, #tpu.memory_space<vmem>>, vector<1x32x256xf32>
    %61 = vector.shape_cast %60 : vector<1x32x256xf32> to vector<32x256xf32>
    %cst_49 = arith.constant dense<0.000000e+00> : vector<32xf32>
    %62 = vector.multi_reduction <add>, %61, %cst_49 [1] : vector<32x256xf32> to vector<32xf32>
    %63 = vector.shape_cast %62 : vector<32xf32> to vector<32x1xf32>
    %cst_50 = arith.constant 2.560000e+02 : f32
    %64 = vector.broadcast %cst_50 : f32 to vector<32x1xf32>
    %65 = arith.divf %63, %64 : vector<32x1xf32>
    %c0_51 = arith.constant 0 : index
    %c6_52 = arith.constant 6 : index
    %66 = vector.load %arg8[%c0_51, %c6_52] : memref<32x16xf32, #tpu.memory_space<vmem>>, vector<32x1xf32>
    tpu.vector_store %arg8[%c0_51, %c6_52], %65 {strides = array<i32>} : memref<32x16xf32, #tpu.memory_space<vmem>>, vector<32x1xf32>,
    %cst_53 = arith.constant dense<0xFF800000> : vector<32xf32>
    %67 = vector.multi_reduction <maximumf>, %61, %cst_53 [1] : vector<32x256xf32> to vector<32xf32>
    %68 = vector.shape_cast %67 : vector<32xf32> to vector<32x1xf32>
    %c0_54 = arith.constant 0 : index
    %c14 = arith.constant 14 : index
    %69 = vector.load %arg8[%c0_54, %c14] : memref<32x16xf32, #tpu.memory_space<vmem>>, vector<32x1xf32>
    tpu.vector_store %arg8[%c0_54, %c14], %68 {strides = array<i32>} : memref<32x16xf32, #tpu.memory_space<vmem>>, vector<32x1xf32>,
    %c7 = arith.constant 7 : index
    %c0_55 = arith.constant 0 : index
    %c0_56 = arith.constant 0 : index
    %70 = vector.load %arg1[%c7, %c0_55, %c0_56] : memref<8x32x256xf32, #tpu.memory_space<vmem>>, vector<1x32x256xf32>
    %71 = vector.shape_cast %70 : vector<1x32x256xf32> to vector<32x256xf32>
    %cst_57 = arith.constant dense<0.000000e+00> : vector<32xf32>
    %72 = vector.multi_reduction <add>, %71, %cst_57 [1] : vector<32x256xf32> to vector<32xf32>
    %73 = vector.shape_cast %72 : vector<32xf32> to vector<32x1xf32>
    %cst_58 = arith.constant 2.560000e+02 : f32
    %74 = vector.broadcast %cst_58 : f32 to vector<32x1xf32>
    %75 = arith.divf %73, %74 : vector<32x1xf32>
    %c0_59 = arith.constant 0 : index
    %c7_60 = arith.constant 7 : index
    %76 = vector.load %arg8[%c0_59, %c7_60] : memref<32x16xf32, #tpu.memory_space<vmem>>, vector<32x1xf32>
    tpu.vector_store %arg8[%c0_59, %c7_60], %75 {strides = array<i32>} : memref<32x16xf32, #tpu.memory_space<vmem>>, vector<32x1xf32>,
    %cst_61 = arith.constant dense<0xFF800000> : vector<32xf32>
    %77 = vector.multi_reduction <maximumf>, %71, %cst_61 [1] : vector<32x256xf32> to vector<32xf32>
    %78 = vector.shape_cast %77 : vector<32xf32> to vector<32x1xf32>
    %c0_62 = arith.constant 0 : index
    %c15 = arith.constant 15 : index
    %79 = vector.load %arg8[%c0_62, %c15] : memref<32x16xf32, #tpu.memory_space<vmem>>, vector<32x1xf32>
    tpu.vector_store %arg8[%c0_62, %c15], %78 {strides = array<i32>} : memref<32x16xf32, #tpu.memory_space<vmem>>, vector<32x1xf32>,
    %c0_63 = arith.constant 0 : index
    %c0_64 = arith.constant 0 : index
    %80 = vector.load %arg8[%c0_63, %c0_64] : memref<32x16xf32, #tpu.memory_space<vmem>>, vector<32x16xf32>
    %c0_65 = arith.constant 0 : index
    %c0_66 = arith.constant 0 : index
    %81 = vector.load %arg2[%c0_65, %c0_66] : memref<2x32xf32, #tpu.memory_space<vmem>>, vector<2x32xf32>
    %cst_67 = arith.constant dense<0.000000e+00> : vector<2x16xf32>
    %82 = tpu.matmul %81, %80, %cst_67 {dimension_numbers = #tpu.dot_dimension_numbers<[1], [0], [0], [1], [0, 0, 1, 1], [], []>} : vector<2x32xf32>, vector<32x16xf32>, vector<2x16xf32> -> vector<2x16xf32>
    %c0_68 = arith.constant 0 : index
    %c0_69 = arith.constant 0 : index
    %83 = vector.load %arg3[%c0_68, %c0_69] : memref<2x1xf32, #tpu.memory_space<vmem>>, vector<2x1xf32>
    %84 = vector.broadcast %83 : vector<2x1xf32> to vector<2x16xf32>
    %85 = arith.addf %82, %84 : vector<2x16xf32>
    %cst_70 = arith.constant 0.000000e+00 : f32
    %86 = vector.broadcast %cst_70 : f32 to vector<2x16xf32>
    %87 = arith.maximumf %85, %86 : vector<2x16xf32>
    %c0_71 = arith.constant 0 : index
    %c0_72 = arith.constant 0 : index
    %88 = vector.load %arg4[%c0_71, %c0_72] : memref<32x2xf32, #tpu.memory_space<vmem>>, vector<32x2xf32>
    %cst_73 = arith.constant dense<0.000000e+00> : vector<32x16xf32>
    %89 = tpu.matmul %88, %87, %cst_73 {dimension_numbers = #tpu.dot_dimension_numbers<[1], [0], [0], [1], [0, 0, 1, 1], [], []>} : vector<32x2xf32>, vector<2x16xf32>, vector<32x16xf32> -> vector<32x16xf32>
    %c0_74 = arith.constant 0 : index
    %c0_75 = arith.constant 0 : index
    %90 = vector.load %arg5[%c0_74, %c0_75] : memref<32x1xf32, #tpu.memory_space<vmem>>, vector<32x1xf32>
    %91 = vector.broadcast %90 : vector<32x1xf32> to vector<32x16xf32>
    %92 = arith.addf %89, %91 : vector<32x16xf32>
    %93 = vector.extract_strided_slice %92 {offsets = [0, 0], sizes = [32, 8], strides = [1, 1]} : vector<32x16xf32> to vector<32x8xf32>
    %94 = vector.extract_strided_slice %92 {offsets = [0, 8], sizes = [32, 8], strides = [1, 1]} : vector<32x16xf32> to vector<32x8xf32>
    %95 = arith.addf %93, %94 : vector<32x8xf32>
    %96 = arith.negf %95 : vector<32x8xf32>
    %97 = math.exp %96 : vector<32x8xf32>
    %cst_76 = arith.constant 1.000000e+00 : f32
    %98 = vector.broadcast %cst_76 : f32 to vector<32x8xf32>
    %99 = arith.addf %98, %97 : vector<32x8xf32>
    %100 = arith.divf %98, %99 : vector<32x8xf32>
    %c0_77 = arith.constant 0 : index
    %c0_78 = arith.constant 0 : index
    %c0_79 = arith.constant 0 : index
    %101 = vector.load %arg1[%c0_77, %c0_78, %c0_79] : memref<8x32x256xf32, #tpu.memory_space<vmem>>, vector<1x32x256xf32>
    %102 = vector.shape_cast %101 : vector<1x32x256xf32> to vector<32x256xf32>
    %103 = vector.extract_strided_slice %100 {offsets = [0, 0], sizes = [32, 1], strides = [1, 1]} : vector<32x8xf32> to vector<32x1xf32>
    %cst_80 = arith.constant 1.000000e+00 : f32
    %104 = vector.broadcast %cst_80 : f32 to vector<32x1xf32>
    %105 = arith.addf %104, %103 : vector<32x1xf32>
    %106 = vector.broadcast %105 : vector<32x1xf32> to vector<32x256xf32>
    %107 = arith.mulf %102, %106 : vector<32x256xf32>
    %c0_81 = arith.constant 0 : index
    %c0_82 = arith.constant 0 : index
    %c0_83 = arith.constant 0 : index
    %108 = vector.load %arg7[%c0_81, %c0_82, %c0_83] : memref<8x32x256xf32, #tpu.memory_space<vmem>>, vector<1x32x256xf32>
    %109 = vector.shape_cast %108 : vector<1x32x256xf32> to vector<32x256xf32>
    %110 = vector.shape_cast %107 : vector<32x256xf32> to vector<1x32x256xf32>
    tpu.vector_store %arg7[%c0_81, %c0_82, %c0_83], %110 {strides = array<i32>} : memref<8x32x256xf32, #tpu.memory_space<vmem>>, vector<1x32x256xf32>,
    %cst_84 = arith.constant dense<0xFF800000> : vector<256xf32>
    %111 = vector.multi_reduction <maximumf>, %107, %cst_84 [0] : vector<32x256xf32> to vector<256xf32>
    %112 = vector.shape_cast %111 : vector<256xf32> to vector<1x256xf32>
    %c0_85 = arith.constant 0 : index
    %c0_86 = arith.constant 0 : index
    %113 = vector.load %arg9[%c0_85, %c0_86] : memref<16x256xf32, #tpu.memory_space<vmem>>, vector<1x256xf32>
    tpu.vector_store %arg9[%c0_85, %c0_86], %112 {strides = array<i32>} : memref<16x256xf32, #tpu.memory_space<vmem>>, vector<1x256xf32>,
    %cst_87 = arith.constant dense<0.000000e+00> : vector<256xf32>
    %114 = vector.multi_reduction <add>, %107, %cst_87 [0] : vector<32x256xf32> to vector<256xf32>
    %115 = vector.shape_cast %114 : vector<256xf32> to vector<1x256xf32>
    %cst_88 = arith.constant 3.200000e+01 : f32
    %116 = vector.broadcast %cst_88 : f32 to vector<1x256xf32>
    %117 = arith.divf %115, %116 : vector<1x256xf32>
    %c8_89 = arith.constant 8 : index
    %c0_90 = arith.constant 0 : index
    %118 = vector.load %arg9[%c8_89, %c0_90] : memref<16x256xf32, #tpu.memory_space<vmem>>, vector<1x256xf32>
    tpu.vector_store %arg9[%c8_89, %c0_90], %117 {strides = array<i32>} : memref<16x256xf32, #tpu.memory_space<vmem>>, vector<1x256xf32>,
    %c1_91 = arith.constant 1 : index
    %c0_92 = arith.constant 0 : index
    %c0_93 = arith.constant 0 : index
    %119 = vector.load %arg1[%c1_91, %c0_92, %c0_93] : memref<8x32x256xf32, #tpu.memory_space<vmem>>, vector<1x32x256xf32>
    %120 = vector.shape_cast %119 : vector<1x32x256xf32> to vector<32x256xf32>
    %121 = vector.extract_strided_slice %100 {offsets = [0, 1], sizes = [32, 1], strides = [1, 1]} : vector<32x8xf32> to vector<32x1xf32>
    %cst_94 = arith.constant 1.000000e+00 : f32
    %122 = vector.broadcast %cst_94 : f32 to vector<32x1xf32>
    %123 = arith.addf %122, %121 : vector<32x1xf32>
    %124 = vector.broadcast %123 : vector<32x1xf32> to vector<32x256xf32>
    %125 = arith.mulf %120, %124 : vector<32x256xf32>
    %c1_95 = arith.constant 1 : index
    %c0_96 = arith.constant 0 : index
    %c0_97 = arith.constant 0 : index
    %126 = vector.load %arg7[%c1_95, %c0_96, %c0_97] : memref<8x32x256xf32, #tpu.memory_space<vmem>>, vector<1x32x256xf32>
    %127 = vector.shape_cast %126 : vector<1x32x256xf32> to vector<32x256xf32>
    %128 = vector.shape_cast %125 : vector<32x256xf32> to vector<1x32x256xf32>
    tpu.vector_store %arg7[%c1_95, %c0_96, %c0_97], %128 {strides = array<i32>} : memref<8x32x256xf32, #tpu.memory_space<vmem>>, vector<1x32x256xf32>,
    %cst_98 = arith.constant dense<0xFF800000> : vector<256xf32>
    %129 = vector.multi_reduction <maximumf>, %125, %cst_98 [0] : vector<32x256xf32> to vector<256xf32>
    %130 = vector.shape_cast %129 : vector<256xf32> to vector<1x256xf32>
    %c1_99 = arith.constant 1 : index
    %c0_100 = arith.constant 0 : index
    %131 = vector.load %arg9[%c1_99, %c0_100] : memref<16x256xf32, #tpu.memory_space<vmem>>, vector<1x256xf32>
    tpu.vector_store %arg9[%c1_99, %c0_100], %130 {strides = array<i32>} : memref<16x256xf32, #tpu.memory_space<vmem>>, vector<1x256xf32>,
    %cst_101 = arith.constant dense<0.000000e+00> : vector<256xf32>
    %132 = vector.multi_reduction <add>, %125, %cst_101 [0] : vector<32x256xf32> to vector<256xf32>
    %133 = vector.shape_cast %132 : vector<256xf32> to vector<1x256xf32>
    %cst_102 = arith.constant 3.200000e+01 : f32
    %134 = vector.broadcast %cst_102 : f32 to vector<1x256xf32>
    %135 = arith.divf %133, %134 : vector<1x256xf32>
    %c9_103 = arith.constant 9 : index
    %c0_104 = arith.constant 0 : index
    %136 = vector.load %arg9[%c9_103, %c0_104] : memref<16x256xf32, #tpu.memory_space<vmem>>, vector<1x256xf32>
    tpu.vector_store %arg9[%c9_103, %c0_104], %135 {strides = array<i32>} : memref<16x256xf32, #tpu.memory_space<vmem>>, vector<1x256xf32>,
    %c2_105 = arith.constant 2 : index
    %c0_106 = arith.constant 0 : index
    %c0_107 = arith.constant 0 : index
    %137 = vector.load %arg1[%c2_105, %c0_106, %c0_107] : memref<8x32x256xf32, #tpu.memory_space<vmem>>, vector<1x32x256xf32>
    %138 = vector.shape_cast %137 : vector<1x32x256xf32> to vector<32x256xf32>
    %139 = vector.extract_strided_slice %100 {offsets = [0, 2], sizes = [32, 1], strides = [1, 1]} : vector<32x8xf32> to vector<32x1xf32>
    %cst_108 = arith.constant 1.000000e+00 : f32
    %140 = vector.broadcast %cst_108 : f32 to vector<32x1xf32>
    %141 = arith.addf %140, %139 : vector<32x1xf32>
    %142 = vector.broadcast %141 : vector<32x1xf32> to vector<32x256xf32>
    %143 = arith.mulf %138, %142 : vector<32x256xf32>
    %c2_109 = arith.constant 2 : index
    %c0_110 = arith.constant 0 : index
    %c0_111 = arith.constant 0 : index
    %144 = vector.load %arg7[%c2_109, %c0_110, %c0_111] : memref<8x32x256xf32, #tpu.memory_space<vmem>>, vector<1x32x256xf32>
    %145 = vector.shape_cast %144 : vector<1x32x256xf32> to vector<32x256xf32>
    %146 = vector.shape_cast %143 : vector<32x256xf32> to vector<1x32x256xf32>
    tpu.vector_store %arg7[%c2_109, %c0_110, %c0_111], %146 {strides = array<i32>} : memref<8x32x256xf32, #tpu.memory_space<vmem>>, vector<1x32x256xf32>,
    %cst_112 = arith.constant dense<0xFF800000> : vector<256xf32>
    %147 = vector.multi_reduction <maximumf>, %143, %cst_112 [0] : vector<32x256xf32> to vector<256xf32>
    %148 = vector.shape_cast %147 : vector<256xf32> to vector<1x256xf32>
    %c2_113 = arith.constant 2 : index
    %c0_114 = arith.constant 0 : index
    %149 = vector.load %arg9[%c2_113, %c0_114] : memref<16x256xf32, #tpu.memory_space<vmem>>, vector<1x256xf32>
    tpu.vector_store %arg9[%c2_113, %c0_114], %148 {strides = array<i32>} : memref<16x256xf32, #tpu.memory_space<vmem>>, vector<1x256xf32>,
    %cst_115 = arith.constant dense<0.000000e+00> : vector<256xf32>
    %150 = vector.multi_reduction <add>, %143, %cst_115 [0] : vector<32x256xf32> to vector<256xf32>
    %151 = vector.shape_cast %150 : vector<256xf32> to vector<1x256xf32>
    %cst_116 = arith.constant 3.200000e+01 : f32
    %152 = vector.broadcast %cst_116 : f32 to vector<1x256xf32>
    %153 = arith.divf %151, %152 : vector<1x256xf32>
    %c10_117 = arith.constant 10 : index
    %c0_118 = arith.constant 0 : index
    %154 = vector.load %arg9[%c10_117, %c0_118] : memref<16x256xf32, #tpu.memory_space<vmem>>, vector<1x256xf32>
    tpu.vector_store %arg9[%c10_117, %c0_118], %153 {strides = array<i32>} : memref<16x256xf32, #tpu.memory_space<vmem>>, vector<1x256xf32>,
    %c3_119 = arith.constant 3 : index
    %c0_120 = arith.constant 0 : index
    %c0_121 = arith.constant 0 : index
    %155 = vector.load %arg1[%c3_119, %c0_120, %c0_121] : memref<8x32x256xf32, #tpu.memory_space<vmem>>, vector<1x32x256xf32>
    %156 = vector.shape_cast %155 : vector<1x32x256xf32> to vector<32x256xf32>
    %157 = vector.extract_strided_slice %100 {offsets = [0, 3], sizes = [32, 1], strides = [1, 1]} : vector<32x8xf32> to vector<32x1xf32>
    %cst_122 = arith.constant 1.000000e+00 : f32
    %158 = vector.broadcast %cst_122 : f32 to vector<32x1xf32>
    %159 = arith.addf %158, %157 : vector<32x1xf32>
    %160 = vector.broadcast %159 : vector<32x1xf32> to vector<32x256xf32>
    %161 = arith.mulf %156, %160 : vector<32x256xf32>
    %c3_123 = arith.constant 3 : index
    %c0_124 = arith.constant 0 : index
    %c0_125 = arith.constant 0 : index
    %162 = vector.load %arg7[%c3_123, %c0_124, %c0_125] : memref<8x32x256xf32, #tpu.memory_space<vmem>>, vector<1x32x256xf32>
    %163 = vector.shape_cast %162 : vector<1x32x256xf32> to vector<32x256xf32>
    %164 = vector.shape_cast %161 : vector<32x256xf32> to vector<1x32x256xf32>
    tpu.vector_store %arg7[%c3_123, %c0_124, %c0_125], %164 {strides = array<i32>} : memref<8x32x256xf32, #tpu.memory_space<vmem>>, vector<1x32x256xf32>,
    %cst_126 = arith.constant dense<0xFF800000> : vector<256xf32>
    %165 = vector.multi_reduction <maximumf>, %161, %cst_126 [0] : vector<32x256xf32> to vector<256xf32>
    %166 = vector.shape_cast %165 : vector<256xf32> to vector<1x256xf32>
    %c3_127 = arith.constant 3 : index
    %c0_128 = arith.constant 0 : index
    %167 = vector.load %arg9[%c3_127, %c0_128] : memref<16x256xf32, #tpu.memory_space<vmem>>, vector<1x256xf32>
    tpu.vector_store %arg9[%c3_127, %c0_128], %166 {strides = array<i32>} : memref<16x256xf32, #tpu.memory_space<vmem>>, vector<1x256xf32>,
    %cst_129 = arith.constant dense<0.000000e+00> : vector<256xf32>
    %168 = vector.multi_reduction <add>, %161, %cst_129 [0] : vector<32x256xf32> to vector<256xf32>
    %169 = vector.shape_cast %168 : vector<256xf32> to vector<1x256xf32>
    %cst_130 = arith.constant 3.200000e+01 : f32
    %170 = vector.broadcast %cst_130 : f32 to vector<1x256xf32>
    %171 = arith.divf %169, %170 : vector<1x256xf32>
    %c11_131 = arith.constant 11 : index
    %c0_132 = arith.constant 0 : index
    %172 = vector.load %arg9[%c11_131, %c0_132] : memref<16x256xf32, #tpu.memory_space<vmem>>, vector<1x256xf32>
    tpu.vector_store %arg9[%c11_131, %c0_132], %171 {strides = array<i32>} : memref<16x256xf32, #tpu.memory_space<vmem>>, vector<1x256xf32>,
    %c4_133 = arith.constant 4 : index
    %c0_134 = arith.constant 0 : index
    %c0_135 = arith.constant 0 : index
    %173 = vector.load %arg1[%c4_133, %c0_134, %c0_135] : memref<8x32x256xf32, #tpu.memory_space<vmem>>, vector<1x32x256xf32>
    %174 = vector.shape_cast %173 : vector<1x32x256xf32> to vector<32x256xf32>
    %175 = vector.extract_strided_slice %100 {offsets = [0, 4], sizes = [32, 1], strides = [1, 1]} : vector<32x8xf32> to vector<32x1xf32>
    %cst_136 = arith.constant 1.000000e+00 : f32
    %176 = vector.broadcast %cst_136 : f32 to vector<32x1xf32>
    %177 = arith.addf %176, %175 : vector<32x1xf32>
    %178 = vector.broadcast %177 : vector<32x1xf32> to vector<32x256xf32>
    %179 = arith.mulf %174, %178 : vector<32x256xf32>
    %c4_137 = arith.constant 4 : index
    %c0_138 = arith.constant 0 : index
    %c0_139 = arith.constant 0 : index
    %180 = vector.load %arg7[%c4_137, %c0_138, %c0_139] : memref<8x32x256xf32, #tpu.memory_space<vmem>>, vector<1x32x256xf32>
    %181 = vector.shape_cast %180 : vector<1x32x256xf32> to vector<32x256xf32>
    %182 = vector.shape_cast %179 : vector<32x256xf32> to vector<1x32x256xf32>
    tpu.vector_store %arg7[%c4_137, %c0_138, %c0_139], %182 {strides = array<i32>} : memref<8x32x256xf32, #tpu.memory_space<vmem>>, vector<1x32x256xf32>,
    %cst_140 = arith.constant dense<0xFF800000> : vector<256xf32>
    %183 = vector.multi_reduction <maximumf>, %179, %cst_140 [0] : vector<32x256xf32> to vector<256xf32>
    %184 = vector.shape_cast %183 : vector<256xf32> to vector<1x256xf32>
    %c4_141 = arith.constant 4 : index
    %c0_142 = arith.constant 0 : index
    %185 = vector.load %arg9[%c4_141, %c0_142] : memref<16x256xf32, #tpu.memory_space<vmem>>, vector<1x256xf32>
    tpu.vector_store %arg9[%c4_141, %c0_142], %184 {strides = array<i32>} : memref<16x256xf32, #tpu.memory_space<vmem>>, vector<1x256xf32>,
    %cst_143 = arith.constant dense<0.000000e+00> : vector<256xf32>
    %186 = vector.multi_reduction <add>, %179, %cst_143 [0] : vector<32x256xf32> to vector<256xf32>
    %187 = vector.shape_cast %186 : vector<256xf32> to vector<1x256xf32>
    %cst_144 = arith.constant 3.200000e+01 : f32
    %188 = vector.broadcast %cst_144 : f32 to vector<1x256xf32>
    %189 = arith.divf %187, %188 : vector<1x256xf32>
    %c12_145 = arith.constant 12 : index
    %c0_146 = arith.constant 0 : index
    %190 = vector.load %arg9[%c12_145, %c0_146] : memref<16x256xf32, #tpu.memory_space<vmem>>, vector<1x256xf32>
    tpu.vector_store %arg9[%c12_145, %c0_146], %189 {strides = array<i32>} : memref<16x256xf32, #tpu.memory_space<vmem>>, vector<1x256xf32>,
    %c5_147 = arith.constant 5 : index
    %c0_148 = arith.constant 0 : index
    %c0_149 = arith.constant 0 : index
    %191 = vector.load %arg1[%c5_147, %c0_148, %c0_149] : memref<8x32x256xf32, #tpu.memory_space<vmem>>, vector<1x32x256xf32>
    %192 = vector.shape_cast %191 : vector<1x32x256xf32> to vector<32x256xf32>
    %193 = vector.extract_strided_slice %100 {offsets = [0, 5], sizes = [32, 1], strides = [1, 1]} : vector<32x8xf32> to vector<32x1xf32>
    %cst_150 = arith.constant 1.000000e+00 : f32
    %194 = vector.broadcast %cst_150 : f32 to vector<32x1xf32>
    %195 = arith.addf %194, %193 : vector<32x1xf32>
    %196 = vector.broadcast %195 : vector<32x1xf32> to vector<32x256xf32>
    %197 = arith.mulf %192, %196 : vector<32x256xf32>
    %c5_151 = arith.constant 5 : index
    %c0_152 = arith.constant 0 : index
    %c0_153 = arith.constant 0 : index
    %198 = vector.load %arg7[%c5_151, %c0_152, %c0_153] : memref<8x32x256xf32, #tpu.memory_space<vmem>>, vector<1x32x256xf32>
    %199 = vector.shape_cast %198 : vector<1x32x256xf32> to vector<32x256xf32>
    %200 = vector.shape_cast %197 : vector<32x256xf32> to vector<1x32x256xf32>
    tpu.vector_store %arg7[%c5_151, %c0_152, %c0_153], %200 {strides = array<i32>} : memref<8x32x256xf32, #tpu.memory_space<vmem>>, vector<1x32x256xf32>,
    %cst_154 = arith.constant dense<0xFF800000> : vector<256xf32>
    %201 = vector.multi_reduction <maximumf>, %197, %cst_154 [0] : vector<32x256xf32> to vector<256xf32>
    %202 = vector.shape_cast %201 : vector<256xf32> to vector<1x256xf32>
    %c5_155 = arith.constant 5 : index
    %c0_156 = arith.constant 0 : index
    %203 = vector.load %arg9[%c5_155, %c0_156] : memref<16x256xf32, #tpu.memory_space<vmem>>, vector<1x256xf32>
    tpu.vector_store %arg9[%c5_155, %c0_156], %202 {strides = array<i32>} : memref<16x256xf32, #tpu.memory_space<vmem>>, vector<1x256xf32>,
    %cst_157 = arith.constant dense<0.000000e+00> : vector<256xf32>
    %204 = vector.multi_reduction <add>, %197, %cst_157 [0] : vector<32x256xf32> to vector<256xf32>
    %205 = vector.shape_cast %204 : vector<256xf32> to vector<1x256xf32>
    %cst_158 = arith.constant 3.200000e+01 : f32
    %206 = vector.broadcast %cst_158 : f32 to vector<1x256xf32>
    %207 = arith.divf %205, %206 : vector<1x256xf32>
    %c13_159 = arith.constant 13 : index
    %c0_160 = arith.constant 0 : index
    %208 = vector.load %arg9[%c13_159, %c0_160] : memref<16x256xf32, #tpu.memory_space<vmem>>, vector<1x256xf32>
    tpu.vector_store %arg9[%c13_159, %c0_160], %207 {strides = array<i32>} : memref<16x256xf32, #tpu.memory_space<vmem>>, vector<1x256xf32>,
    %c6_161 = arith.constant 6 : index
    %c0_162 = arith.constant 0 : index
    %c0_163 = arith.constant 0 : index
    %209 = vector.load %arg1[%c6_161, %c0_162, %c0_163] : memref<8x32x256xf32, #tpu.memory_space<vmem>>, vector<1x32x256xf32>
    %210 = vector.shape_cast %209 : vector<1x32x256xf32> to vector<32x256xf32>
    %211 = vector.extract_strided_slice %100 {offsets = [0, 6], sizes = [32, 1], strides = [1, 1]} : vector<32x8xf32> to vector<32x1xf32>
    %cst_164 = arith.constant 1.000000e+00 : f32
    %212 = vector.broadcast %cst_164 : f32 to vector<32x1xf32>
    %213 = arith.addf %212, %211 : vector<32x1xf32>
    %214 = vector.broadcast %213 : vector<32x1xf32> to vector<32x256xf32>
    %215 = arith.mulf %210, %214 : vector<32x256xf32>
    %c6_165 = arith.constant 6 : index
    %c0_166 = arith.constant 0 : index
    %c0_167 = arith.constant 0 : index
    %216 = vector.load %arg7[%c6_165, %c0_166, %c0_167] : memref<8x32x256xf32, #tpu.memory_space<vmem>>, vector<1x32x256xf32>
    %217 = vector.shape_cast %216 : vector<1x32x256xf32> to vector<32x256xf32>
    %218 = vector.shape_cast %215 : vector<32x256xf32> to vector<1x32x256xf32>
    tpu.vector_store %arg7[%c6_165, %c0_166, %c0_167], %218 {strides = array<i32>} : memref<8x32x256xf32, #tpu.memory_space<vmem>>, vector<1x32x256xf32>,
    %cst_168 = arith.constant dense<0xFF800000> : vector<256xf32>
    %219 = vector.multi_reduction <maximumf>, %215, %cst_168 [0] : vector<32x256xf32> to vector<256xf32>
    %220 = vector.shape_cast %219 : vector<256xf32> to vector<1x256xf32>
    %c6_169 = arith.constant 6 : index
    %c0_170 = arith.constant 0 : index
    %221 = vector.load %arg9[%c6_169, %c0_170] : memref<16x256xf32, #tpu.memory_space<vmem>>, vector<1x256xf32>
    tpu.vector_store %arg9[%c6_169, %c0_170], %220 {strides = array<i32>} : memref<16x256xf32, #tpu.memory_space<vmem>>, vector<1x256xf32>,
    %cst_171 = arith.constant dense<0.000000e+00> : vector<256xf32>
    %222 = vector.multi_reduction <add>, %215, %cst_171 [0] : vector<32x256xf32> to vector<256xf32>
    %223 = vector.shape_cast %222 : vector<256xf32> to vector<1x256xf32>
    %cst_172 = arith.constant 3.200000e+01 : f32
    %224 = vector.broadcast %cst_172 : f32 to vector<1x256xf32>
    %225 = arith.divf %223, %224 : vector<1x256xf32>
    %c14_173 = arith.constant 14 : index
    %c0_174 = arith.constant 0 : index
    %226 = vector.load %arg9[%c14_173, %c0_174] : memref<16x256xf32, #tpu.memory_space<vmem>>, vector<1x256xf32>
    tpu.vector_store %arg9[%c14_173, %c0_174], %225 {strides = array<i32>} : memref<16x256xf32, #tpu.memory_space<vmem>>, vector<1x256xf32>,
    %c7_175 = arith.constant 7 : index
    %c0_176 = arith.constant 0 : index
    %c0_177 = arith.constant 0 : index
    %227 = vector.load %arg1[%c7_175, %c0_176, %c0_177] : memref<8x32x256xf32, #tpu.memory_space<vmem>>, vector<1x32x256xf32>
    %228 = vector.shape_cast %227 : vector<1x32x256xf32> to vector<32x256xf32>
    %229 = vector.extract_strided_slice %100 {offsets = [0, 7], sizes = [32, 1], strides = [1, 1]} : vector<32x8xf32> to vector<32x1xf32>
    %cst_178 = arith.constant 1.000000e+00 : f32
    %230 = vector.broadcast %cst_178 : f32 to vector<32x1xf32>
    %231 = arith.addf %230, %229 : vector<32x1xf32>
    %232 = vector.broadcast %231 : vector<32x1xf32> to vector<32x256xf32>
    %233 = arith.mulf %228, %232 : vector<32x256xf32>
    %c7_179 = arith.constant 7 : index
    %c0_180 = arith.constant 0 : index
    %c0_181 = arith.constant 0 : index
    %234 = vector.load %arg7[%c7_179, %c0_180, %c0_181] : memref<8x32x256xf32, #tpu.memory_space<vmem>>, vector<1x32x256xf32>
    %235 = vector.shape_cast %234 : vector<1x32x256xf32> to vector<32x256xf32>
    %236 = vector.shape_cast %233 : vector<32x256xf32> to vector<1x32x256xf32>
    tpu.vector_store %arg7[%c7_179, %c0_180, %c0_181], %236 {strides = array<i32>} : memref<8x32x256xf32, #tpu.memory_space<vmem>>, vector<1x32x256xf32>,
    %cst_182 = arith.constant dense<0xFF800000> : vector<256xf32>
    %237 = vector.multi_reduction <maximumf>, %233, %cst_182 [0] : vector<32x256xf32> to vector<256xf32>
    %238 = vector.shape_cast %237 : vector<256xf32> to vector<1x256xf32>
    %c7_183 = arith.constant 7 : index
    %c0_184 = arith.constant 0 : index
    %239 = vector.load %arg9[%c7_183, %c0_184] : memref<16x256xf32, #tpu.memory_space<vmem>>, vector<1x256xf32>
    tpu.vector_store %arg9[%c7_183, %c0_184], %238 {strides = array<i32>} : memref<16x256xf32, #tpu.memory_space<vmem>>, vector<1x256xf32>,
    %cst_185 = arith.constant dense<0.000000e+00> : vector<256xf32>
    %240 = vector.multi_reduction <add>, %233, %cst_185 [0] : vector<32x256xf32> to vector<256xf32>
    %241 = vector.shape_cast %240 : vector<256xf32> to vector<1x256xf32>
    %cst_186 = arith.constant 3.200000e+01 : f32
    %242 = vector.broadcast %cst_186 : f32 to vector<1x256xf32>
    %243 = arith.divf %241, %242 : vector<1x256xf32>
    %c15_187 = arith.constant 15 : index
    %c0_188 = arith.constant 0 : index
    %244 = vector.load %arg9[%c15_187, %c0_188] : memref<16x256xf32, #tpu.memory_space<vmem>>, vector<1x256xf32>
    tpu.vector_store %arg9[%c15_187, %c0_188], %243 {strides = array<i32>} : memref<16x256xf32, #tpu.memory_space<vmem>>, vector<1x256xf32>,
    %c0_189 = arith.constant 0 : index
    %c0_190 = arith.constant 0 : index
    %245 = vector.load %arg9[%c0_189, %c0_190] : memref<16x256xf32, #tpu.memory_space<vmem>>, vector<16x256xf32>
    %246 = tpu.iota {dimensions = array<i32: 1>} : vector<16x256xi32>
    %247 = tpu.iota {dimensions = array<i32: 1>} : vector<8x256xi32>
    %c4_i32 = arith.constant 4 : i32
    %248 = vector.broadcast %c4_i32 : i32 to vector<16x256xi32>
    %249 = arith.shrsi %246, %248 : vector<16x256xi32>
    %c15_i32 = arith.constant 15 : i32
    %250 = vector.broadcast %c15_i32 : i32 to vector<8x256xi32>
    %251 = arith.andi %247, %250 : vector<8x256xi32>
    %c48_i32 = arith.constant 48 : i32
    %252 = tpu.dynamic_rotate %245 by %c48_i32 dim 1 : vector<16x256xf32>, i32 -> vector<16x256xf32>
    %c-3_i32 = arith.constant -3 : i32
    %253 = vector.broadcast %c-3_i32 : i32 to vector<16x256xi32>
    %254 = arith.addi %249, %253 : vector<16x256xi32>
    %c0_i32 = arith.constant 0 : i32
    %255 = vector.broadcast %c0_i32 : i32 to vector<16x256xi32>
    %256 = arith.cmpi sge, %254, %255 : vector<16x256xi32>
    %c16_i32 = arith.constant 16 : i32
    %257 = vector.broadcast %c16_i32 : i32 to vector<16x256xi32>
    %258 = arith.cmpi slt, %254, %257 : vector<16x256xi32>
    %259 = arith.andi %256, %258 : vector<16x256xi1>
    %cst_191 = arith.constant 0.000000e+00 : f32
    %260 = vector.broadcast %cst_191 : f32 to vector<16x256xf32>
    %261 = arith.select %259, %252, %260 : vector<16x256xi1>, vector<16x256xf32>
    %c32_i32 = arith.constant 32 : i32
    %262 = tpu.dynamic_rotate %245 by %c32_i32 dim 1 : vector<16x256xf32>, i32 -> vector<16x256xf32>
    %c-2_i32 = arith.constant -2 : i32
    %263 = vector.broadcast %c-2_i32 : i32 to vector<16x256xi32>
    %264 = arith.addi %249, %263 : vector<16x256xi32>
    %c0_i32_192 = arith.constant 0 : i32
    %265 = vector.broadcast %c0_i32_192 : i32 to vector<16x256xi32>
    %266 = arith.cmpi sge, %264, %265 : vector<16x256xi32>
    %c16_i32_193 = arith.constant 16 : i32
    %267 = vector.broadcast %c16_i32_193 : i32 to vector<16x256xi32>
    %268 = arith.cmpi slt, %264, %267 : vector<16x256xi32>
    %269 = arith.andi %266, %268 : vector<16x256xi1>
    %cst_194 = arith.constant 0.000000e+00 : f32
    %270 = vector.broadcast %cst_194 : f32 to vector<16x256xf32>
    %271 = arith.select %269, %262, %270 : vector<16x256xi1>, vector<16x256xf32>
    %c16_i32_195 = arith.constant 16 : i32
    %272 = tpu.dynamic_rotate %245 by %c16_i32_195 dim 1 : vector<16x256xf32>, i32 -> vector<16x256xf32>
    %c-1_i32 = arith.constant -1 : i32
    %273 = vector.broadcast %c-1_i32 : i32 to vector<16x256xi32>
    %274 = arith.addi %249, %273 : vector<16x256xi32>
    %c0_i32_196 = arith.constant 0 : i32
    %275 = vector.broadcast %c0_i32_196 : i32 to vector<16x256xi32>
    %276 = arith.cmpi sge, %274, %275 : vector<16x256xi32>
    %c16_i32_197 = arith.constant 16 : i32
    %277 = vector.broadcast %c16_i32_197 : i32 to vector<16x256xi32>
    %278 = arith.cmpi slt, %274, %277 : vector<16x256xi32>
    %279 = arith.andi %276, %278 : vector<16x256xi1>
    %cst_198 = arith.constant 0.000000e+00 : f32
    %280 = vector.broadcast %cst_198 : f32 to vector<16x256xf32>
    %281 = arith.select %279, %272, %280 : vector<16x256xi1>, vector<16x256xf32>
    %c240_i32 = arith.constant 240 : i32
    %282 = tpu.dynamic_rotate %245 by %c240_i32 dim 1 : vector<16x256xf32>, i32 -> vector<16x256xf32>
    %c1_i32 = arith.constant 1 : i32
    %283 = vector.broadcast %c1_i32 : i32 to vector<16x256xi32>
    %284 = arith.addi %249, %283 : vector<16x256xi32>
    %c0_i32_199 = arith.constant 0 : i32
    %285 = vector.broadcast %c0_i32_199 : i32 to vector<16x256xi32>
    %286 = arith.cmpi sge, %284, %285 : vector<16x256xi32>
    %c16_i32_200 = arith.constant 16 : i32
    %287 = vector.broadcast %c16_i32_200 : i32 to vector<16x256xi32>
    %288 = arith.cmpi slt, %284, %287 : vector<16x256xi32>
    %289 = arith.andi %286, %288 : vector<16x256xi1>
    %cst_201 = arith.constant 0.000000e+00 : f32
    %290 = vector.broadcast %cst_201 : f32 to vector<16x256xf32>
    %291 = arith.select %289, %282, %290 : vector<16x256xi1>, vector<16x256xf32>
    %c224_i32 = arith.constant 224 : i32
    %292 = tpu.dynamic_rotate %245 by %c224_i32 dim 1 : vector<16x256xf32>, i32 -> vector<16x256xf32>
    %c2_i32 = arith.constant 2 : i32
    %293 = vector.broadcast %c2_i32 : i32 to vector<16x256xi32>
    %294 = arith.addi %249, %293 : vector<16x256xi32>
    %c0_i32_202 = arith.constant 0 : i32
    %295 = vector.broadcast %c0_i32_202 : i32 to vector<16x256xi32>
    %296 = arith.cmpi sge, %294, %295 : vector<16x256xi32>
    %c16_i32_203 = arith.constant 16 : i32
    %297 = vector.broadcast %c16_i32_203 : i32 to vector<16x256xi32>
    %298 = arith.cmpi slt, %294, %297 : vector<16x256xi32>
    %299 = arith.andi %296, %298 : vector<16x256xi1>
    %cst_204 = arith.constant 0.000000e+00 : f32
    %300 = vector.broadcast %cst_204 : f32 to vector<16x256xf32>
    %301 = arith.select %299, %292, %300 : vector<16x256xi1>, vector<16x256xf32>
    %c208_i32 = arith.constant 208 : i32
    %302 = tpu.dynamic_rotate %245 by %c208_i32 dim 1 : vector<16x256xf32>, i32 -> vector<16x256xf32>
    %c3_i32 = arith.constant 3 : i32
    %303 = vector.broadcast %c3_i32 : i32 to vector<16x256xi32>
    %304 = arith.addi %249, %303 : vector<16x256xi32>
    %c0_i32_205 = arith.constant 0 : i32
    %305 = vector.broadcast %c0_i32_205 : i32 to vector<16x256xi32>
    %306 = arith.cmpi sge, %304, %305 : vector<16x256xi32>
    %c16_i32_206 = arith.constant 16 : i32
    %307 = vector.broadcast %c16_i32_206 : i32 to vector<16x256xi32>
    %308 = arith.cmpi slt, %304, %307 : vector<16x256xi32>
    %309 = arith.andi %306, %308 : vector<16x256xi1>
    %cst_207 = arith.constant 0.000000e+00 : f32
    %310 = vector.broadcast %cst_207 : f32 to vector<16x256xf32>
    %311 = arith.select %309, %302, %310 : vector<16x256xi1>, vector<16x256xf32>
    %cst_208 = arith.constant 0.000000e+00 : f32
    %312 = vector.broadcast %cst_208 : f32 to vector<8x256xf32>
    %cst_209 = arith.constant 0.000000e+00 : f32
    %313 = vector.broadcast %cst_209 : f32 to vector<16x256xf32>
    %c0_210 = arith.constant 0 : index
    %c0_211 = arith.constant 0 : index
    %314 = vector.load %arg6[%c0_210, %c0_211] : memref<16x49xf32, #tpu.memory_space<vmem>>, vector<16x1xf32>
    %315 = vector.broadcast %314 : vector<16x1xf32> to vector<16x256xf32>
    %316 = arith.mulf %315, %261 : vector<16x256xf32>
    %317 = arith.addf %313, %316 : vector<16x256xf32>
    %c0_212 = arith.constant 0 : index
    %c7_213 = arith.constant 7 : index
    %318 = vector.load %arg6[%c0_212, %c7_213] : memref<16x49xf32, #tpu.memory_space<vmem>>, vector<16x1xf32>
    %319 = vector.broadcast %318 : vector<16x1xf32> to vector<16x256xf32>
    %320 = arith.mulf %319, %271 : vector<16x256xf32>
    %321 = arith.addf %317, %320 : vector<16x256xf32>
    %c0_214 = arith.constant 0 : index
    %c14_215 = arith.constant 14 : index
    %322 = vector.load %arg6[%c0_214, %c14_215] : memref<16x49xf32, #tpu.memory_space<vmem>>, vector<16x1xf32>
    %323 = vector.broadcast %322 : vector<16x1xf32> to vector<16x256xf32>
    %324 = arith.mulf %323, %281 : vector<16x256xf32>
    %325 = arith.addf %321, %324 : vector<16x256xf32>
    %c0_216 = arith.constant 0 : index
    %c21 = arith.constant 21 : index
    %326 = vector.load %arg6[%c0_216, %c21] : memref<16x49xf32, #tpu.memory_space<vmem>>, vector<16x1xf32>
    %327 = vector.broadcast %326 : vector<16x1xf32> to vector<16x256xf32>
    %328 = arith.mulf %327, %245 : vector<16x256xf32>
    %329 = arith.addf %325, %328 : vector<16x256xf32>
    %c0_217 = arith.constant 0 : index
    %c28 = arith.constant 28 : index
    %330 = vector.load %arg6[%c0_217, %c28] : memref<16x49xf32, #tpu.memory_space<vmem>>, vector<16x1xf32>
    %331 = vector.broadcast %330 : vector<16x1xf32> to vector<16x256xf32>
    %332 = arith.mulf %331, %291 : vector<16x256xf32>
    %333 = arith.addf %329, %332 : vector<16x256xf32>
    %c0_218 = arith.constant 0 : index
    %c35 = arith.constant 35 : index
    %334 = vector.load %arg6[%c0_218, %c35] : memref<16x49xf32, #tpu.memory_space<vmem>>, vector<16x1xf32>
    %335 = vector.broadcast %334 : vector<16x1xf32> to vector<16x256xf32>
    %336 = arith.mulf %335, %301 : vector<16x256xf32>
    %337 = arith.addf %333, %336 : vector<16x256xf32>
    %c0_219 = arith.constant 0 : index
    %c42 = arith.constant 42 : index
    %338 = vector.load %arg6[%c0_219, %c42] : memref<16x49xf32, #tpu.memory_space<vmem>>, vector<16x1xf32>
    %339 = vector.broadcast %338 : vector<16x1xf32> to vector<16x256xf32>
    %340 = arith.mulf %339, %311 : vector<16x256xf32>
    %341 = arith.addf %337, %340 : vector<16x256xf32>
    %342 = vector.extract_strided_slice %341 {offsets = [0, 0], sizes = [8, 256], strides = [1, 1]} : vector<16x256xf32> to vector<8x256xf32>
    %343 = vector.extract_strided_slice %341 {offsets = [8, 0], sizes = [8, 256], strides = [1, 1]} : vector<16x256xf32> to vector<8x256xf32>
    %344 = arith.addf %342, %343 : vector<8x256xf32>
    %c3_i32_220 = arith.constant 3 : i32
    %345 = tpu.dynamic_rotate %344 by %c3_i32_220 dim 1 : vector<8x256xf32>, i32 -> vector<8x256xf32>
    %c-3_i32_221 = arith.constant -3 : i32
    %346 = vector.broadcast %c-3_i32_221 : i32 to vector<8x256xi32>
    %347 = arith.addi %251, %346 : vector<8x256xi32>
    %c0_i32_222 = arith.constant 0 : i32
    %348 = vector.broadcast %c0_i32_222 : i32 to vector<8x256xi32>
    %349 = arith.cmpi sge, %347, %348 : vector<8x256xi32>
    %c16_i32_223 = arith.constant 16 : i32
    %350 = vector.broadcast %c16_i32_223 : i32 to vector<8x256xi32>
    %351 = arith.cmpi slt, %347, %350 : vector<8x256xi32>
    %352 = arith.andi %349, %351 : vector<8x256xi1>
    %cst_224 = arith.constant 0.000000e+00 : f32
    %353 = vector.broadcast %cst_224 : f32 to vector<8x256xf32>
    %354 = arith.select %352, %345, %353 : vector<8x256xi1>, vector<8x256xf32>
    %355 = arith.addf %312, %354 : vector<8x256xf32>
    %cst_225 = arith.constant 0.000000e+00 : f32
    %356 = vector.broadcast %cst_225 : f32 to vector<16x256xf32>
    %c0_226 = arith.constant 0 : index
    %c1_227 = arith.constant 1 : index
    %357 = vector.load %arg6[%c0_226, %c1_227] : memref<16x49xf32, #tpu.memory_space<vmem>>, vector<16x1xf32>
    %358 = vector.broadcast %357 : vector<16x1xf32> to vector<16x256xf32>
    %359 = arith.mulf %358, %261 : vector<16x256xf32>
    %360 = arith.addf %356, %359 : vector<16x256xf32>
    %c0_228 = arith.constant 0 : index
    %c8_229 = arith.constant 8 : index
    %361 = vector.load %arg6[%c0_228, %c8_229] : memref<16x49xf32, #tpu.memory_space<vmem>>, vector<16x1xf32>
    %362 = vector.broadcast %361 : vector<16x1xf32> to vector<16x256xf32>
    %363 = arith.mulf %362, %271 : vector<16x256xf32>
    %364 = arith.addf %360, %363 : vector<16x256xf32>
    %c0_230 = arith.constant 0 : index
    %c15_231 = arith.constant 15 : index
    %365 = vector.load %arg6[%c0_230, %c15_231] : memref<16x49xf32, #tpu.memory_space<vmem>>, vector<16x1xf32>
    %366 = vector.broadcast %365 : vector<16x1xf32> to vector<16x256xf32>
    %367 = arith.mulf %366, %281 : vector<16x256xf32>
    %368 = arith.addf %364, %367 : vector<16x256xf32>
    %c0_232 = arith.constant 0 : index
    %c22 = arith.constant 22 : index
    %369 = vector.load %arg6[%c0_232, %c22] : memref<16x49xf32, #tpu.memory_space<vmem>>, vector<16x1xf32>
    %370 = vector.broadcast %369 : vector<16x1xf32> to vector<16x256xf32>
    %371 = arith.mulf %370, %245 : vector<16x256xf32>
    %372 = arith.addf %368, %371 : vector<16x256xf32>
    %c0_233 = arith.constant 0 : index
    %c29 = arith.constant 29 : index
    %373 = vector.load %arg6[%c0_233, %c29] : memref<16x49xf32, #tpu.memory_space<vmem>>, vector<16x1xf32>
    %374 = vector.broadcast %373 : vector<16x1xf32> to vector<16x256xf32>
    %375 = arith.mulf %374, %291 : vector<16x256xf32>
    %376 = arith.addf %372, %375 : vector<16x256xf32>
    %c0_234 = arith.constant 0 : index
    %c36 = arith.constant 36 : index
    %377 = vector.load %arg6[%c0_234, %c36] : memref<16x49xf32, #tpu.memory_space<vmem>>, vector<16x1xf32>
    %378 = vector.broadcast %377 : vector<16x1xf32> to vector<16x256xf32>
    %379 = arith.mulf %378, %301 : vector<16x256xf32>
    %380 = arith.addf %376, %379 : vector<16x256xf32>
    %c0_235 = arith.constant 0 : index
    %c43 = arith.constant 43 : index
    %381 = vector.load %arg6[%c0_235, %c43] : memref<16x49xf32, #tpu.memory_space<vmem>>, vector<16x1xf32>
    %382 = vector.broadcast %381 : vector<16x1xf32> to vector<16x256xf32>
    %383 = arith.mulf %382, %311 : vector<16x256xf32>
    %384 = arith.addf %380, %383 : vector<16x256xf32>
    %385 = vector.extract_strided_slice %384 {offsets = [0, 0], sizes = [8, 256], strides = [1, 1]} : vector<16x256xf32> to vector<8x256xf32>
    %386 = vector.extract_strided_slice %384 {offsets = [8, 0], sizes = [8, 256], strides = [1, 1]} : vector<16x256xf32> to vector<8x256xf32>
    %387 = arith.addf %385, %386 : vector<8x256xf32>
    %c2_i32_236 = arith.constant 2 : i32
    %388 = tpu.dynamic_rotate %387 by %c2_i32_236 dim 1 : vector<8x256xf32>, i32 -> vector<8x256xf32>
    %c-2_i32_237 = arith.constant -2 : i32
    %389 = vector.broadcast %c-2_i32_237 : i32 to vector<8x256xi32>
    %390 = arith.addi %251, %389 : vector<8x256xi32>
    %c0_i32_238 = arith.constant 0 : i32
    %391 = vector.broadcast %c0_i32_238 : i32 to vector<8x256xi32>
    %392 = arith.cmpi sge, %390, %391 : vector<8x256xi32>
    %c16_i32_239 = arith.constant 16 : i32
    %393 = vector.broadcast %c16_i32_239 : i32 to vector<8x256xi32>
    %394 = arith.cmpi slt, %390, %393 : vector<8x256xi32>
    %395 = arith.andi %392, %394 : vector<8x256xi1>
    %cst_240 = arith.constant 0.000000e+00 : f32
    %396 = vector.broadcast %cst_240 : f32 to vector<8x256xf32>
    %397 = arith.select %395, %388, %396 : vector<8x256xi1>, vector<8x256xf32>
    %398 = arith.addf %355, %397 : vector<8x256xf32>
    %cst_241 = arith.constant 0.000000e+00 : f32
    %399 = vector.broadcast %cst_241 : f32 to vector<16x256xf32>
    %c0_242 = arith.constant 0 : index
    %c2_243 = arith.constant 2 : index
    %400 = vector.load %arg6[%c0_242, %c2_243] : memref<16x49xf32, #tpu.memory_space<vmem>>, vector<16x1xf32>
    %401 = vector.broadcast %400 : vector<16x1xf32> to vector<16x256xf32>
    %402 = arith.mulf %401, %261 : vector<16x256xf32>
    %403 = arith.addf %399, %402 : vector<16x256xf32>
    %c0_244 = arith.constant 0 : index
    %c9_245 = arith.constant 9 : index
    %404 = vector.load %arg6[%c0_244, %c9_245] : memref<16x49xf32, #tpu.memory_space<vmem>>, vector<16x1xf32>
    %405 = vector.broadcast %404 : vector<16x1xf32> to vector<16x256xf32>
    %406 = arith.mulf %405, %271 : vector<16x256xf32>
    %407 = arith.addf %403, %406 : vector<16x256xf32>
    %c0_246 = arith.constant 0 : index
    %c16 = arith.constant 16 : index
    %408 = vector.load %arg6[%c0_246, %c16] : memref<16x49xf32, #tpu.memory_space<vmem>>, vector<16x1xf32>
    %409 = vector.broadcast %408 : vector<16x1xf32> to vector<16x256xf32>
    %410 = arith.mulf %409, %281 : vector<16x256xf32>
    %411 = arith.addf %407, %410 : vector<16x256xf32>
    %c0_247 = arith.constant 0 : index
    %c23 = arith.constant 23 : index
    %412 = vector.load %arg6[%c0_247, %c23] : memref<16x49xf32, #tpu.memory_space<vmem>>, vector<16x1xf32>
    %413 = vector.broadcast %412 : vector<16x1xf32> to vector<16x256xf32>
    %414 = arith.mulf %413, %245 : vector<16x256xf32>
    %415 = arith.addf %411, %414 : vector<16x256xf32>
    %c0_248 = arith.constant 0 : index
    %c30 = arith.constant 30 : index
    %416 = vector.load %arg6[%c0_248, %c30] : memref<16x49xf32, #tpu.memory_space<vmem>>, vector<16x1xf32>
    %417 = vector.broadcast %416 : vector<16x1xf32> to vector<16x256xf32>
    %418 = arith.mulf %417, %291 : vector<16x256xf32>
    %419 = arith.addf %415, %418 : vector<16x256xf32>
    %c0_249 = arith.constant 0 : index
    %c37 = arith.constant 37 : index
    %420 = vector.load %arg6[%c0_249, %c37] : memref<16x49xf32, #tpu.memory_space<vmem>>, vector<16x1xf32>
    %421 = vector.broadcast %420 : vector<16x1xf32> to vector<16x256xf32>
    %422 = arith.mulf %421, %301 : vector<16x256xf32>
    %423 = arith.addf %419, %422 : vector<16x256xf32>
    %c0_250 = arith.constant 0 : index
    %c44 = arith.constant 44 : index
    %424 = vector.load %arg6[%c0_250, %c44] : memref<16x49xf32, #tpu.memory_space<vmem>>, vector<16x1xf32>
    %425 = vector.broadcast %424 : vector<16x1xf32> to vector<16x256xf32>
    %426 = arith.mulf %425, %311 : vector<16x256xf32>
    %427 = arith.addf %423, %426 : vector<16x256xf32>
    %428 = vector.extract_strided_slice %427 {offsets = [0, 0], sizes = [8, 256], strides = [1, 1]} : vector<16x256xf32> to vector<8x256xf32>
    %429 = vector.extract_strided_slice %427 {offsets = [8, 0], sizes = [8, 256], strides = [1, 1]} : vector<16x256xf32> to vector<8x256xf32>
    %430 = arith.addf %428, %429 : vector<8x256xf32>
    %c1_i32_251 = arith.constant 1 : i32
    %431 = tpu.dynamic_rotate %430 by %c1_i32_251 dim 1 : vector<8x256xf32>, i32 -> vector<8x256xf32>
    %c-1_i32_252 = arith.constant -1 : i32
    %432 = vector.broadcast %c-1_i32_252 : i32 to vector<8x256xi32>
    %433 = arith.addi %251, %432 : vector<8x256xi32>
    %c0_i32_253 = arith.constant 0 : i32
    %434 = vector.broadcast %c0_i32_253 : i32 to vector<8x256xi32>
    %435 = arith.cmpi sge, %433, %434 : vector<8x256xi32>
    %c16_i32_254 = arith.constant 16 : i32
    %436 = vector.broadcast %c16_i32_254 : i32 to vector<8x256xi32>
    %437 = arith.cmpi slt, %433, %436 : vector<8x256xi32>
    %438 = arith.andi %435, %437 : vector<8x256xi1>
    %cst_255 = arith.constant 0.000000e+00 : f32
    %439 = vector.broadcast %cst_255 : f32 to vector<8x256xf32>
    %440 = arith.select %438, %431, %439 : vector<8x256xi1>, vector<8x256xf32>
    %441 = arith.addf %398, %440 : vector<8x256xf32>
    %cst_256 = arith.constant 0.000000e+00 : f32
    %442 = vector.broadcast %cst_256 : f32 to vector<16x256xf32>
    %c0_257 = arith.constant 0 : index
    %c3_258 = arith.constant 3 : index
    %443 = vector.load %arg6[%c0_257, %c3_258] : memref<16x49xf32, #tpu.memory_space<vmem>>, vector<16x1xf32>
    %444 = vector.broadcast %443 : vector<16x1xf32> to vector<16x256xf32>
    %445 = arith.mulf %444, %261 : vector<16x256xf32>
    %446 = arith.addf %442, %445 : vector<16x256xf32>
    %c0_259 = arith.constant 0 : index
    %c10_260 = arith.constant 10 : index
    %447 = vector.load %arg6[%c0_259, %c10_260] : memref<16x49xf32, #tpu.memory_space<vmem>>, vector<16x1xf32>
    %448 = vector.broadcast %447 : vector<16x1xf32> to vector<16x256xf32>
    %449 = arith.mulf %448, %271 : vector<16x256xf32>
    %450 = arith.addf %446, %449 : vector<16x256xf32>
    %c0_261 = arith.constant 0 : index
    %c17 = arith.constant 17 : index
    %451 = vector.load %arg6[%c0_261, %c17] : memref<16x49xf32, #tpu.memory_space<vmem>>, vector<16x1xf32>
    %452 = vector.broadcast %451 : vector<16x1xf32> to vector<16x256xf32>
    %453 = arith.mulf %452, %281 : vector<16x256xf32>
    %454 = arith.addf %450, %453 : vector<16x256xf32>
    %c0_262 = arith.constant 0 : index
    %c24 = arith.constant 24 : index
    %455 = vector.load %arg6[%c0_262, %c24] : memref<16x49xf32, #tpu.memory_space<vmem>>, vector<16x1xf32>
    %456 = vector.broadcast %455 : vector<16x1xf32> to vector<16x256xf32>
    %457 = arith.mulf %456, %245 : vector<16x256xf32>
    %458 = arith.addf %454, %457 : vector<16x256xf32>
    %c0_263 = arith.constant 0 : index
    %c31 = arith.constant 31 : index
    %459 = vector.load %arg6[%c0_263, %c31] : memref<16x49xf32, #tpu.memory_space<vmem>>, vector<16x1xf32>
    %460 = vector.broadcast %459 : vector<16x1xf32> to vector<16x256xf32>
    %461 = arith.mulf %460, %291 : vector<16x256xf32>
    %462 = arith.addf %458, %461 : vector<16x256xf32>
    %c0_264 = arith.constant 0 : index
    %c38 = arith.constant 38 : index
    %463 = vector.load %arg6[%c0_264, %c38] : memref<16x49xf32, #tpu.memory_space<vmem>>, vector<16x1xf32>
    %464 = vector.broadcast %463 : vector<16x1xf32> to vector<16x256xf32>
    %465 = arith.mulf %464, %301 : vector<16x256xf32>
    %466 = arith.addf %462, %465 : vector<16x256xf32>
    %c0_265 = arith.constant 0 : index
    %c45 = arith.constant 45 : index
    %467 = vector.load %arg6[%c0_265, %c45] : memref<16x49xf32, #tpu.memory_space<vmem>>, vector<16x1xf32>
    %468 = vector.broadcast %467 : vector<16x1xf32> to vector<16x256xf32>
    %469 = arith.mulf %468, %311 : vector<16x256xf32>
    %470 = arith.addf %466, %469 : vector<16x256xf32>
    %471 = vector.extract_strided_slice %470 {offsets = [0, 0], sizes = [8, 256], strides = [1, 1]} : vector<16x256xf32> to vector<8x256xf32>
    %472 = vector.extract_strided_slice %470 {offsets = [8, 0], sizes = [8, 256], strides = [1, 1]} : vector<16x256xf32> to vector<8x256xf32>
    %473 = arith.addf %471, %472 : vector<8x256xf32>
    %474 = arith.addf %441, %473 : vector<8x256xf32>
    %cst_266 = arith.constant 0.000000e+00 : f32
    %475 = vector.broadcast %cst_266 : f32 to vector<16x256xf32>
    %c0_267 = arith.constant 0 : index
    %c4_268 = arith.constant 4 : index
    %476 = vector.load %arg6[%c0_267, %c4_268] : memref<16x49xf32, #tpu.memory_space<vmem>>, vector<16x1xf32>
    %477 = vector.broadcast %476 : vector<16x1xf32> to vector<16x256xf32>
    %478 = arith.mulf %477, %261 : vector<16x256xf32>
    %479 = arith.addf %475, %478 : vector<16x256xf32>
    %c0_269 = arith.constant 0 : index
    %c11_270 = arith.constant 11 : index
    %480 = vector.load %arg6[%c0_269, %c11_270] : memref<16x49xf32, #tpu.memory_space<vmem>>, vector<16x1xf32>
    %481 = vector.broadcast %480 : vector<16x1xf32> to vector<16x256xf32>
    %482 = arith.mulf %481, %271 : vector<16x256xf32>
    %483 = arith.addf %479, %482 : vector<16x256xf32>
    %c0_271 = arith.constant 0 : index
    %c18 = arith.constant 18 : index
    %484 = vector.load %arg6[%c0_271, %c18] : memref<16x49xf32, #tpu.memory_space<vmem>>, vector<16x1xf32>
    %485 = vector.broadcast %484 : vector<16x1xf32> to vector<16x256xf32>
    %486 = arith.mulf %485, %281 : vector<16x256xf32>
    %487 = arith.addf %483, %486 : vector<16x256xf32>
    %c0_272 = arith.constant 0 : index
    %c25 = arith.constant 25 : index
    %488 = vector.load %arg6[%c0_272, %c25] : memref<16x49xf32, #tpu.memory_space<vmem>>, vector<16x1xf32>
    %489 = vector.broadcast %488 : vector<16x1xf32> to vector<16x256xf32>
    %490 = arith.mulf %489, %245 : vector<16x256xf32>
    %491 = arith.addf %487, %490 : vector<16x256xf32>
    %c0_273 = arith.constant 0 : index
    %c32 = arith.constant 32 : index
    %492 = vector.load %arg6[%c0_273, %c32] : memref<16x49xf32, #tpu.memory_space<vmem>>, vector<16x1xf32>
    %493 = vector.broadcast %492 : vector<16x1xf32> to vector<16x256xf32>
    %494 = arith.mulf %493, %291 : vector<16x256xf32>
    %495 = arith.addf %491, %494 : vector<16x256xf32>
    %c0_274 = arith.constant 0 : index
    %c39 = arith.constant 39 : index
    %496 = vector.load %arg6[%c0_274, %c39] : memref<16x49xf32, #tpu.memory_space<vmem>>, vector<16x1xf32>
    %497 = vector.broadcast %496 : vector<16x1xf32> to vector<16x256xf32>
    %498 = arith.mulf %497, %301 : vector<16x256xf32>
    %499 = arith.addf %495, %498 : vector<16x256xf32>
    %c0_275 = arith.constant 0 : index
    %c46 = arith.constant 46 : index
    %500 = vector.load %arg6[%c0_275, %c46] : memref<16x49xf32, #tpu.memory_space<vmem>>, vector<16x1xf32>
    %501 = vector.broadcast %500 : vector<16x1xf32> to vector<16x256xf32>
    %502 = arith.mulf %501, %311 : vector<16x256xf32>
    %503 = arith.addf %499, %502 : vector<16x256xf32>
    %504 = vector.extract_strided_slice %503 {offsets = [0, 0], sizes = [8, 256], strides = [1, 1]} : vector<16x256xf32> to vector<8x256xf32>
    %505 = vector.extract_strided_slice %503 {offsets = [8, 0], sizes = [8, 256], strides = [1, 1]} : vector<16x256xf32> to vector<8x256xf32>
    %506 = arith.addf %504, %505 : vector<8x256xf32>
    %c255_i32 = arith.constant 255 : i32
    %507 = tpu.dynamic_rotate %506 by %c255_i32 dim 1 : vector<8x256xf32>, i32 -> vector<8x256xf32>
    %c1_i32_276 = arith.constant 1 : i32
    %508 = vector.broadcast %c1_i32_276 : i32 to vector<8x256xi32>
    %509 = arith.addi %251, %508 : vector<8x256xi32>
    %c0_i32_277 = arith.constant 0 : i32
    %510 = vector.broadcast %c0_i32_277 : i32 to vector<8x256xi32>
    %511 = arith.cmpi sge, %509, %510 : vector<8x256xi32>
    %c16_i32_278 = arith.constant 16 : i32
    %512 = vector.broadcast %c16_i32_278 : i32 to vector<8x256xi32>
    %513 = arith.cmpi slt, %509, %512 : vector<8x256xi32>
    %514 = arith.andi %511, %513 : vector<8x256xi1>
    %cst_279 = arith.constant 0.000000e+00 : f32
    %515 = vector.broadcast %cst_279 : f32 to vector<8x256xf32>
    %516 = arith.select %514, %507, %515 : vector<8x256xi1>, vector<8x256xf32>
    %517 = arith.addf %474, %516 : vector<8x256xf32>
    %cst_280 = arith.constant 0.000000e+00 : f32
    %518 = vector.broadcast %cst_280 : f32 to vector<16x256xf32>
    %c0_281 = arith.constant 0 : index
    %c5_282 = arith.constant 5 : index
    %519 = vector.load %arg6[%c0_281, %c5_282] : memref<16x49xf32, #tpu.memory_space<vmem>>, vector<16x1xf32>
    %520 = vector.broadcast %519 : vector<16x1xf32> to vector<16x256xf32>
    %521 = arith.mulf %520, %261 : vector<16x256xf32>
    %522 = arith.addf %518, %521 : vector<16x256xf32>
    %c0_283 = arith.constant 0 : index
    %c12_284 = arith.constant 12 : index
    %523 = vector.load %arg6[%c0_283, %c12_284] : memref<16x49xf32, #tpu.memory_space<vmem>>, vector<16x1xf32>
    %524 = vector.broadcast %523 : vector<16x1xf32> to vector<16x256xf32>
    %525 = arith.mulf %524, %271 : vector<16x256xf32>
    %526 = arith.addf %522, %525 : vector<16x256xf32>
    %c0_285 = arith.constant 0 : index
    %c19 = arith.constant 19 : index
    %527 = vector.load %arg6[%c0_285, %c19] : memref<16x49xf32, #tpu.memory_space<vmem>>, vector<16x1xf32>
    %528 = vector.broadcast %527 : vector<16x1xf32> to vector<16x256xf32>
    %529 = arith.mulf %528, %281 : vector<16x256xf32>
    %530 = arith.addf %526, %529 : vector<16x256xf32>
    %c0_286 = arith.constant 0 : index
    %c26 = arith.constant 26 : index
    %531 = vector.load %arg6[%c0_286, %c26] : memref<16x49xf32, #tpu.memory_space<vmem>>, vector<16x1xf32>
    %532 = vector.broadcast %531 : vector<16x1xf32> to vector<16x256xf32>
    %533 = arith.mulf %532, %245 : vector<16x256xf32>
    %534 = arith.addf %530, %533 : vector<16x256xf32>
    %c0_287 = arith.constant 0 : index
    %c33 = arith.constant 33 : index
    %535 = vector.load %arg6[%c0_287, %c33] : memref<16x49xf32, #tpu.memory_space<vmem>>, vector<16x1xf32>
    %536 = vector.broadcast %535 : vector<16x1xf32> to vector<16x256xf32>
    %537 = arith.mulf %536, %291 : vector<16x256xf32>
    %538 = arith.addf %534, %537 : vector<16x256xf32>
    %c0_288 = arith.constant 0 : index
    %c40 = arith.constant 40 : index
    %539 = vector.load %arg6[%c0_288, %c40] : memref<16x49xf32, #tpu.memory_space<vmem>>, vector<16x1xf32>
    %540 = vector.broadcast %539 : vector<16x1xf32> to vector<16x256xf32>
    %541 = arith.mulf %540, %301 : vector<16x256xf32>
    %542 = arith.addf %538, %541 : vector<16x256xf32>
    %c0_289 = arith.constant 0 : index
    %c47 = arith.constant 47 : index
    %543 = vector.load %arg6[%c0_289, %c47] : memref<16x49xf32, #tpu.memory_space<vmem>>, vector<16x1xf32>
    %544 = vector.broadcast %543 : vector<16x1xf32> to vector<16x256xf32>
    %545 = arith.mulf %544, %311 : vector<16x256xf32>
    %546 = arith.addf %542, %545 : vector<16x256xf32>
    %547 = vector.extract_strided_slice %546 {offsets = [0, 0], sizes = [8, 256], strides = [1, 1]} : vector<16x256xf32> to vector<8x256xf32>
    %548 = vector.extract_strided_slice %546 {offsets = [8, 0], sizes = [8, 256], strides = [1, 1]} : vector<16x256xf32> to vector<8x256xf32>
    %549 = arith.addf %547, %548 : vector<8x256xf32>
    %c254_i32 = arith.constant 254 : i32
    %550 = tpu.dynamic_rotate %549 by %c254_i32 dim 1 : vector<8x256xf32>, i32 -> vector<8x256xf32>
    %c2_i32_290 = arith.constant 2 : i32
    %551 = vector.broadcast %c2_i32_290 : i32 to vector<8x256xi32>
    %552 = arith.addi %251, %551 : vector<8x256xi32>
    %c0_i32_291 = arith.constant 0 : i32
    %553 = vector.broadcast %c0_i32_291 : i32 to vector<8x256xi32>
    %554 = arith.cmpi sge, %552, %553 : vector<8x256xi32>
    %c16_i32_292 = arith.constant 16 : i32
    %555 = vector.broadcast %c16_i32_292 : i32 to vector<8x256xi32>
    %556 = arith.cmpi slt, %552, %555 : vector<8x256xi32>
    %557 = arith.andi %554, %556 : vector<8x256xi1>
    %cst_293 = arith.constant 0.000000e+00 : f32
    %558 = vector.broadcast %cst_293 : f32 to vector<8x256xf32>
    %559 = arith.select %557, %550, %558 : vector<8x256xi1>, vector<8x256xf32>
    %560 = arith.addf %517, %559 : vector<8x256xf32>
    %cst_294 = arith.constant 0.000000e+00 : f32
    %561 = vector.broadcast %cst_294 : f32 to vector<16x256xf32>
    %c0_295 = arith.constant 0 : index
    %c6_296 = arith.constant 6 : index
    %562 = vector.load %arg6[%c0_295, %c6_296] : memref<16x49xf32, #tpu.memory_space<vmem>>, vector<16x1xf32>
    %563 = vector.broadcast %562 : vector<16x1xf32> to vector<16x256xf32>
    %564 = arith.mulf %563, %261 : vector<16x256xf32>
    %565 = arith.addf %561, %564 : vector<16x256xf32>
    %c0_297 = arith.constant 0 : index
    %c13_298 = arith.constant 13 : index
    %566 = vector.load %arg6[%c0_297, %c13_298] : memref<16x49xf32, #tpu.memory_space<vmem>>, vector<16x1xf32>
    %567 = vector.broadcast %566 : vector<16x1xf32> to vector<16x256xf32>
    %568 = arith.mulf %567, %271 : vector<16x256xf32>
    %569 = arith.addf %565, %568 : vector<16x256xf32>
    %c0_299 = arith.constant 0 : index
    %c20 = arith.constant 20 : index
    %570 = vector.load %arg6[%c0_299, %c20] : memref<16x49xf32, #tpu.memory_space<vmem>>, vector<16x1xf32>
    %571 = vector.broadcast %570 : vector<16x1xf32> to vector<16x256xf32>
    %572 = arith.mulf %571, %281 : vector<16x256xf32>
    %573 = arith.addf %569, %572 : vector<16x256xf32>
    %c0_300 = arith.constant 0 : index
    %c27 = arith.constant 27 : index
    %574 = vector.load %arg6[%c0_300, %c27] : memref<16x49xf32, #tpu.memory_space<vmem>>, vector<16x1xf32>
    %575 = vector.broadcast %574 : vector<16x1xf32> to vector<16x256xf32>
    %576 = arith.mulf %575, %245 : vector<16x256xf32>
    %577 = arith.addf %573, %576 : vector<16x256xf32>
    %c0_301 = arith.constant 0 : index
    %c34 = arith.constant 34 : index
    %578 = vector.load %arg6[%c0_301, %c34] : memref<16x49xf32, #tpu.memory_space<vmem>>, vector<16x1xf32>
    %579 = vector.broadcast %578 : vector<16x1xf32> to vector<16x256xf32>
    %580 = arith.mulf %579, %291 : vector<16x256xf32>
    %581 = arith.addf %577, %580 : vector<16x256xf32>
    %c0_302 = arith.constant 0 : index
    %c41 = arith.constant 41 : index
    %582 = vector.load %arg6[%c0_302, %c41] : memref<16x49xf32, #tpu.memory_space<vmem>>, vector<16x1xf32>
    %583 = vector.broadcast %582 : vector<16x1xf32> to vector<16x256xf32>
    %584 = arith.mulf %583, %301 : vector<16x256xf32>
    %585 = arith.addf %581, %584 : vector<16x256xf32>
    %c0_303 = arith.constant 0 : index
    %c48 = arith.constant 48 : index
    %586 = vector.load %arg6[%c0_303, %c48] : memref<16x49xf32, #tpu.memory_space<vmem>>, vector<16x1xf32>
    %587 = vector.broadcast %586 : vector<16x1xf32> to vector<16x256xf32>
    %588 = arith.mulf %587, %311 : vector<16x256xf32>
    %589 = arith.addf %585, %588 : vector<16x256xf32>
    %590 = vector.extract_strided_slice %589 {offsets = [0, 0], sizes = [8, 256], strides = [1, 1]} : vector<16x256xf32> to vector<8x256xf32>
    %591 = vector.extract_strided_slice %589 {offsets = [8, 0], sizes = [8, 256], strides = [1, 1]} : vector<16x256xf32> to vector<8x256xf32>
    %592 = arith.addf %590, %591 : vector<8x256xf32>
    %c253_i32 = arith.constant 253 : i32
    %593 = tpu.dynamic_rotate %592 by %c253_i32 dim 1 : vector<8x256xf32>, i32 -> vector<8x256xf32>
    %c3_i32_304 = arith.constant 3 : i32
    %594 = vector.broadcast %c3_i32_304 : i32 to vector<8x256xi32>
    %595 = arith.addi %251, %594 : vector<8x256xi32>
    %c0_i32_305 = arith.constant 0 : i32
    %596 = vector.broadcast %c0_i32_305 : i32 to vector<8x256xi32>
    %597 = arith.cmpi sge, %595, %596 : vector<8x256xi32>
    %c16_i32_306 = arith.constant 16 : i32
    %598 = vector.broadcast %c16_i32_306 : i32 to vector<8x256xi32>
    %599 = arith.cmpi slt, %595, %598 : vector<8x256xi32>
    %600 = arith.andi %597, %599 : vector<8x256xi1>
    %cst_307 = arith.constant 0.000000e+00 : f32
    %601 = vector.broadcast %cst_307 : f32 to vector<8x256xf32>
    %602 = arith.select %600, %593, %601 : vector<8x256xi1>, vector<8x256xf32>
    %603 = arith.addf %560, %602 : vector<8x256xf32>
    %604 = arith.negf %603 : vector<8x256xf32>
    %605 = math.exp %604 : vector<8x256xf32>
    %cst_308 = arith.constant 1.000000e+00 : f32
    %606 = vector.broadcast %cst_308 : f32 to vector<8x256xf32>
    %607 = arith.addf %606, %605 : vector<8x256xf32>
    %608 = arith.divf %606, %607 : vector<8x256xf32>
    %609 = vector.extract_strided_slice %608 {offsets = [0, 0], sizes = [1, 256], strides = [1, 1]} : vector<8x256xf32> to vector<1x256xf32>
    %c0_309 = arith.constant 0 : index
    %c0_310 = arith.constant 0 : index
    %c0_311 = arith.constant 0 : index
    %610 = vector.load %arg7[%c0_309, %c0_310, %c0_311] : memref<8x32x256xf32, #tpu.memory_space<vmem>>, vector<1x32x256xf32>
    %611 = vector.shape_cast %610 : vector<1x32x256xf32> to vector<32x256xf32>
    %cst_312 = arith.constant 1.000000e+00 : f32
    %612 = vector.broadcast %cst_312 : f32 to vector<1x256xf32>
    %613 = arith.addf %612, %609 : vector<1x256xf32>
    %614 = vector.broadcast %613 : vector<1x256xf32> to vector<32x256xf32>
    %615 = arith.mulf %611, %614 : vector<32x256xf32>
    %c0_313 = arith.constant 0 : index
    %c0_314 = arith.constant 0 : index
    %c0_315 = arith.constant 0 : index
    %616 = vector.load %arg7[%c0_313, %c0_314, %c0_315] : memref<8x32x256xf32, #tpu.memory_space<vmem>>, vector<1x32x256xf32>
    %617 = vector.shape_cast %616 : vector<1x32x256xf32> to vector<32x256xf32>
    %618 = vector.shape_cast %615 : vector<32x256xf32> to vector<1x32x256xf32>
    tpu.vector_store %arg7[%c0_313, %c0_314, %c0_315], %618 {strides = array<i32>} : memref<8x32x256xf32, #tpu.memory_space<vmem>>, vector<1x32x256xf32>,
    %619 = vector.extract_strided_slice %608 {offsets = [1, 0], sizes = [1, 256], strides = [1, 1]} : vector<8x256xf32> to vector<1x256xf32>
    %c1_316 = arith.constant 1 : index
    %c0_317 = arith.constant 0 : index
    %c0_318 = arith.constant 0 : index
    %620 = vector.load %arg7[%c1_316, %c0_317, %c0_318] : memref<8x32x256xf32, #tpu.memory_space<vmem>>, vector<1x32x256xf32>
    %621 = vector.shape_cast %620 : vector<1x32x256xf32> to vector<32x256xf32>
    %cst_319 = arith.constant 1.000000e+00 : f32
    %622 = vector.broadcast %cst_319 : f32 to vector<1x256xf32>
    %623 = arith.addf %622, %619 : vector<1x256xf32>
    %624 = vector.broadcast %623 : vector<1x256xf32> to vector<32x256xf32>
    %625 = arith.mulf %621, %624 : vector<32x256xf32>
    %c1_320 = arith.constant 1 : index
    %c0_321 = arith.constant 0 : index
    %c0_322 = arith.constant 0 : index
    %626 = vector.load %arg7[%c1_320, %c0_321, %c0_322] : memref<8x32x256xf32, #tpu.memory_space<vmem>>, vector<1x32x256xf32>
    %627 = vector.shape_cast %626 : vector<1x32x256xf32> to vector<32x256xf32>
    %628 = vector.shape_cast %625 : vector<32x256xf32> to vector<1x32x256xf32>
    tpu.vector_store %arg7[%c1_320, %c0_321, %c0_322], %628 {strides = array<i32>} : memref<8x32x256xf32, #tpu.memory_space<vmem>>, vector<1x32x256xf32>,
    %629 = vector.extract_strided_slice %608 {offsets = [2, 0], sizes = [1, 256], strides = [1, 1]} : vector<8x256xf32> to vector<1x256xf32>
    %c2_323 = arith.constant 2 : index
    %c0_324 = arith.constant 0 : index
    %c0_325 = arith.constant 0 : index
    %630 = vector.load %arg7[%c2_323, %c0_324, %c0_325] : memref<8x32x256xf32, #tpu.memory_space<vmem>>, vector<1x32x256xf32>
    %631 = vector.shape_cast %630 : vector<1x32x256xf32> to vector<32x256xf32>
    %cst_326 = arith.constant 1.000000e+00 : f32
    %632 = vector.broadcast %cst_326 : f32 to vector<1x256xf32>
    %633 = arith.addf %632, %629 : vector<1x256xf32>
    %634 = vector.broadcast %633 : vector<1x256xf32> to vector<32x256xf32>
    %635 = arith.mulf %631, %634 : vector<32x256xf32>
    %c2_327 = arith.constant 2 : index
    %c0_328 = arith.constant 0 : index
    %c0_329 = arith.constant 0 : index
    %636 = vector.load %arg7[%c2_327, %c0_328, %c0_329] : memref<8x32x256xf32, #tpu.memory_space<vmem>>, vector<1x32x256xf32>
    %637 = vector.shape_cast %636 : vector<1x32x256xf32> to vector<32x256xf32>
    %638 = vector.shape_cast %635 : vector<32x256xf32> to vector<1x32x256xf32>
    tpu.vector_store %arg7[%c2_327, %c0_328, %c0_329], %638 {strides = array<i32>} : memref<8x32x256xf32, #tpu.memory_space<vmem>>, vector<1x32x256xf32>,
    %639 = vector.extract_strided_slice %608 {offsets = [3, 0], sizes = [1, 256], strides = [1, 1]} : vector<8x256xf32> to vector<1x256xf32>
    %c3_330 = arith.constant 3 : index
    %c0_331 = arith.constant 0 : index
    %c0_332 = arith.constant 0 : index
    %640 = vector.load %arg7[%c3_330, %c0_331, %c0_332] : memref<8x32x256xf32, #tpu.memory_space<vmem>>, vector<1x32x256xf32>
    %641 = vector.shape_cast %640 : vector<1x32x256xf32> to vector<32x256xf32>
    %cst_333 = arith.constant 1.000000e+00 : f32
    %642 = vector.broadcast %cst_333 : f32 to vector<1x256xf32>
    %643 = arith.addf %642, %639 : vector<1x256xf32>
    %644 = vector.broadcast %643 : vector<1x256xf32> to vector<32x256xf32>
    %645 = arith.mulf %641, %644 : vector<32x256xf32>
    %c3_334 = arith.constant 3 : index
    %c0_335 = arith.constant 0 : index
    %c0_336 = arith.constant 0 : index
    %646 = vector.load %arg7[%c3_334, %c0_335, %c0_336] : memref<8x32x256xf32, #tpu.memory_space<vmem>>, vector<1x32x256xf32>
    %647 = vector.shape_cast %646 : vector<1x32x256xf32> to vector<32x256xf32>
    %648 = vector.shape_cast %645 : vector<32x256xf32> to vector<1x32x256xf32>
    tpu.vector_store %arg7[%c3_334, %c0_335, %c0_336], %648 {strides = array<i32>} : memref<8x32x256xf32, #tpu.memory_space<vmem>>, vector<1x32x256xf32>,
    %649 = vector.extract_strided_slice %608 {offsets = [4, 0], sizes = [1, 256], strides = [1, 1]} : vector<8x256xf32> to vector<1x256xf32>
    %c4_337 = arith.constant 4 : index
    %c0_338 = arith.constant 0 : index
    %c0_339 = arith.constant 0 : index
    %650 = vector.load %arg7[%c4_337, %c0_338, %c0_339] : memref<8x32x256xf32, #tpu.memory_space<vmem>>, vector<1x32x256xf32>
    %651 = vector.shape_cast %650 : vector<1x32x256xf32> to vector<32x256xf32>
    %cst_340 = arith.constant 1.000000e+00 : f32
    %652 = vector.broadcast %cst_340 : f32 to vector<1x256xf32>
    %653 = arith.addf %652, %649 : vector<1x256xf32>
    %654 = vector.broadcast %653 : vector<1x256xf32> to vector<32x256xf32>
    %655 = arith.mulf %651, %654 : vector<32x256xf32>
    %c4_341 = arith.constant 4 : index
    %c0_342 = arith.constant 0 : index
    %c0_343 = arith.constant 0 : index
    %656 = vector.load %arg7[%c4_341, %c0_342, %c0_343] : memref<8x32x256xf32, #tpu.memory_space<vmem>>, vector<1x32x256xf32>
    %657 = vector.shape_cast %656 : vector<1x32x256xf32> to vector<32x256xf32>
    %658 = vector.shape_cast %655 : vector<32x256xf32> to vector<1x32x256xf32>
    tpu.vector_store %arg7[%c4_341, %c0_342, %c0_343], %658 {strides = array<i32>} : memref<8x32x256xf32, #tpu.memory_space<vmem>>, vector<1x32x256xf32>,
    %659 = vector.extract_strided_slice %608 {offsets = [5, 0], sizes = [1, 256], strides = [1, 1]} : vector<8x256xf32> to vector<1x256xf32>
    %c5_344 = arith.constant 5 : index
    %c0_345 = arith.constant 0 : index
    %c0_346 = arith.constant 0 : index
    %660 = vector.load %arg7[%c5_344, %c0_345, %c0_346] : memref<8x32x256xf32, #tpu.memory_space<vmem>>, vector<1x32x256xf32>
    %661 = vector.shape_cast %660 : vector<1x32x256xf32> to vector<32x256xf32>
    %cst_347 = arith.constant 1.000000e+00 : f32
    %662 = vector.broadcast %cst_347 : f32 to vector<1x256xf32>
    %663 = arith.addf %662, %659 : vector<1x256xf32>
    %664 = vector.broadcast %663 : vector<1x256xf32> to vector<32x256xf32>
    %665 = arith.mulf %661, %664 : vector<32x256xf32>
    %c5_348 = arith.constant 5 : index
    %c0_349 = arith.constant 0 : index
    %c0_350 = arith.constant 0 : index
    %666 = vector.load %arg7[%c5_348, %c0_349, %c0_350] : memref<8x32x256xf32, #tpu.memory_space<vmem>>, vector<1x32x256xf32>
    %667 = vector.shape_cast %666 : vector<1x32x256xf32> to vector<32x256xf32>
    %668 = vector.shape_cast %665 : vector<32x256xf32> to vector<1x32x256xf32>
    tpu.vector_store %arg7[%c5_348, %c0_349, %c0_350], %668 {strides = array<i32>} : memref<8x32x256xf32, #tpu.memory_space<vmem>>, vector<1x32x256xf32>,
    %669 = vector.extract_strided_slice %608 {offsets = [6, 0], sizes = [1, 256], strides = [1, 1]} : vector<8x256xf32> to vector<1x256xf32>
    %c6_351 = arith.constant 6 : index
    %c0_352 = arith.constant 0 : index
    %c0_353 = arith.constant 0 : index
    %670 = vector.load %arg7[%c6_351, %c0_352, %c0_353] : memref<8x32x256xf32, #tpu.memory_space<vmem>>, vector<1x32x256xf32>
    %671 = vector.shape_cast %670 : vector<1x32x256xf32> to vector<32x256xf32>
    %cst_354 = arith.constant 1.000000e+00 : f32
    %672 = vector.broadcast %cst_354 : f32 to vector<1x256xf32>
    %673 = arith.addf %672, %669 : vector<1x256xf32>
    %674 = vector.broadcast %673 : vector<1x256xf32> to vector<32x256xf32>
    %675 = arith.mulf %671, %674 : vector<32x256xf32>
    %c6_355 = arith.constant 6 : index
    %c0_356 = arith.constant 0 : index
    %c0_357 = arith.constant 0 : index
    %676 = vector.load %arg7[%c6_355, %c0_356, %c0_357] : memref<8x32x256xf32, #tpu.memory_space<vmem>>, vector<1x32x256xf32>
    %677 = vector.shape_cast %676 : vector<1x32x256xf32> to vector<32x256xf32>
    %678 = vector.shape_cast %675 : vector<32x256xf32> to vector<1x32x256xf32>
    tpu.vector_store %arg7[%c6_355, %c0_356, %c0_357], %678 {strides = array<i32>} : memref<8x32x256xf32, #tpu.memory_space<vmem>>, vector<1x32x256xf32>,
    %679 = vector.extract_strided_slice %608 {offsets = [7, 0], sizes = [1, 256], strides = [1, 1]} : vector<8x256xf32> to vector<1x256xf32>
    %c7_358 = arith.constant 7 : index
    %c0_359 = arith.constant 0 : index
    %c0_360 = arith.constant 0 : index
    %680 = vector.load %arg7[%c7_358, %c0_359, %c0_360] : memref<8x32x256xf32, #tpu.memory_space<vmem>>, vector<1x32x256xf32>
    %681 = vector.shape_cast %680 : vector<1x32x256xf32> to vector<32x256xf32>
    %cst_361 = arith.constant 1.000000e+00 : f32
    %682 = vector.broadcast %cst_361 : f32 to vector<1x256xf32>
    %683 = arith.addf %682, %679 : vector<1x256xf32>
    %684 = vector.broadcast %683 : vector<1x256xf32> to vector<32x256xf32>
    %685 = arith.mulf %681, %684 : vector<32x256xf32>
    %c7_362 = arith.constant 7 : index
    %c0_363 = arith.constant 0 : index
    %c0_364 = arith.constant 0 : index
    %686 = vector.load %arg7[%c7_362, %c0_363, %c0_364] : memref<8x32x256xf32, #tpu.memory_space<vmem>>, vector<1x32x256xf32>
    %687 = vector.shape_cast %686 : vector<1x32x256xf32> to vector<32x256xf32>
    %688 = vector.shape_cast %685 : vector<32x256xf32> to vector<1x32x256xf32>
    tpu.vector_store %arg7[%c7_362, %c0_363, %c0_364], %688 {strides = array<i32>} : memref<8x32x256xf32, #tpu.memory_space<vmem>>, vector<1x32x256xf32>,
    return
  }
  func.func @transform_0(%arg0: i32) -> (i32, i32, i32) {
    %c0_i32 = arith.constant 0 : i32
    %c0_i32_0 = arith.constant 0 : i32
    %c0_i32_1 = arith.constant 0 : i32
    return %arg0, %c0_i32, %c0_i32_0 : i32, i32, i32
  }
  func.func @transform_1(%arg0: i32) -> (i32, i32) {
    %c0_i32 = arith.constant 0 : i32
    %c0_i32_0 = arith.constant 0 : i32
    %c0_i32_1 = arith.constant 0 : i32
    return %c0_i32, %c0_i32_0 : i32, i32
  }
  func.func @transform_2(%arg0: i32) -> (i32, i32) {
    %c0_i32 = arith.constant 0 : i32
    %c0_i32_0 = arith.constant 0 : i32
    %c0_i32_1 = arith.constant 0 : i32
    return %c0_i32, %c0_i32_0 : i32, i32
  }
  func.func @transform_3(%arg0: i32) -> (i32, i32) {
    %c0_i32 = arith.constant 0 : i32
    %c0_i32_0 = arith.constant 0 : i32
    %c0_i32_1 = arith.constant 0 : i32
    return %c0_i32, %c0_i32_0 : i32, i32
  }
  func.func @transform_4(%arg0: i32) -> (i32, i32) {
    %c0_i32 = arith.constant 0 : i32
    %c0_i32_0 = arith.constant 0 : i32
    %c0_i32_1 = arith.constant 0 : i32
    return %c0_i32, %c0_i32_0 : i32, i32
  }
  func.func @transform_5(%arg0: i32) -> (i32, i32) {
    %c0_i32 = arith.constant 0 : i32
    %c0_i32_0 = arith.constant 0 : i32
    %c0_i32_1 = arith.constant 0 : i32
    return %c0_i32, %c0_i32_0 : i32, i32
  }
  func.func @transform_6(%arg0: i32) -> (i32, i32, i32) {
    %c0_i32 = arith.constant 0 : i32
    %c0_i32_0 = arith.constant 0 : i32
    %c0_i32_1 = arith.constant 0 : i32
    return %arg0, %c0_i32, %c0_i32_0 : i32, i32, i32
  }
}

</mosaic_0001>

<bundles_post_ra>
// kernel: tpu_custom_call.1
= control target key start
LH: loop header
LB: loop body
LE: loop exit
PB: predicated region body
PF: predicated region fallthrough
CT: control target
= control target key end

     0   :  { %11 = vsyncpa [#allocation5], 0  ;;  %s6527_s0 = inlined_call_operand.hbm [shape: f32[16,32,256], index: 0, kind: input, shape index: {}]   ;;  %s6528_s1 = inlined_call_operand.vmem [shape: f32[2,32], index: 1, kind: input, shape index: {}]   ;;  %s6529_s2 = inlined_call_operand.vmem [shape: f32[2,1], index: 2, kind: input, shape index: {}]   ;;  %s6530_s3 = inlined_call_operand.vmem [shape: f32[32,2], index: 3, kind: input, shape index: {}]   ;;  %s6531_s4 = inlined_call_operand.vmem [shape: f32[32,1], index: 4, kind: input, shape index: {}]   ;;  %s6532_s5 = inlined_call_operand.vmem [shape: f32[16,49], index: 5, kind: input, shape index: {}]   ;;  %s6533_s6 = inlined_call_operand.hbm [shape: f32[16,32,256], index: 6, kind: output, shape index: {}]  }
   0x1   :  { %13 = vsyncpa [#allocation5 + $0x1], 0 }
   0x2   :  { %14 = vsyncpa [#allocation6], 0 }
   0x3   :  { %16 = vsyncpa [#allocation6 + $0x1], 0  ;;  %s4137_s21 = smov 0   ;;  %s4139_s22 = smov 0  }
   0x4   :  { %s4141_s23 = smov 0   ;;  %s4143_s24 = smov 0  }
   0x5 LB: > { %s4158_s25 = sadd.s32 4294967295, %s4029_s24   ;;  %s3325_s26 = sadd.s32 4294967294, %s4029_s24   ;;  %s4029_s24 = sphi %s4143_s24, %s7241_s24   ;;  %s4025_s23 = sphi %s4141_s23, %s7240_s23   ;;  %s4021_s22 = sphi %s4139_s22, %s7239_s22   ;;  %s4017_s21 = sphi %s4137_s21, %s7238_s21  }
   0x6   : > { %s4162_s27 = sadd.s32 1, %s4029_s24   ;;  %s29_s28 = sadd.s32 1, %s4025_s23 }
   0x7   : > { %s26_s29 = ssub.s32 %s4029_s24, %s4162_s27  ;;  %p36_p0 = scmp.ne.s32.totalorder %s4025_s23, %s4021_s22 }
   0x8   : > { %p27_p1 = scmp.eq.s32.totalorder %s26_s29, 0  ;;  %p37_p2 = scmp.eq.s32.totalorder %s4029_s24, 0 }
   0x9   : > { %p42_p3 = scmp.ne.s32.totalorder %s4021_s22, %s4017_s21  ;;  %p43_p4 = scmp.eq.s32.totalorder %s4158_s25, 0 }
   0xa   : > { %s4174_s30 = scalar_select %p27_p1, %s4025_s23, %s29_s28  }
   0xb   : > { %p4176_p5 = por %p37_p2, %p36_p0  ;;  %p4180_p6 = por %p43_p4, %p42_p3 }
   0xc   : > { %p171_p7 = scmp.eq.s32.totalorder %s4158_s25, 1  ;;  %p177_p8 = scmp.eq.s32.totalorder %s3325_s26, 1 }
   0xd   : > { %p3684_p10 = scmp.lt.s32.totalorder %s4029_s24, 2  ;;  %s212_s11 = sand.u32 1, %s4025_s23  }
   0xe   : > { %p4187_p11 = por %p171_p7, %p36_p0  ;;  %p4191_p12 = por %p177_p8, %p42_p3 }
   0xf   : > { %s3634_s12 = sshll.u32 %s4029_s24, 13  ;;  %s3328_s13 = sshll.u32 %s212_s11, 9 }
  0x10   : > { %s6737_s9 = scalar_select %p4187_p11, 1, 0 }
  0x11   : > { %s6738_s10 = scalar_select %p4191_p12, 1, 0 }
  0x12   : > { %s4200_s16 = scalar_lea.hbm %s6527_s0, %s3634_s12  ;;  %s216_s17 = scalar_lea.vmem [#allocation4], %s3328_s13 }
  0x13   : > { %s224_s18 = sshll.u32 %s216_s17, 4  ;;  %p4204_p13 = pnand %p3684_p10, %p4176_p5  ;;  %s4208_s18 = int_to_ptr.vmem [resolvable:$true] %s224_s18 }
  0x14   : > { %s4210_s20 = scalar_lea.sflag [#allocation5], %s212_s11  ;;  %s3933_s26 = scalar_lea.hbm %s4200_s16, 8192 }
  0x15   : > { %p3934_p0 = scmp.ne.s32.totalorder %s4200_s16, %s3933_s26  ;;  %p3935_p1 = pneg %p4204_p13 }
  0x16   : > { %s3938_s7 = scalar_lea.hbm %s6527_s0, 16384  ;;  %p3939_p4 = scmp.lt.u32.totalorder %s4200_s16, %s6527_s0 }
  0x17   : > { %p3936_p2 = pnand %p3935_p1, %p3934_p0  ;;  %p3940_p5 = scmp.lt.u32.totalorder %s3938_s7, %s3933_s26 }
  0x18   : > { %p3942_p8 = scmp.lt.u32.totalorder %s3933_s26, %s4200_s16 }
  0x19   : > { %p3937_p3 = pneg %p3936_p2  ;;  %p3941_p7 = por %p3940_p5, %p3939_p4 }
  0x1b   : > { %p3943_p10 = por %p3942_p8, %p3941_p7 }
  0x1d   : > { %p3944_p9 = pnand %p3943_p10, %p3937_p3 }
  0x1f   : > { %3947 = shalt.err (!%p3944_p9)
}
  0x20   : > { %s3948_s11 = scalar_lea.vmem %s4208_s18, 8192  ;;  %s4031_s14 = smov [#allocation4]  }
  0x21   : > { %p3949_p0 = scmp.ne.s32.totalorder %s4208_s18, %s3948_s11  ;;  %s3953_s15 = sshll.u32 %s4031_s14, 4  ;;  %s3954_s15 = int_to_ptr.vmem [resolvable:$false] %s3953_s15 }
  0x22   : > { %s3955_s17 = scalar_lea.vmem %s3954_s15, 16384  ;;  %p3956_p11 = scmp.lt.s32.totalorder %s4208_s18, %s3954_s15 }
  0x23   : > { %p3951_p2 = pnand %p3949_p0, %p3935_p1  ;;  %p3957_p4 = scmp.lt.s32.totalorder %s3955_s17, %s3948_s11 }
  0x25   : > { %p3952_p12 = pneg %p3951_p2  ;;  %p3958_p5 = por %p3957_p4, %p3956_p11 }
  0x27   : > { %p3959_p7 = pnand %p3958_p5, %p3952_p12 }
  0x29   : > { %3962 = shalt.err (!%p3959_p7)
}
  0x2a   : > { %s4032_s26 = smov 256   ;;  %s4033_s28 = smov 16  }
  0x2b   : > { %3679 = dma.hbm_to_vmem [thread:$0]  (!%p4204_p13), %s4200_s16, 8192, %s4208_s18, %s4210_s20, %s4032_s26, %s4032_s26, %s4033_s28  }
  0x2c   : > { %p3332_p9 = scmp.ge.s32.totalorder %s4029_s24, 1  ;;  %p232_p1 = scmp.lt.s32.totalorder %s4029_s24, 3 }
  0x2e   : > { %p233_p3 = pnand %p3332_p9, %p232_p1 }
  0x30   : > { %236 = sbr.rel (%p233_p3) target bundleno = 1639 (0x667), region = 44 }
  0x37   : > { %s4241_s29 = sand.u32 1, %s4021_s22  }
  0x38   : > { %s3333_s7 = sshll.u32 %s4241_s29, 9  ;;  %s239_s12 = scalar_lea.sflag [#allocation5], %s4241_s29 }
  0x39   : > { %s4247_s13 = scalar_lea.vmem [#allocation4], %s3333_s7 }
  0x3a   : > { %4008 = dma.done.wait (%p4180_p6), %s239_s12, 8192  }
  0x3b   : > { %4010 = vsyncadd (%p4180_p6), %s239_s12, 4294959104  ;;  %v3335_v0 = vld [vmem:[%s4247_s13 + $0x40] sm:$0xff]  ;;  %v3336_v1 = vld [vmem:[%s4247_s13 + $0x48] sm:$0xff]  ;;  %vm298_vm0 = vcmask 7168   ;;  %vm315_vm1 = vcmask 72768   ;;  %vm345_vm2 = vcmask 15368  }
  0x3c   : > { %v273_v2 = vld [vmem:[%s4247_s13] sm:$0xff]  ;;  %v329_v3 = vadd.f32 %v3336_v1, %v3335_v0  ;;  %v274_v4 = vld [vmem:[%s4247_s13 + $0x8] sm:$0xff]  ;;  %v3337_v5 = vld [vmem:[%s4247_s13 + $0x50] sm:$0xff]  ;;  %v350_v27 = vmax.f32 %v3335_v0, %v3336_v1  ;;  %vm4035_vm3 = vmmov 0   ;;  %vm362_vm4 = vcmask 80968   ;;  %s4072_s8 = smov 120  }
  0x3d   : > { %v3338_v6 = vld [vmem:[%s4247_s13 + $0x58] sm:$0xff]  ;;  %v281_v7 = vadd.f32 %v274_v4, %v273_v2  ;;  %v275_v8 = vld [vmem:[%s4247_s13 + $0x10] sm:$0xff]  ;;  %v303_v13 = vmax.f32 %v273_v2, %v274_v4  ;;  %v277_v16 = vld [vmem:[%s4247_s13 + $0x20] sm:$0xff]  ;;  %vm392_vm5 = vcmask 23568   ;;  %vm409_vm6 = vcmask 89168   ;;  %s4088_s11 = smov 32  }
  0x3e   : > { %v276_v9 = vld [vmem:[%s4247_s13 + $0x18] sm:$0xff]  ;;  %330 = vadd.xlane.f32.xlu1 %v329_v3  ;;  %v332_v10 = vadd.f32 %v3338_v6, %v3337_v5  ;;  %v279_v14 = vld [vmem:[%s4247_s13 + $0x30] sm:$0xff]  ;;  %v278_v17 = vld [vmem:[%s4247_s13 + $0x28] sm:$0xff]  ;;  %v353_v26 = vmax.f32 %v3337_v5, %v3338_v6  ;;  %vm439_vm7 = vcmask 31768   ;;  %vm456_vm8 = vcmask 97368   ;;  %s4089_s14 = smov 16  }
  0x3f   : > { %282 = vadd.xlane.f32.xlu0 %v281_v7  ;;  %v284_v11 = vadd.f32 %v276_v9, %v275_v8  ;;  %v306_v12 = vmax.f32 %v275_v8, %v276_v9  ;;  %v280_v15 = vld [vmem:[%s4247_s13 + $0x38] sm:$0xff]  ;;  %v287_v19 = vadd.f32 %v278_v17, %v277_v16  ;;  %v3345_v20 = vld [vmem:[%s4247_s13 + $0x90] sm:$0xff]  ;;  %v3343_v22 = vld [vmem:[%s4247_s13 + $0x80] sm:$0xff]  ;;  %v309_v41 = vmax.f32 %v277_v16, %v278_v17  ;;  %s4090_s15 = smov 112   ;;  %s4091_s17 = smov 96  }
  0x40   : > { %v290_v18 = vadd.f32 %v280_v15, %v279_v14  ;;  %v3346_v21 = vld [vmem:[%s4247_s13 + $0x98] sm:$0xff]  ;;  %v3344_v23 = vld [vmem:[%s4247_s13 + $0x88] sm:$0xff]  ;;  %v3341_v28 = vld [vmem:[%s4247_s13 + $0x70] sm:$0xff]  ;;  %v312_v40 = vmax.f32 %v279_v14, %v280_v15  ;;  %vm486_vm9 = vcmask 39968   ;;  %vm503_vm10 = vcmask 105568   ;;  %s4092_s26 = smov 80  }
  0x41   : > { %v379_v24 = vadd.f32 %v3346_v21, %v3345_v20  ;;  %v376_v25 = vadd.f32 %v3344_v23, %v3343_v22  ;;  %v3342_v29 = vld [vmem:[%s4247_s13 + $0x78] sm:$0xff]  ;;  %v3339_v30 = vld [vmem:[%s4247_s13 + $0x60] sm:$0xff]  ;;  %v3340_v31 = vld [vmem:[%s4247_s13 + $0x68] sm:$0xff]  ;;  %v400_v42 = vmax.f32 %v3345_v20, %v3346_v21  ;;  %v397_v43 = vmax.f32 %v3343_v22, %v3344_v23  ;;  %s4094_s18 = smov 2   ;;  %s4095_s19 = smov 3  }
  0x42   : > { %333 = vadd.xlane.f32.xlu1 %v332_v10  ;;  %v338_v32 = vadd.f32 %v3342_v29, %v3341_v28  ;;  %v335_v33 = vadd.f32 %v3340_v31, %v3339_v30  ;;  %v3353_v34 = vld [vmem:[%s4247_s13 + $0xd0] sm:$0xff]  ;;  %v3354_v35 = vld [vmem:[%s4247_s13 + $0xd8] sm:$0xff]  ;;  %v3351_v36 = vld [vmem:[%s4247_s13 + $0xc0] sm:$0xff]  ;;  %v359_v56 = vmax.f32 %v3341_v28, %v3342_v29  ;;  %v356_v57 = vmax.f32 %v3339_v30, %v3340_v31  ;;  %s4096_s20 = smov 127   ;;  %p7235_p11 = scmp.ne.s32.totalorder %s6737_s9, 0 }
  0x43   : > { %285 = vadd.xlane.f32.xlu0 %v284_v11  ;;  %v3352_v37 = vld [vmem:[%s4247_s13 + $0xc8] sm:$0xff]  ;;  %v426_v38 = vadd.f32 %v3354_v35, %v3353_v34  ;;  %v3349_v44 = vld [vmem:[%s4247_s13 + $0xb0] sm:$0xff]  ;;  %v3350_v45 = vld [vmem:[%s4247_s13 + $0xb8] sm:$0xff]  ;;  %v447_v58 = vmax.f32 %v3353_v34, %v3354_v35  ;;  %vm533_vm11 = vcmask 48168   ;;  %vm550_vm12 = vcmask 113768  }
  0x44   : > { %v423_v39 = vadd.f32 %v3352_v37, %v3351_v36  ;;  %v3347_v46 = vld [vmem:[%s4247_s13 + $0xa0] sm:$0xff]  ;;  %v3348_v47 = vld [vmem:[%s4247_s13 + $0xa8] sm:$0xff]  ;;  %v385_v48 = vadd.f32 %v3350_v45, %v3349_v44  ;;  %v3361_v50 = vld [vmem:[%s4247_s13 + $0x110] sm:$0xff]  ;;  %v444_v59 = vmax.f32 %v3351_v36, %v3352_v37  ;;  %v406_v8 = vmax.f32 %v3349_v44, %v3350_v45 }
  0x45   : > { %v382_v49 = vadd.f32 %v3348_v47, %v3347_v46  ;;  %v3362_v51 = vld [vmem:[%s4247_s13 + $0x118] sm:$0xff]  ;;  %v3359_v52 = vld [vmem:[%s4247_s13 + $0x100] sm:$0xff]  ;;  %v3360_v53 = vld [vmem:[%s4247_s13 + $0x108] sm:$0xff]  ;;  %v403_v9 = vmax.f32 %v3347_v46, %v3348_v47  ;;  %vm580_vm13 = vcmask 56368   ;;  %vm597_vm14 = vcmask 121968  }
  0x46   : > { %307 = vmax.xlane.f32.xlu1 %v306_v12  ;;  %v473_v54 = vadd.f32 %v3362_v51, %v3361_v50  ;;  %v470_v55 = vadd.f32 %v3360_v53, %v3359_v52  ;;  %v3357_v60 = vld [vmem:[%s4247_s13 + $0xf0] sm:$0xff]  ;;  %v3358_v61 = vld [vmem:[%s4247_s13 + $0xf8] sm:$0xff]  ;;  %v3355_v62 = vld [vmem:[%s4247_s13 + $0xe0] sm:$0xff]  ;;  %v494_v10 = vmax.f32 %v3361_v50, %v3362_v51  ;;  %v491_v11 = vmax.f32 %v3359_v52, %v3360_v53 }
  0x47   : > { %304 = vmax.xlane.f32.xlu0 %v303_v13  ;;  %v3356_v63 = vld [vmem:[%s4247_s13 + $0xe8] sm:$0xff]  ;;  %v432_v0 = vadd.f32 %v3358_v61, %v3357_v60  ;;  %v3369_v2 = vld [vmem:[%s4247_s13 + $0x150] sm:$0xff]  ;;  %v3370_v3 = vld [vmem:[%s4247_s13 + $0x158] sm:$0xff]  ;;  %vm627_vm15 = vcmask 64568  }
  0x48   : > { %v429_v1 = vadd.f32 %v3356_v63, %v3355_v62  ;;  %v3367_v4 = vld [vmem:[%s4247_s13 + $0x140] sm:$0xff]  ;;  %v3368_v5 = vld [vmem:[%s4247_s13 + $0x148] sm:$0xff]  ;;  %v520_v6 = vadd.f32 %v3370_v3, %v3369_v2  ;;  %v3365_v12 = vld [vmem:[%s4247_s13 + $0x130] sm:$0xff] }
  0x49   : > { %v517_v7 = vadd.f32 %v3368_v5, %v3367_v4  ;;  %v3366_v13 = vld [vmem:[%s4247_s13 + $0x138] sm:$0xff]  ;;  %v3363_v14 = vld [vmem:[%s4247_s13 + $0x120] sm:$0xff]  ;;  %v3364_v15 = vld [vmem:[%s4247_s13 + $0x128] sm:$0xff] }
  0x4a   : > { %291 = vadd.xlane.f32.xlu1 %v290_v18  ;;  %v479_v16 = vadd.f32 %v3366_v13, %v3365_v12  ;;  %v476_v17 = vadd.f32 %v3364_v15, %v3363_v14  ;;  %v3377_v18 = vld [vmem:[%s4247_s13 + $0x190] sm:$0xff]  ;;  %v3375_v20 = vld [vmem:[%s4247_s13 + $0x180] sm:$0xff]  ;;  %v3376_v21 = vld [vmem:[%s4247_s13 + $0x188] sm:$0xff] }
  0x4b   : > { %288 = vadd.xlane.f32.xlu0 %v287_v19  ;;  %v3378_v19 = vld [vmem:[%s4247_s13 + $0x198] sm:$0xff]  ;;  %v564_v23 = vadd.f32 %v3376_v21, %v3375_v20  ;;  %v3373_v28 = vld [vmem:[%s4247_s13 + $0x170] sm:$0xff]  ;;  %v3371_v30 = vld [vmem:[%s4247_s13 + $0x160] sm:$0xff] }
  0x4c   : > { %v567_v22 = vadd.f32 %v3378_v19, %v3377_v18  ;;  %v3374_v29 = vld [vmem:[%s4247_s13 + $0x178] sm:$0xff]  ;;  %v3372_v31 = vld [vmem:[%s4247_s13 + $0x168] sm:$0xff]  ;;  %v3385_v34 = vld [vmem:[%s4247_s13 + $0x1d0] sm:$0xff] }
  0x4d   : > { %v3386_v35 = vld [vmem:[%s4247_s13 + $0x1d8] sm:$0xff]  ;;  %v3383_v36 = vld [vmem:[%s4247_s13 + $0x1c0] sm:$0xff]  ;;  %v3384_v37 = vld [vmem:[%s4247_s13 + $0x1c8] sm:$0xff]  ;;  %v547_v50 = vmax.f32 %v3373_v28, %v3374_v29  ;;  %v544_v51 = vmax.f32 %v3371_v30, %v3372_v31 }
  0x4e   : > { %380 = vadd.xlane.f32.xlu1 %v379_v24  ;;  %v453_v24 = vmax.f32 %v3357_v60, %v3358_v61  ;;  %v3381_v44 = vld [vmem:[%s4247_s13 + $0x1b0] sm:$0xff]  ;;  %v3382_v45 = vld [vmem:[%s4247_s13 + $0x1b8] sm:$0xff]  ;;  %v3379_v46 = vld [vmem:[%s4247_s13 + $0x1a0] sm:$0xff]  ;;  %v635_v52 = vmax.f32 %v3385_v34, %v3386_v35  ;;  %v632_v53 = vmax.f32 %v3383_v36, %v3384_v37 }
  0x4f   : > { %377 = vadd.xlane.f32.xlu0 %v376_v25  ;;  %v450_v25 = vmax.f32 %v3355_v62, %v3356_v63  ;;  %v3380_v47 = vld [vmem:[%s4247_s13 + $0x1a8] sm:$0xff]  ;;  %v594_v60 = vmax.f32 %v3381_v44, %v3382_v45 }
  0x50   : > { %v591_v61 = vmax.f32 %v3379_v46, %v3380_v47 }
  0x52   : > { %354 = vmax.xlane.f32.xlu1 %v353_v26  ;;  %v541_v26 = vmax.f32 %v3369_v2, %v3370_v3 }
  0x53   : > { %351 = vmax.xlane.f32.xlu0 %v350_v27  ;;  %v538_v27 = vmax.f32 %v3367_v4, %v3368_v5 }
  0x56   : > { %339 = vadd.xlane.f32.xlu1 %v338_v32  ;;  %v526_v32 = vadd.f32 %v3374_v29, %v3373_v28  ;;  %v742_v28 = vld [vmem:[%s6531_s4 + $0x18] sm:$0xff] }
  0x57   : > { %336 = vadd.xlane.f32.xlu0 %v335_v33  ;;  %v523_v33 = vadd.f32 %v3372_v31, %v3371_v30  ;;  %v4356_v31 = vld [vmem:[%s6532_s5] sm:$0xff] }
  0x5a   : > { %427 = vadd.xlane.f32.xlu1 %v426_v38  ;;  %v614_v38 = vadd.f32 %v3386_v35, %v3385_v34 }
  0x5b   : > { %424 = vadd.xlane.f32.xlu0 %v423_v39  ;;  %v611_v39 = vadd.f32 %v3384_v37, %v3383_v36 }
  0x5e   : > { %313 = vmax.xlane.f32.xlu1 %v312_v40  ;;  %v500_v40 = vmax.f32 %v3365_v12, %v3366_v13  ;;  %v654_v12 = vld [vmem:[%s6529_s2] sm:$0x3] }
  0x5f   : > { %310 = vmax.xlane.f32.xlu0 %v309_v41  ;;  %v497_v41 = vmax.f32 %v3363_v14, %v3364_v15  ;;  %v739_v13 = vld [vmem:[%s6531_s4] sm:$0xff]  ;;  %v6541_v15 = vmov 0  }
  0x60   : > { %3787 = vset.pattern.permute.xlu0 %v6541_v15  ;;  %3788 = vset.pattern.permute.xlu1 %v6541_v15 }
  0x62   : > { %401 = vmax.xlane.f32.xlu1 %v400_v42  ;;  %v588_v42 = vmax.f32 %v3377_v18, %v3378_v19  ;;  %v4335_v19 = vld [vmem:[%s6532_s5 + $0x8] sm:$0xff] }
  0x63   : > { %398 = vmax.xlane.f32.xlu0 %v397_v43  ;;  %v585_v43 = vmax.f32 %v3375_v20, %v3376_v21  ;;  %v740_v20 = vld [vmem:[%s6531_s4 + $0x8] sm:$0xff] }
  0x66   : > { %386 = vadd.xlane.f32.xlu1 %v385_v48  ;;  %v573_v48 = vadd.f32 %v3382_v45, %v3381_v44 }
  0x67   : > { %383 = vadd.xlane.f32.xlu0 %v382_v49  ;;  %v570_v49 = vadd.f32 %v3380_v47, %v3379_v46 }
  0x6a   : > { %474 = vadd.xlane.f32.xlu1 %v473_v54  ;;  %v3389_v54 = vld [vmem:[%s4247_s13 + $0x1f0] sm:$0xff] }
  0x6b   : > { %471 = vadd.xlane.f32.xlu0 %v470_v55  ;;  %v3390_v55 = vld [vmem:[%s4247_s13 + $0x1f8] sm:$0xff] }
  0x6c   : > { %v641_v62 = vmax.f32 %v3389_v54, %v3390_v55 }
  0x6e   : > { %360 = vmax.xlane.f32.xlu1 %v359_v56  ;;  %v3387_v56 = vld [vmem:[%s4247_s13 + $0x1e0] sm:$0xff] }
  0x6f   : > { %357 = vmax.xlane.f32.xlu0 %v356_v57  ;;  %v3388_v57 = vld [vmem:[%s4247_s13 + $0x1e8] sm:$0xff] }
  0x70   : > { %v638_v63 = vmax.f32 %v3387_v56, %v3388_v57 }
  0x72   : > { %448 = vmax.xlane.f32.xlu1 %v447_v58  ;;  %v620_v58 = vadd.f32 %v3390_v55, %v3389_v54 }
  0x73   : > { %445 = vmax.xlane.f32.xlu0 %v444_v59  ;;  %v617_v59 = vadd.f32 %v3388_v57, %v3387_v56 }
  0x76   : > { %433 = vadd.xlane.f32.xlu1 %v432_v0  ;;  %v4034_v0 = vmov 0.0|0.0  }
  0x77   : > { %430 = vadd.xlane.f32.xlu0 %v429_v1  ;;  %3666 = vmatprep.subr.bf16.mxu0 %v4034_v0 }
  0x7a   : > { %521 = vadd.xlane.f32.xlu1 %v520_v6 }
  0x7b   : > { %518 = vadd.xlane.f32.xlu0 %v517_v7 }
  0x7e   : > { %407 = vmax.xlane.f32.xlu1 %v406_v8 }
  0x7f   : > { %404 = vmax.xlane.f32.xlu0 %v403_v9 }
  0x82   : > { %495 = vmax.xlane.f32.xlu1 %v494_v10 }
  0x83   : > { %492 = vmax.xlane.f32.xlu0 %v491_v11  ;;  %v4036_v11 = vmov 0.0  }
  0x84   : > { %3655 = vmatprep.mubr.msk.f32.mxu0 %vm4035_vm3, %v4036_v11  ;;  %vm776_vm3 = vcmask 1041408  }
  0x86   : > { %480 = vadd.xlane.f32.xlu1 %v479_v16 }
  0x87   : > { %477 = vadd.xlane.f32.xlu0 %v476_v17 }
  0x8a   : > { %568 = vadd.xlane.f32.xlu1 %v567_v22 }
  0x8b   : > { %565 = vadd.xlane.f32.xlu0 %v564_v23  ;;  %v741_v23 = vld [vmem:[%s6531_s4 + $0x10] sm:$0xff] }
  0x8e   : > { %454 = vmax.xlane.f32.xlu1 %v453_v24 }
  0x8f   : > { %451 = vmax.xlane.f32.xlu0 %v450_v25 }
  0x92   : > { %542 = vmax.xlane.f32.xlu1 %v541_v26 }
  0x93   : > { %539 = vmax.xlane.f32.xlu0 %v538_v27 }
  0x96   : > { %527 = vadd.xlane.f32.xlu1 %v526_v32 }
  0x97   : > { %524 = vadd.xlane.f32.xlu0 %v523_v33 }
  0x9a   : > { %615 = vadd.xlane.f32.xlu1 %v614_v38  ;;  %v6537_v38 = vmov 7  }
  0x9b   : > { %612 = vadd.xlane.f32.xlu0 %v611_v39 }
  0x9e   : > { %501 = vmax.xlane.f32.xlu1 %v500_v40 }
  0x9f   : > { %498 = vmax.xlane.f32.xlu0 %v497_v41 }
  0xa2   : > { %589 = vmax.xlane.f32.xlu1 %v588_v42 }
  0xa3   : > { %586 = vmax.xlane.f32.xlu0 %v585_v43 }
  0xa6   : > { %574 = vadd.xlane.f32.xlu1 %v573_v48 }
  0xa7   : > { %571 = vadd.xlane.f32.xlu0 %v570_v49 }
  0xaa   : > { %548 = vmax.xlane.f32.xlu1 %v547_v50 }
  0xab   : > { %545 = vmax.xlane.f32.xlu0 %v544_v51 }
  0xae   : > { %636 = vmax.xlane.f32.xlu1 %v635_v52 }
  0xaf   : > { %633 = vmax.xlane.f32.xlu0 %v632_v53 }
  0xb2   : > { %621 = vadd.xlane.f32.xlu1 %v620_v58 }
  0xb3   : > { %618 = vadd.xlane.f32.xlu0 %v617_v59 }
  0xb6   : > { %595 = vmax.xlane.f32.xlu1 %v594_v60 }
  0xb7   : > { %592 = vmax.xlane.f32.xlu0 %v591_v61 }
  0xba   : > { %642 = vmax.xlane.f32.xlu1 %v641_v62 }
  0xbb   : > { %639 = vmax.xlane.f32.xlu0 %v638_v63 }
  0xcb   : > { %v331_v1 = vpop.xlane.xlu1 %330  ;;  %745 = vperm.xlu1 %3788, %v739_v13  }
  0xcc   : > { %v283_v2 = vpop.xlane.xlu0 %282  ;;  %v341_v9 = vmul.f32 0.00390625, %v331_v1 }
  0xcd   : > { %v294_v3 = vmul.f32 0.00390625, %v283_v2 }
  0xcf   : > { %299 = vst.msk [vmem:[#allocation2] sm:$0xff] %vm298_vm0, %v294_v3  ;;  %v334_v4 = vpop.xlane.xlu1 %333  ;;  %750 = vperm.xlu1 %3788, %v740_v20  }
  0xd0   : > { %v286_v5 = vpop.xlane.xlu0 %285  ;;  %v342_v7 = vmul.f32 0.00390625, %v334_v4 }
  0xd1   : > { %v295_v6 = vmul.f32 0.00390625, %v286_v5  ;;  %657 = vperm.xlu0 %3787, %v654_v12  }
  0xd3   : > { %300 = vst.msk [vmem:[#allocation2 + $0x8] sm:$0xff] %vm298_vm0, %v295_v6  ;;  %v308_v8 = vpop.xlane.xlu1 %307  ;;  %755 = vperm.xlu1 %3788, %v741_v23  }
  0xd4   : > { %317 = vst.msk [vmem:[#allocation2 + $0x8] sm:$0xff] %vm315_vm1, %v308_v8  ;;  %v305_v10 = vpop.xlane.xlu0 %304 }
  0xd5   : > { %316 = vst.msk [vmem:[#allocation2] sm:$0xff] %vm315_vm1, %v305_v10  ;;  %2058 = vperm.xlu0 %3787, %v4335_v19  }
  0xd6   : > { %347 = vst.msk [vmem:[#allocation2 + $0x8] sm:$0xff] %vm345_vm2, %v342_v7  ;;  %346 = vst.msk [vmem:[#allocation2] sm:$0xff] %vm345_vm2, %v341_v9 }
  0xd7   : > { %v292_v14 = vpop.xlane.xlu1 %291  ;;  %760 = vperm.xlu1 %3788, %v742_v28  }
  0xd8   : > { %v297_v16 = vmul.f32 0.00390625, %v292_v14  ;;  %v289_v17 = vpop.xlane.xlu0 %288 }
  0xd9   : > { %v296_v18 = vmul.f32 0.00390625, %v289_v17 }
  0xda   : > { %302 = vst.msk [vmem:[#allocation2 + $0x18] sm:$0xff] %vm298_vm0, %v297_v16 }
  0xdb   : > { %301 = vst.msk [vmem:[#allocation2 + $0x10] sm:$0xff] %vm298_vm0, %v296_v18  ;;  %v381_v21 = vpop.xlane.xlu1 %380  ;;  %2053 = vperm.xlu1 %3788, %v4356_v31   ;;  %vm644_vm0 = vcmask 130168  }
  0xdc   : > { %v378_v22 = vpop.xlane.xlu0 %377  ;;  %v389_v24 = vmul.f32 0.00390625, %v381_v21 }
  0xdd   : > { %v388_v26 = vmul.f32 0.00390625, %v378_v22 }
  0xdf   : > { %v355_v25 = vpop.xlane.xlu1 %354  ;;  %3789 = vset.pattern.permute.xlu1 %v6537_v38 }
  0xe0   : > { %364 = vst.msk [vmem:[#allocation2 + $0x8] sm:$0xff] %vm362_vm4, %v355_v25  ;;  %v352_v27 = vpop.xlane.xlu0 %351  ;;  %2070 = vperm.xlu1 %3789, %v4356_v31  }
  0xe1   : > { %363 = vst.msk [vmem:[#allocation2] sm:$0xff] %vm362_vm4, %v352_v27 }
  0xe2   : > { %394 = vst.msk [vmem:[#allocation2 + $0x8] sm:$0xff] %vm392_vm5, %v389_v24  ;;  %393 = vst.msk [vmem:[#allocation2] sm:$0xff] %vm392_vm5, %v388_v26 }
  0xe3   : > { %v340_v29 = vpop.xlane.xlu1 %339 }
  0xe4   : > { %v337_v30 = vpop.xlane.xlu0 %336  ;;  %v344_v34 = vmul.f32 0.00390625, %v340_v29  ;;  %2074 = vperm.xlu1 %3789, %v4335_v19  }
  0xe5   : > { %v343_v36 = vmul.f32 0.00390625, %v337_v30 }
  0xe7   : > { %v428_v32 = vpop.xlane.xlu1 %427 }
  0xe8   : > { %v425_v33 = vpop.xlane.xlu0 %424  ;;  %v436_v39 = vmul.f32 0.00390625, %v428_v32 }
  0xe9   : > { %v435_v41 = vmul.f32 0.00390625, %v425_v33 }
  0xeb   : > { %v314_v35 = vpop.xlane.xlu1 %313 }
  0xec   : > { %319 = vst.msk [vmem:[#allocation2 + $0x18] sm:$0xff] %vm315_vm1, %v314_v35  ;;  %v311_v37 = vpop.xlane.xlu0 %310 }
  0xed   : > { %349 = vst.msk [vmem:[#allocation2 + $0x18] sm:$0xff] %vm345_vm2, %v344_v34 }
  0xee   : > { %318 = vst.msk [vmem:[#allocation2 + $0x10] sm:$0xff] %vm315_vm1, %v311_v37  ;;  %vm660_vm1 = vcmask 261120  }
  0xef   : > { %348 = vst.msk [vmem:[#allocation2 + $0x10] sm:$0xff] %vm345_vm2, %v343_v36  ;;  %v402_v40 = vpop.xlane.xlu1 %401  ;;  %vm763_vm2 = vcmask 15360  }
  0xf0   : > { %411 = vst.msk [vmem:[#allocation2 + $0x8] sm:$0xff] %vm409_vm6, %v402_v40  ;;  %v399_v42 = vpop.xlane.xlu0 %398 }
  0xf1   : > { %410 = vst.msk [vmem:[#allocation2] sm:$0xff] %vm409_vm6, %v399_v42 }
  0xf2   : > { %441 = vst.msk [vmem:[#allocation2 + $0x8] sm:$0xff] %vm439_vm7, %v436_v39  ;;  %440 = vst.msk [vmem:[#allocation2] sm:$0xff] %vm439_vm7, %v435_v41 }
  0xf3   : > { %v387_v43 = vpop.xlane.xlu1 %386 }
  0xf4   : > { %v384_v44 = vpop.xlane.xlu0 %383  ;;  %v391_v47 = vmul.f32 0.00390625, %v387_v43 }
  0xf5   : > { %v390_v49 = vmul.f32 0.00390625, %v384_v44 }
  0xf7   : > { %v475_v45 = vpop.xlane.xlu1 %474 }
  0xf8   : > { %v472_v46 = vpop.xlane.xlu0 %471  ;;  %v483_v51 = vmul.f32 0.00390625, %v475_v45 }
  0xf9   : > { %v482_v53 = vmul.f32 0.00390625, %v472_v46 }
  0xfb   : > { %v361_v48 = vpop.xlane.xlu1 %360 }
  0xfc   : > { %366 = vst.msk [vmem:[#allocation2 + $0x18] sm:$0xff] %vm362_vm4, %v361_v48  ;;  %v358_v50 = vpop.xlane.xlu0 %357 }
  0xfd   : > { %396 = vst.msk [vmem:[#allocation2 + $0x18] sm:$0xff] %vm392_vm5, %v391_v47 }
  0xfe   : > { %365 = vst.msk [vmem:[#allocation2 + $0x10] sm:$0xff] %vm362_vm4, %v358_v50 }
  0xff   : > { %395 = vst.msk [vmem:[#allocation2 + $0x10] sm:$0xff] %vm392_vm5, %v390_v49  ;;  %v449_v52 = vpop.xlane.xlu1 %448 }
 0x100   : > { %458 = vst.msk [vmem:[#allocation2 + $0x8] sm:$0xff] %vm456_vm8, %v449_v52  ;;  %v446_v54 = vpop.xlane.xlu0 %445 }
 0x101   : > { %457 = vst.msk [vmem:[#allocation2] sm:$0xff] %vm456_vm8, %v446_v54  ;;  %v653_v54 = vld [vmem:[%s6528_s1] sm:$0x3] }
 0x102   : > { %488 = vst.msk [vmem:[#allocation2 + $0x8] sm:$0xff] %vm486_vm9, %v483_v51  ;;  %487 = vst.msk [vmem:[#allocation2] sm:$0xff] %vm486_vm9, %v482_v53 }
 0x103   : > { %v434_v55 = vpop.xlane.xlu1 %433 }
 0x104   : > { %v431_v56 = vpop.xlane.xlu0 %430  ;;  %v438_v59 = vmul.f32 0.00390625, %v434_v55  ;;  %v735_v55 = vld [vmem:[%s6530_s3] sm:$0xff] }
 0x105   : > { %v437_v61 = vmul.f32 0.00390625, %v431_v56  ;;  %3660 = vmatprep.mubr.msk.f32.mxu1 %vm763_vm2, %v735_v55  ;;  %v4040_v56 = vmov 21  }
 0x107   : > { %v522_v57 = vpop.xlane.xlu1 %521 }
 0x108   : > { %v519_v58 = vpop.xlane.xlu0 %518  ;;  %v530_v63 = vmul.f32 0.00390625, %v522_v57  ;;  %v4041_v57 = vmov 28  }
 0x109   : > { %v529_v2 = vmul.f32 0.00390625, %v519_v58  ;;  %v4042_v58 = vmov 35  }
 0x10b   : > { %v408_v60 = vpop.xlane.xlu1 %407 }
 0x10c   : > { %413 = vst.msk [vmem:[#allocation2 + $0x18] sm:$0xff] %vm409_vm6, %v408_v60  ;;  %v405_v62 = vpop.xlane.xlu0 %404  ;;  %v6547_v60 = vmov 1  }
 0x10d   : > { %443 = vst.msk [vmem:[#allocation2 + $0x18] sm:$0xff] %vm439_vm7, %v438_v59  ;;  %v4043_v59 = vmov 42  }
 0x10e   : > { %412 = vst.msk [vmem:[#allocation2 + $0x10] sm:$0xff] %vm409_vm6, %v405_v62  ;;  %v4046_v62 = vmov 22  }
 0x10f   : > { %442 = vst.msk [vmem:[#allocation2 + $0x10] sm:$0xff] %vm439_vm7, %v437_v61  ;;  %v496_v1 = vpop.xlane.xlu1 %495  ;;  %v4045_v61 = vmov 8  }
 0x110   : > { %505 = vst.msk [vmem:[#allocation2 + $0x8] sm:$0xff] %vm503_vm10, %v496_v1  ;;  %v493_v3 = vpop.xlane.xlu0 %492  ;;  %v4048_v1 = vmov 15  }
 0x111   : > { %504 = vst.msk [vmem:[#allocation2] sm:$0xff] %vm503_vm10, %v493_v3  ;;  %v4050_v3 = vmov 16  }
 0x112   : > { %535 = vst.msk [vmem:[#allocation2 + $0x8] sm:$0xff] %vm533_vm11, %v530_v63  ;;  %534 = vst.msk [vmem:[#allocation2] sm:$0xff] %vm533_vm11, %v529_v2  ;;  %v4047_v63 = vmov 29   ;;  %v4049_v2 = vmov 43  }
 0x113   : > { %v481_v4 = vpop.xlane.xlu1 %480 }
 0x114   : > { %v478_v5 = vpop.xlane.xlu0 %477  ;;  %v485_v8 = vmul.f32 0.00390625, %v481_v4  ;;  %v4051_v4 = vmov 23  }
 0x115   : > { %v484_v10 = vmul.f32 0.00390625, %v478_v5  ;;  %v4052_v5 = vmov 37  }
 0x117   : > { %v569_v6 = vpop.xlane.xlu1 %568 }
 0x118   : > { %v566_v7 = vpop.xlane.xlu0 %565  ;;  %v577_v12 = vmul.f32 0.00390625, %v569_v6  ;;  %v4053_v6 = vmov 36  }
 0x119   : > { %v576_v14 = vmul.f32 0.00390625, %v566_v7  ;;  %v4054_v7 = vmov 44  }
 0x11b   : > { %v455_v9 = vpop.xlane.xlu1 %454 }
 0x11c   : > { %460 = vst.msk [vmem:[#allocation2 + $0x18] sm:$0xff] %vm456_vm8, %v455_v9  ;;  %v452_v11 = vpop.xlane.xlu0 %451  ;;  %v4056_v9 = vmov 10  }
 0x11d   : > { %490 = vst.msk [vmem:[#allocation2 + $0x18] sm:$0xff] %vm486_vm9, %v485_v8  ;;  %v6543_v8 = vmov 3  }
 0x11e   : > { %459 = vst.msk [vmem:[#allocation2 + $0x10] sm:$0xff] %vm456_vm8, %v452_v11  ;;  %v4058_v11 = vmov 24  }
 0x11f   : > { %489 = vst.msk [vmem:[#allocation2 + $0x10] sm:$0xff] %vm486_vm9, %v484_v10  ;;  %v543_v13 = vpop.xlane.xlu1 %542  ;;  %v6535_v10 = vmov 2  }
 0x120   : > { %552 = vst.msk [vmem:[#allocation2 + $0x8] sm:$0xff] %vm550_vm12, %v543_v13  ;;  %v540_v16 = vpop.xlane.xlu0 %539  ;;  %v4060_v13 = vmov 31  }
 0x121   : > { %551 = vst.msk [vmem:[#allocation2] sm:$0xff] %vm550_vm12, %v540_v16  ;;  %v6549_v16 = vmov 4  }
 0x122   : > { %582 = vst.msk [vmem:[#allocation2 + $0x8] sm:$0xff] %vm580_vm13, %v577_v12  ;;  %581 = vst.msk [vmem:[#allocation2] sm:$0xff] %vm580_vm13, %v576_v14  ;;  %v4059_v12 = vmov 9   ;;  %v4061_v14 = vmov 45  }
 0x123   : > { %v528_v17 = vpop.xlane.xlu1 %527 }
 0x124   : > { %v525_v18 = vpop.xlane.xlu0 %524  ;;  %v532_v22 = vmul.f32 0.00390625, %v528_v17  ;;  %v4063_v17 = vmov 18  }
 0x125   : > { %v531_v24 = vmul.f32 0.00390625, %v525_v18  ;;  %v4064_v18 = vmov 30  }
 0x127   : > { %v616_v20 = vpop.xlane.xlu1 %615 }
 0x128   : > { %v613_v21 = vpop.xlane.xlu0 %612  ;;  %v624_v26 = vmul.f32 0.00390625, %v616_v20  ;;  %v6539_v20 = vmov 5  }
 0x129   : > { %v623_v28 = vmul.f32 0.00390625, %v613_v21  ;;  %v4066_v21 = vmov 25  }
 0x12b   : > { %v502_v23 = vpop.xlane.xlu1 %501 }
 0x12c   : > { %507 = vst.msk [vmem:[#allocation2 + $0x18] sm:$0xff] %vm503_vm10, %v502_v23  ;;  %v499_v25 = vpop.xlane.xlu0 %498 }
 0x12d   : > { %537 = vst.msk [vmem:[#allocation2 + $0x18] sm:$0xff] %vm533_vm11, %v532_v22 }
 0x12e   : > { %506 = vst.msk [vmem:[#allocation2 + $0x10] sm:$0xff] %vm503_vm10, %v499_v25 }
 0x12f   : > { %536 = vst.msk [vmem:[#allocation2 + $0x10] sm:$0xff] %vm533_vm11, %v531_v24  ;;  %v590_v27 = vpop.xlane.xlu1 %589 }
 0x130   : > { %599 = vst.msk [vmem:[#allocation2 + $0x8] sm:$0xff] %vm597_vm14, %v590_v27  ;;  %v587_v29 = vpop.xlane.xlu0 %586  ;;  %v736_v27 = vld [vmem:[%s6530_s3 + $0x8] sm:$0xff] }
 0x131   : > { %598 = vst.msk [vmem:[#allocation2] sm:$0xff] %vm597_vm14, %v587_v29  ;;  %v4067_v29 = vmov 17  }
 0x132   : > { %629 = vst.msk [vmem:[#allocation2 + $0x8] sm:$0xff] %vm627_vm15, %v624_v26  ;;  %628 = vst.msk [vmem:[#allocation2] sm:$0xff] %vm627_vm15, %v623_v28  ;;  %v737_v28 = vld [vmem:[%s6530_s3 + $0x10] sm:$0xff] }
 0x133   : > { %v575_v30 = vpop.xlane.xlu1 %574 }
 0x134   : > { %v572_v32 = vpop.xlane.xlu0 %571  ;;  %v579_v33 = vmul.f32 0.00390625, %v575_v30  ;;  %v738_v30 = vld [vmem:[%s6530_s3 + $0x18] sm:$0xff] }
 0x135   : > { %v578_v35 = vmul.f32 0.00390625, %v572_v32  ;;  %v4068_v32 = vmov 38  }
 0x137   : > { %v549_v34 = vpop.xlane.xlu1 %548 }
 0x138   : > { %554 = vst.msk [vmem:[#allocation2 + $0x18] sm:$0xff] %vm550_vm12, %v549_v34  ;;  %v546_v36 = vpop.xlane.xlu0 %545  ;;  %v4070_v34 = vmov 12  }
 0x139   : > { %584 = vst.msk [vmem:[#allocation2 + $0x18] sm:$0xff] %vm580_vm13, %v579_v33  ;;  %v4069_v33 = vmov 11  }
 0x13a   : > { %553 = vst.msk [vmem:[#allocation2 + $0x10] sm:$0xff] %vm550_vm12, %v546_v36 }
 0x13b   : > { %583 = vst.msk [vmem:[#allocation2 + $0x10] sm:$0xff] %vm580_vm13, %v578_v35  ;;  %v637_v37 = vpop.xlane.xlu1 %636 }
 0x13c   : > { %646 = vst.msk [vmem:[#allocation2 + $0x8] sm:$0xff] %vm644_vm0, %v637_v37  ;;  %v634_v39 = vpop.xlane.xlu0 %633 }
 0x13d   : > { %645 = vst.msk [vmem:[#allocation2] sm:$0xff] %vm644_vm0, %v634_v39 }
 0x13f   : > { %v622_v40 = vpop.xlane.xlu1 %621 }
 0x140   : > { %v619_v41 = vpop.xlane.xlu0 %618  ;;  %v626_v42 = vmul.f32 0.00390625, %v622_v40 }
 0x141   : > { %v625_v45 = vmul.f32 0.00390625, %v619_v41 }
 0x143   : > { %v596_v43 = vpop.xlane.xlu1 %595  ;;  %v650_v44 = vld [vmem:[#allocation2 + $0x8] sm:$0xff] }
 0x144   : > { %601 = vst.msk [vmem:[#allocation2 + $0x18] sm:$0xff] %vm597_vm14, %v596_v43  ;;  %v593_v46 = vpop.xlane.xlu0 %592  ;;  %v649_v47 = vld [vmem:[#allocation2] sm:$0xff] }
 0x145   : > { %631 = vst.msk [vmem:[#allocation2 + $0x18] sm:$0xff] %vm627_vm15, %v626_v42  ;;  %v3667_v48 = vpack.c.bf16 %v650_v44, %v649_v47 }
 0x146   : > { %600 = vst.msk [vmem:[#allocation2 + $0x10] sm:$0xff] %vm597_vm14, %v593_v46 }
 0x147   : > { %630 = vst.msk [vmem:[#allocation2 + $0x10] sm:$0xff] %vm627_vm15, %v625_v45  ;;  %3668 = vmatpush3.bf16.msra.mxu0 %v3667_v48  ;;  %v643_v49 = vpop.xlane.xlu1 %642 }
 0x148   : > { %648 = vst.msk [vmem:[#allocation2 + $0x18] sm:$0xff] %vm644_vm0, %v643_v49  ;;  %v640_v50 = vpop.xlane.xlu0 %639  ;;  %3669 = vmatprep.subr.bf16.mxu0 %v4034_v0  ;;  %v4039_v0 = vmov 14  }
 0x149   : > { %647 = vst.msk [vmem:[#allocation2 + $0x10] sm:$0xff] %vm644_vm0, %v640_v50  ;;  %3791 = vset.pattern.permute.xlu1 %v4039_v0  ;;  %3790 = vset.pattern.permute.xlu0 %v4039_v0 }
 0x14a   : > { %2090 = vperm.xlu1 %3791, %v4335_v19   ;;  %2086 = vperm.xlu0 %3790, %v4356_v31  }
 0x14b   : > { %v746_v35 = vpop.permute.xlu1 %745 }
 0x14e   : > { %3792 = vset.pattern.permute.xlu1 %v4040_v56  ;;  %3793 = vset.pattern.permute.xlu0 %v4040_v56 }
 0x14f   : > { %v652_v51 = vld [vmem:[#allocation2 + $0x18] sm:$0xff]  ;;  %2102 = vperm.xlu1 %3792, %v4356_v31   ;;  %2106 = vperm.xlu0 %3793, %v4335_v19   ;;  %v751_v36 = vpop.permute.xlu1 %750 }
 0x150   : > { %v651_v52 = vld [vmem:[#allocation2 + $0x10] sm:$0xff]  ;;  %v658_v22 = vpop.permute.xlu0 %657 }
 0x151   : > { %v3670_v53 = vpack.c.bf16 %v652_v51, %v651_v52 }
 0x153   : > { %3671 = vmatpush3.bf16.msra.mxu0 %v3670_v53  ;;  %3794 = vset.pattern.permute.xlu1 %v4041_v57  ;;  %v756_v37 = vpop.permute.xlu1 %755 }
 0x154   : > { %3795 = vset.pattern.permute.xlu0 %v4042_v58  ;;  %2118 = vperm.xlu1 %3794, %v4356_v31  }
 0x155   : > { %2134 = vperm.xlu0 %3795, %v4356_v31  }
 0x156   : > { %3656 = vmatmul.mubr.msk.f32.vlgmr.msra.gmra.mrb[0].mxu0 %vm660_vm1, %v653_v54 }
 0x157   : > { %v761_v39 = vpop.permute.xlu1 %760 }
 0x158   : > { %2122 = vperm.xlu1 %3794, %v4335_v19  }
 0x159   : > { %3798 = vset.pattern.permute.xlu0 %v4043_v59 }
 0x15a   : > { %2154 = vperm.xlu0 %3798, %v4335_v19  }
 0x15b   : > { %v4506_v40 = vpop.permute.xlu1 %2053 }
 0x15c   : > { %3796 = vset.pattern.permute.xlu1 %v4042_v58  ;;  %6740 = vst [vmem:[#allocation10_spill] sm:$0xff] %v4506_v40 }
 0x15d   : > { %2138 = vperm.xlu1 %3796, %v4335_v19  }
 0x15e   : > { %3799 = vset.pattern.permute.xlu0 %v6547_v60 }
 0x15f   : > { %2187 = vperm.xlu0 %3799, %v4356_v31   ;;  %v4508_v41 = vpop.permute.xlu1 %2070 }
 0x160   : > { %6741 = vst [vmem:[#allocation11_spill] sm:$0xff] %v4508_v41 }
 0x161   : > { %3797 = vset.pattern.permute.xlu1 %v4043_v59 }
 0x162   : > { %2150 = vperm.xlu1 %3797, %v4356_v31  }
 0x163   : > { %3802 = vset.pattern.permute.xlu0 %v4045_v61  ;;  %v4510_v42 = vpop.permute.xlu1 %2074 }
 0x164   : > { %2207 = vperm.xlu0 %3802, %v4335_v19   ;;  %6742 = vst [vmem:[#allocation12_spill] sm:$0xff] %v4510_v42 }
 0x166   : > { %3800 = vset.pattern.permute.xlu1 %v6547_v60 }
 0x167   : > { %2191 = vperm.xlu1 %3800, %v4335_v19  }
 0x168   : > { %3804 = vset.pattern.permute.xlu0 %v4046_v62 }
 0x169   : > { %2235 = vperm.xlu0 %3804, %v4356_v31  }
 0x16b   : > { %3801 = vset.pattern.permute.xlu1 %v4045_v61 }
 0x16c   : > { %2203 = vperm.xlu1 %3801, %v4356_v31  }
 0x16d   : > { %3807 = vset.pattern.permute.xlu0 %v4047_v63 }
 0x16e   : > { %2255 = vperm.xlu0 %3807, %v4335_v19  }
 0x170   : > { %3803 = vset.pattern.permute.xlu1 %v4048_v1 }
 0x171   : > { %2219 = vperm.xlu1 %3803, %v4356_v31  }
 0x172   : > { %3809 = vset.pattern.permute.xlu0 %v4049_v2 }
 0x173   : > { %2283 = vperm.xlu0 %3809, %v4356_v31  }
 0x175   : > { %2223 = vperm.xlu1 %3803, %v4335_v19  }
 0x177   : > { %3813 = vset.pattern.permute.xlu0 %v4050_v3 }
 0x178   : > { %2352 = vperm.xlu0 %3813, %v4356_v31  }
 0x179   : > { %3805 = vset.pattern.permute.xlu1 %v4046_v62 }
 0x17a   : > { %2239 = vperm.xlu1 %3805, %v4335_v19  }
 0x17c   : > { %3816 = vset.pattern.permute.xlu0 %v4051_v4 }
 0x17d   : > { %2372 = vperm.xlu0 %3816, %v4335_v19  }
 0x17e   : > { %3806 = vset.pattern.permute.xlu1 %v4047_v63 }
 0x17f   : > { %2251 = vperm.xlu1 %3806, %v4356_v31  }
 0x181   : > { %3818 = vset.pattern.permute.xlu0 %v4052_v5 }
 0x182   : > { %2400 = vperm.xlu0 %3818, %v4356_v31  }
 0x183   : > { %3808 = vset.pattern.permute.xlu1 %v4053_v6 }
 0x184   : > { %2267 = vperm.xlu1 %3808, %v4356_v31  }
 0x186   : > { %3821 = vset.pattern.permute.xlu0 %v4054_v7 }
 0x187   : > { %2420 = vperm.xlu0 %3821, %v4335_v19  }
 0x188   : > { %2271 = vperm.xlu1 %3808, %v4335_v19  }
 0x18b   : > { %3822 = vset.pattern.permute.xlu0 %v6543_v8 }
 0x18c   : > { %2453 = vperm.xlu0 %3822, %v4356_v31   ;;  %3810 = vset.pattern.permute.xlu1 %v4049_v2 }
 0x18d   : > { %2287 = vperm.xlu1 %3810, %v4335_v19  }
 0x190   : > { %3825 = vset.pattern.permute.xlu0 %v4056_v9 }
 0x191   : > { %2473 = vperm.xlu0 %3825, %v4335_v19   ;;  %3811 = vset.pattern.permute.xlu1 %v6535_v10 }
 0x192   : > { %2320 = vperm.xlu1 %3811, %v4356_v31  }
 0x195   : > { %3827 = vset.pattern.permute.xlu0 %v4058_v11 }
 0x196   : > { %2501 = vperm.xlu0 %3827, %v4356_v31   ;;  %3812 = vset.pattern.permute.xlu1 %v4059_v12 }
 0x197   : > { %2336 = vperm.xlu1 %3812, %v4356_v31  }
 0x19a   : > { %3830 = vset.pattern.permute.xlu0 %v4060_v13 }
 0x19b   : > { %2521 = vperm.xlu0 %3830, %v4335_v19   ;;  %2340 = vperm.xlu1 %3812, %v4335_v19  }
 0x19f   : > { %3832 = vset.pattern.permute.xlu0 %v4061_v14  ;;  %3814 = vset.pattern.permute.xlu1 %v4050_v3 }
 0x1a0   : > { %2549 = vperm.xlu0 %3832, %v4356_v31   ;;  %2356 = vperm.xlu1 %3814, %v4335_v19  }
 0x1a4   : > { %3835 = vset.pattern.permute.xlu0 %v6549_v16  ;;  %3815 = vset.pattern.permute.xlu1 %v4051_v4  ;;  %v4071_v4 = vmov 19  }
 0x1a5   : > { %2573 = vperm.xlu0 %3835, %v4335_v19   ;;  %2368 = vperm.xlu1 %3815, %v4356_v31  }
 0x1a9   : > { %3837 = vset.pattern.permute.xlu0 %v4063_v17  ;;  %3817 = vset.pattern.permute.xlu1 %v4064_v18  ;;  %v6545_v18 = vmov 6  }
 0x1aa   : > { %2601 = vperm.xlu0 %3837, %v4356_v31   ;;  %2384 = vperm.xlu1 %3817, %v4356_v31  }
 0x1ae   : > { %3840 = vset.pattern.permute.xlu0 %v6539_v20  ;;  %2388 = vperm.xlu1 %3817, %v4335_v19  }
 0x1af   : > { %2706 = vperm.xlu0 %3840, %v4335_v19  }
 0x1b2   : > { %3819 = vset.pattern.permute.xlu1 %v4052_v5 }
 0x1b3   : > { %3842 = vset.pattern.permute.xlu0 %v4066_v21  ;;  %2404 = vperm.xlu1 %3819, %v4335_v19  }
 0x1b4   : > { %2617 = vperm.xlu0 %3842, %v4356_v31  }
 0x1b7   : > { %3820 = vset.pattern.permute.xlu1 %v4054_v7 }
 0x1b8   : > { %2416 = vperm.xlu1 %3820, %v4356_v31   ;;  %3845 = vset.pattern.permute.xlu0 %v4071_v4 }
 0x1b9   : > { %2738 = vperm.xlu0 %3845, %v4335_v19  }
 0x1bc   : > { %3823 = vset.pattern.permute.xlu1 %v6543_v8 }
 0x1bd   : > { %2457 = vperm.xlu1 %3823, %v4335_v19   ;;  %3846 = vset.pattern.permute.xlu0 %v6535_v10 }
 0x1be   : > { %2324 = vperm.xlu0 %3846, %v4335_v19  }
 0x1c1   : > { %3824 = vset.pattern.permute.xlu1 %v4056_v9 }
 0x1c2   : > { %2469 = vperm.xlu1 %3824, %v4356_v31  }
 0x1c6   : > { %3826 = vset.pattern.permute.xlu1 %v4067_v29 }
 0x1c7   : > { %2485 = vperm.xlu1 %3826, %v4356_v31  }
 0x1c9   : > { %v4512_v43 = vpop.permute.xlu1 %2090 }
 0x1ca   : > { %6743 = vst [vmem:[#allocation13_spill] sm:$0xff] %v4512_v43 }
 0x1cb   : > { %2489 = vperm.xlu1 %3826, %v4335_v19  }
 0x1ce   : > { %v4514_v44 = vpop.permute.xlu1 %2102 }
 0x1cf   : > { %3828 = vset.pattern.permute.xlu1 %v4058_v11  ;;  %6744 = vst [vmem:[#allocation14_spill] sm:$0xff] %v4514_v44 }
 0x1d0   : > { %2505 = vperm.xlu1 %3828, %v4335_v19  }
 0x1d3   : > { %v4516_v45 = vpop.permute.xlu1 %2118 }
 0x1d4   : > { %3829 = vset.pattern.permute.xlu1 %v4060_v13  ;;  %6745 = vst [vmem:[#allocation15_spill] sm:$0xff] %v4516_v45 }
 0x1d5   : > { %2517 = vperm.xlu1 %3829, %v4356_v31  }
 0x1d7   : > { %v4518_v46 = vpop.permute.xlu1 %2122 }
 0x1d8   : > { %6746 = vst [vmem:[#allocation16_spill] sm:$0xff] %v4518_v46 }
 0x1d9   : > { %3831 = vset.pattern.permute.xlu1 %v4068_v32 }
 0x1da   : > { %2533 = vperm.xlu1 %3831, %v4356_v31  }
 0x1dc   : > { %v4520_v47 = vpop.permute.xlu1 %2138 }
 0x1dd   : > { %6747 = vst [vmem:[#allocation17_spill] sm:$0xff] %v4520_v47  ;;  %v4081_v47 = vmov 33  }
 0x1de   : > { %2537 = vperm.xlu1 %3831, %v4335_v19  }
 0x1e1   : > { %v4522_v48 = vpop.permute.xlu1 %2150 }
 0x1e2   : > { %3833 = vset.pattern.permute.xlu1 %v4061_v14  ;;  %6748 = vst [vmem:[#allocation18_spill] sm:$0xff] %v4522_v48 }
 0x1e3   : > { %2553 = vperm.xlu1 %3833, %v4335_v19  }
 0x1e6   : > { %v4524_v49 = vpop.permute.xlu1 %2191 }
 0x1e7   : > { %3834 = vset.pattern.permute.xlu1 %v6549_v16  ;;  %6749 = vst [vmem:[#allocation19_spill] sm:$0xff] %v4524_v49  ;;  %v3482_v49 = vld [vmem:[%s4247_s13 + $0x188] sm:$0xff] }
 0x1e8   : > { %2569 = vperm.xlu1 %3834, %v4356_v31  }
 0x1eb   : > { %v4526_v50 = vpop.permute.xlu1 %2203 }
 0x1ec   : > { %3836 = vset.pattern.permute.xlu1 %v4069_v33  ;;  %6750 = vst [vmem:[#allocation20_spill] sm:$0xff] %v4526_v50 }
 0x1ed   : > { %2585 = vperm.xlu1 %3836, %v4356_v31  }
 0x1f0   : > { %v4528_v51 = vpop.permute.xlu1 %2219 }
 0x1f1   : > { %2589 = vperm.xlu1 %3836, %v4335_v19   ;;  %6751 = vst [vmem:[#allocation21_spill] sm:$0xff] %v4528_v51  ;;  %v3452_v51 = vld [vmem:[%s4247_s13 + $0x118] sm:$0xff] }
 0x1f4   : > { %v4530_v52 = vpop.permute.xlu1 %2223 }
 0x1f5   : > { %3838 = vset.pattern.permute.xlu1 %v4063_v17  ;;  %6752 = vst [vmem:[#allocation22_spill] sm:$0xff] %v4530_v52 }
 0x1f6   : > { %2605 = vperm.xlu1 %3838, %v4335_v19  }
 0x1f9   : > { %v4532_v53 = vpop.permute.xlu1 %2239 }
 0x1fa   : > { %3839 = vset.pattern.permute.xlu1 %v6539_v20  ;;  %6753 = vst [vmem:[#allocation23_spill] sm:$0xff] %v4532_v53  ;;  %v3455_v53 = vld [vmem:[%s4247_s13 + $0x130] sm:$0xff] }
 0x1fb   : > { %2702 = vperm.xlu1 %3839, %v4356_v31  }
 0x1fe   : > { %v4534_v54 = vpop.permute.xlu1 %2251 }
 0x1ff   : > { %3841 = vset.pattern.permute.xlu1 %v4070_v34  ;;  %6754 = vst [vmem:[#allocation24_spill] sm:$0xff] %v4534_v54 }
 0x200   : > { %2718 = vperm.xlu1 %3841, %v4356_v31  }
 0x203   : > { %v4536_v55 = vpop.permute.xlu1 %2267 }
 0x204   : > { %2722 = vperm.xlu1 %3841, %v4335_v19   ;;  %6755 = vst [vmem:[#allocation25_spill] sm:$0xff] %v4536_v55 }
 0x207   : > { %v4538_v0 = vpop.permute.xlu1 %2271 }
 0x208   : > { %3843 = vset.pattern.permute.xlu1 %v4066_v21  ;;  %6756 = vst [vmem:[#allocation26_spill] sm:$0xff] %v4538_v0  ;;  %v4082_v0 = vmov 34  }
 0x209   : > { %2621 = vperm.xlu1 %3843, %v4335_v19  }
 0x20c   : > { %v4540_v56 = vpop.permute.xlu1 %2287 }
 0x20d   : > { %6757 = vst [vmem:[#allocation27_spill] sm:$0xff] %v4540_v56  ;;  %3844 = vset.pattern.permute.xlu1 %v4071_v4 }
 0x211   : > { %v4542_v57 = vpop.permute.xlu1 %2320 }
 0x212   : > { %6758 = vst [vmem:[#allocation28_spill] sm:$0xff] %v4542_v57 }
 0x216   : > { %v4544_v58 = vpop.permute.xlu1 %2336 }
 0x217   : > { %6759 = vst [vmem:[#allocation29_spill] sm:$0xff] %v4544_v58 }
 0x21a   : > { %v4546_v59 = vpop.permute.xlu1 %2340 }
 0x21b   : > { %6760 = vst [vmem:[#allocation30_spill] sm:$0xff] %v4546_v59 }
 0x21f   : > { %v4548_v61 = vpop.permute.xlu1 %2356 }
 0x220   : > { %6761 = vst [vmem:[#allocation31_spill] sm:$0xff] %v4548_v61 }
 0x224   : > { %v4550_v62 = vpop.permute.xlu1 %2368 }
 0x225   : > { %6762 = vst [vmem:[#allocation32_spill] sm:$0xff] %v4550_v62 }
 0x229   : > { %v730_v23 = vpop.f32.mrb[0].mxu0  ;;  %v4552_v3 = vpop.permute.xlu1 %2384 }
 0x22a   : > { %v731_v24 = vadd.f32 %v730_v23, %v658_v22  ;;  %v3657_v25 = vpop.f32.mrb[1].mxu0  ;;  %6763 = vst [vmem:[#allocation33_spill] sm:$0xff] %v4552_v3 }
 0x22c   : > { %v734_v26 = vmax.f32 %v731_v24, 0.0 }
 0x22d   : > { %v4556_v9 = vpop.permute.xlu1 %2388 }
 0x22e   : > { %3658 = vmatprep.subr.msk.mxu1 %vm776_vm3, %v734_v26  ;;  %6764 = vst [vmem:[#allocation34_spill] sm:$0xff] %v4556_v9  ;;  %v4083_v9 = vmov 40  }
 0x22f   : > { %3659 = vmatpush3.msk.msra.mxu1 %vm776_vm3, %v734_v26 }
 0x230   : > { %3661 = vmatmul.mubr.msk.f32.vlgmr.msra.gmra.mrb[0].mxu1 %vm763_vm2, %v736_v27 }
 0x231   : > { %3663 = vmatprep.mubr.msk.f32.mxu1 %vm763_vm2, %v737_v28 }
 0x232   : > { %v4559_v12 = vpop.permute.xlu1 %2404 }
 0x233   : > { %6765 = vst [vmem:[#allocation35_spill] sm:$0xff] %v4559_v12 }
 0x234   : > { %3664 = vmatmul.mubr.msk.f32.gmra.mrb[2].mxu1 %vm763_vm2, %v738_v30 }
 0x237   : > { %v4564_v14 = vpop.permute.xlu1 %2416 }
 0x238   : > { %6766 = vst [vmem:[#allocation36_spill] sm:$0xff] %v4564_v14  ;;  %v6800_v14 = vmov 4  }
 0x23c   : > { %v4567_v17 = vpop.permute.xlu1 %2457 }
 0x23d   : > { %6767 = vst [vmem:[#allocation37_spill] sm:$0xff] %v4567_v17 }
 0x241   : > { %v4572_v21 = vpop.permute.xlu1 %2469 }
 0x242   : > { %6768 = vst [vmem:[#allocation38_spill] sm:$0xff] %v4572_v21  ;;  %v3401_v21 = vld [vmem:[%s4247_s13 + $0x40] sm:$0xff] }
 0x246   : > { %v4575_v22 = vpop.permute.xlu1 %2485 }
 0x247   : > { %6769 = vst [vmem:[#allocation39_spill] sm:$0xff] %v4575_v22  ;;  %v909_v22 = vld [vmem:[%s4247_s13] sm:$0xff] }
 0x24a   : > { %v4577_v23 = vpop.permute.xlu1 %2489 }
 0x24b   : > { %6770 = vst [vmem:[#allocation40_spill] sm:$0xff] %v4577_v23 }
 0x24f   : > { %v4579_v24 = vpop.permute.xlu1 %2505 }
 0x250   : > { %6771 = vst [vmem:[#allocation41_spill] sm:$0xff] %v4579_v24  ;;  %v6798_v24 = vmov 2  }
 0x254   : > { %v4581_v25 = vpop.permute.xlu1 %2517 }
 0x255   : > { %6772 = vst [vmem:[#allocation42_spill] sm:$0xff] %v4581_v25 }
 0x259   : > { %v4583_v26 = vpop.permute.xlu1 %2533 }
 0x25a   : > { %6773 = vst [vmem:[#allocation43_spill] sm:$0xff] %v4583_v26 }
 0x25d   : > { %v4585_v27 = vpop.permute.xlu1 %2537 }
 0x25e   : > { %6774 = vst [vmem:[#allocation44_spill] sm:$0xff] %v4585_v27 }
 0x262   : > { %v4587_v28 = vpop.permute.xlu1 %2553 }
 0x263   : > { %6775 = vst [vmem:[#allocation45_spill] sm:$0xff] %v4587_v28  ;;  %v6796_v28 = vmov 7  }
 0x267   : > { %v4589_v29 = vpop.permute.xlu1 %2569 }
 0x268   : > { %6776 = vst [vmem:[#allocation46_spill] sm:$0xff] %v4589_v29 }
 0x303   : > { %v3662_v63 = vpop.f32.mrb[0].mxu1 }
 0x304   : > { %v852_v1 = vadd.f32 %v3662_v63, %v751_v36  ;;  %v846_v2 = vpop.f32.mrb[1].mxu1 }
 0x305   : > { %v847_v6 = vadd.f32 %v846_v2, %v746_v35 }
 0x306   : > { %871 = vrot.lane.b32.xlu1 %v852_v1, %s4072_s8 }
 0x307   : > { %v3665_v5 = vpop.f32.mrb[2].mxu1 }
 0x308   : > { %v856_v7 = vpop.f32.mrb[3].mxu1  ;;  %v862_v11 = vadd.f32 %v3665_v5, %v761_v39  ;;  %v4605_v5 = vpop.permute.xlu0 %2058 }
 0x309   : > { %v4561_v13 = vadd.f32 %v856_v7, %v756_v37  ;;  %6784 = vst [vmem:[#allocation54_spill] sm:$0xff] %v4605_v5  ;;  %v3497_v5 = vld [vmem:[%s4247_s13 + $0x1c0] sm:$0xff] }
 0x30a   : > { %869 = vrot.lane.b32.xlu1 %v847_v6, %s4072_s8 }
 0x30c   : > { %v4607_v10 = vpop.permute.xlu0 %2086 }
 0x30d   : > { %6785 = vst [vmem:[#allocation55_spill] sm:$0xff] %v4607_v10  ;;  %v3435_v10 = vld [vmem:[%s4247_s13 + $0xd0] sm:$0xff] }
 0x30e   : > { %875 = vrot.lane.b32.xlu1 %v862_v11, %s4072_s8 }
 0x312   : > { %873 = vrot.lane.b32.xlu1 %v4561_v13, %s4072_s8  ;;  %s3238_s8 = scalar_lea.sflag [#allocation6], %s4241_s29 }
 0x316   : > { %2734 = vperm.xlu1 %3844, %v4356_v31  }
 0x31a   : > { %3847 = vset.pattern.permute.xlu1 %v6545_v18 }
 0x31b   : > { %2835 = vperm.xlu1 %3847, %v4356_v31  }
 0x31f   : > { %2839 = vperm.xlu1 %3847, %v4335_v19   ;;  %v4591_v19 = vpop.permute.xlu1 %2585 }
 0x320   : > { %6777 = vst [vmem:[#allocation47_spill] sm:$0xff] %v4591_v19  ;;  %v3467_v19 = vld [vmem:[%s4247_s13 + $0x150] sm:$0xff] }
 0x323   : > { %3848 = vset.pattern.permute.xlu1 %v6541_v15  ;;  %v4593_v30 = vpop.permute.xlu1 %2589  ;;  %v4609_v15 = vpop.permute.xlu0 %2106 }
 0x324   : > { %6778 = vst [vmem:[#allocation48_spill] sm:$0xff] %v4593_v30  ;;  %6786 = vst [vmem:[#allocation56_spill] sm:$0xff] %v4609_v15  ;;  %v3440_v15 = vld [vmem:[%s4247_s13 + $0xf8] sm:$0xff] }
 0x327   : > { %v4595_v32 = vpop.permute.xlu1 %2605  ;;  %v4611_v18 = vpop.permute.xlu0 %2134 }
 0x328   : > { %6779 = vst [vmem:[#allocation49_spill] sm:$0xff] %v4595_v32  ;;  %6787 = vst [vmem:[#allocation57_spill] sm:$0xff] %v4611_v18  ;;  %v6592_v32 = vlaneseq }
 0x32a   : > { %v4739_v43 = vshrl.u32 %v6592_v32, 7  ;;  %v3483_v32 = vld [vmem:[%s4247_s13 + $0x190] sm:$0xff] }
 0x32b   : > { %v4597_v33 = vpop.permute.xlu1 %2702 }
 0x32c   : > { %6780 = vst [vmem:[#allocation50_spill] sm:$0xff] %v4597_v33  ;;  %6820 = vst [vmem:[#allocation82_spill] sm:$0xff] %v4739_v43 }
 0x32f   : > { %v4599_v34 = vpop.permute.xlu1 %2718 }
 0x330   : > { %6781 = vst [vmem:[#allocation51_spill] sm:$0xff] %v4599_v34 }
 0x333   : > { %v4601_v35 = vpop.permute.xlu1 %2722 }
 0x334   : > { %6782 = vst [vmem:[#allocation52_spill] sm:$0xff] %v4601_v35  ;;  %v3451_v35 = vld [vmem:[%s4247_s13 + $0x110] sm:$0xff] }
 0x337   : > { %v4603_v36 = vpop.permute.xlu1 %2621 }
 0x338   : > { %6783 = vst [vmem:[#allocation53_spill] sm:$0xff] %v4603_v36  ;;  %v3439_v36 = vld [vmem:[%s4247_s13 + $0xf0] sm:$0xff] }
 0x378   : > { %v872_v37 = vpop.permute.xlu1 %871 }
 0x379   : > { %v882_v39 = vadd.f32 %v872_v37, %v852_v1 }
 0x37b   : > { %v3398_v63 = vmul.f32 -1.442695, %v882_v39 }
 0x37c   : > { %v870_v2 = vpop.permute.xlu1 %869 }
 0x37d   : > { %3901 = vpow2.f32 %v3398_v63  ;;  %v881_v4 = vadd.f32 %v870_v2, %v847_v6  ;;  %v4613_v63 = vpop.permute.xlu0 %2154 }
 0x37e   : > { %6788 = vst [vmem:[#allocation58_spill] sm:$0xff] %v4613_v63 }
 0x37f   : > { %v3397_v7 = vmul.f32 -1.442695, %v881_v4  ;;  %v6792_v4 = vmov 3  }
 0x380   : > { %v876_v37 = vpop.permute.xlu1 %875 }
 0x381   : > { %3903 = vpow2.f32 %v3397_v7  ;;  %v884_v6 = vadd.f32 %v876_v37, %v862_v11  ;;  %v6795_v37 = vmov 5  }
 0x383   : > { %v3400_v2 = vmul.f32 -1.442695, %v884_v6 }
 0x384   : > { %v874_v6 = vpop.permute.xlu1 %873 }
 0x385   : > { %v883_v27 = vadd.f32 %v874_v6, %v4561_v13 }
 0x387   : > { %v3902_v38 = vpop.eup %3901  ;;  %v3399_v26 = vmul.f32 -1.442695, %v883_v27 }
 0x388   : > { %v898_v20 = vadd.f32 1.0, %v3902_v38  ;;  %v6789_v38 = vmov 1  }
 0x38a   : > { %3905 = vrcp.f32 %v898_v20  ;;  %v4617_v20 = vpop.permute.xlu0 %2187 }
 0x38b   : > { %v3904_v8 = vpop.eup %3903  ;;  %6790 = vst [vmem:[#allocation59_spill] sm:$0xff] %v4617_v20 }
 0x38c   : > { %v897_v60 = vadd.f32 1.0, %v3904_v8  ;;  %v6791_v8 = vmov 6  }
 0x38e   : > { %3907 = vrcp.f32 %v897_v60  ;;  %v4621_v7 = vpop.permute.xlu0 %2207 }
 0x38f   : > { %3909 = vpow2.f32 %v3400_v2  ;;  %6793 = vst [vmem:[#allocation60_spill] sm:$0xff] %v4621_v7 }
 0x392   : > { %v4627_v2 = vpop.permute.xlu0 %2235 }
 0x393   : > { %6797 = vst [vmem:[#allocation61_spill] sm:$0xff] %v4627_v2 }
 0x394   : > { %v3906_v1 = vpop.eup %3905 }
 0x395   : > { %v918_v39 = vadd.f32 1.0, %v3906_v1  ;;  %v6794_v1 = vmov 0  }
 0x396   : > { %v4632_v25 = vpop.permute.xlu0 %2255 }
 0x397   : > { %1175 = vperm.xlu0 %3846, %v918_v39   ;;  %928 = vperm.xlu1 %3848, %v918_v39   ;;  %6799 = vst [vmem:[#allocation62_spill] sm:$0xff] %v4632_v25 }
 0x398   : > { %v3908_v60 = vpop.eup %3907 }
 0x399   : > { %v917_v11 = vadd.f32 1.0, %v3908_v60 }
 0x39a   : > { %v4636_v13 = vpop.permute.xlu0 %2283 }
 0x39b   : > { %3851 = vset.pattern.permute.xlu0 %v6549_v16  ;;  %3849 = vset.pattern.permute.xlu1 %v6789_v38  ;;  %v3910_v16 = vpop.eup %3909  ;;  %6801 = vst [vmem:[#allocation63_spill] sm:$0xff] %v4636_v13 }
 0x39c   : > { %1417 = vperm.xlu0 %3851, %v918_v39   ;;  %1054 = vperm.xlu1 %3849, %v918_v39   ;;  %v900_v60 = vadd.f32 1.0, %v3910_v16 }
 0x39e   : > { %3911 = vrcp.f32 %v900_v60  ;;  %v4640_v27 = vpop.permute.xlu0 %2352 }
 0x39f   : > { %3913 = vpow2.f32 %v3399_v26  ;;  %6802 = vst [vmem:[#allocation64_spill] sm:$0xff] %v4640_v27  ;;  %v910_v27 = vld [vmem:[%s4247_s13 + $0x8] sm:$0xff] }
 0x3a0   : > { %3853 = vset.pattern.permute.xlu0 %v6791_v8  ;;  %3850 = vset.pattern.permute.xlu1 %v6792_v4 }
 0x3a1   : > { %1659 = vperm.xlu0 %3853, %v918_v39   ;;  %1296 = vperm.xlu1 %3850, %v918_v39  }
 0x3a2   : > { %v4644_v60 = vpop.permute.xlu0 %2372 }
 0x3a3   : > { %6803 = vst [vmem:[#allocation65_spill] sm:$0xff] %v4644_v60 }
 0x3a5   : > { %3855 = vset.pattern.permute.xlu0 %v6794_v1  ;;  %3852 = vset.pattern.permute.xlu1 %v6795_v37 }
 0x3a6   : > { %1538 = vperm.xlu1 %3852, %v918_v39   ;;  %923 = vperm.xlu0 %3855, %v917_v11  }
 0x3a8   : > { %v3912_v16 = vpop.eup %3911 }
 0x3a9   : > { %v920_v6 = vadd.f32 1.0, %v3912_v16 }
 0x3aa   : > { %3854 = vset.pattern.permute.xlu1 %v6796_v28  ;;  %3856 = vset.pattern.permute.xlu0 %v6789_v38 }
 0x3ab   : > { %1780 = vperm.xlu1 %3854, %v918_v39   ;;  %1050 = vperm.xlu0 %3856, %v917_v11   ;;  %v3914_v39 = vpop.eup %3913 }
 0x3ac   : > { %v899_v26 = vadd.f32 1.0, %v3914_v39 }
 0x3ae   : > { %3915 = vrcp.f32 %v899_v26 }
 0x3af   : > { %3857 = vset.pattern.permute.xlu1 %v6798_v24  ;;  %3858 = vset.pattern.permute.xlu0 %v6792_v4 }
 0x3b0   : > { %1171 = vperm.xlu1 %3857, %v917_v11   ;;  %1292 = vperm.xlu0 %3858, %v917_v11  }
 0x3b4   : > { %3859 = vset.pattern.permute.xlu1 %v6800_v14  ;;  %3860 = vset.pattern.permute.xlu0 %v6795_v37 }
 0x3b5   : > { %1413 = vperm.xlu1 %3859, %v917_v11   ;;  %1534 = vperm.xlu0 %3860, %v917_v11  }
 0x3b8   : > { %v3916_v16 = vpop.eup %3915 }
 0x3b9   : > { %3861 = vset.pattern.permute.xlu1 %v6791_v8  ;;  %3862 = vset.pattern.permute.xlu0 %v6796_v28  ;;  %v919_v26 = vadd.f32 1.0, %v3916_v16  ;;  %v4077_v16 = vmov 39  }
 0x3ba   : > { %1655 = vperm.xlu1 %3861, %v917_v11   ;;  %1776 = vperm.xlu0 %3862, %v917_v11   ;;  %v4650_v11 = vpop.permute.xlu0 %2400 }
 0x3bb   : > { %6804 = vst [vmem:[#allocation66_spill] sm:$0xff] %v4650_v11  ;;  %v4074_v11 = vmov 13  }
 0x3be   : > { %3863 = vset.pattern.permute.xlu1 %v6794_v1  ;;  %3864 = vset.pattern.permute.xlu0 %v6789_v38  ;;  %v4654_v39 = vpop.permute.xlu0 %2420 }
 0x3bf   : > { %1062 = vperm.xlu0 %3864, %v920_v6   ;;  %938 = vperm.xlu1 %3863, %v920_v6   ;;  %6805 = vst [vmem:[#allocation67_spill] sm:$0xff] %v4654_v39  ;;  %v4078_v39 = vmov 27  }
 0x3c2   : > { %v4658_v12 = vpop.permute.xlu0 %2453 }
 0x3c3   : > { %3866 = vset.pattern.permute.xlu0 %v6792_v4  ;;  %3865 = vset.pattern.permute.xlu1 %v6798_v24  ;;  %6806 = vst [vmem:[#allocation68_spill] sm:$0xff] %v4658_v12 }
 0x3c4   : > { %1304 = vperm.xlu0 %3866, %v920_v6   ;;  %1183 = vperm.xlu1 %3865, %v920_v6  }
 0x3c6   : > { %v4662_v63 = vpop.permute.xlu0 %2473 }
 0x3c7   : > { %6807 = vst [vmem:[#allocation69_spill] sm:$0xff] %v4662_v63  ;;  %v3484_v63 = vld [vmem:[%s4247_s13 + $0x198] sm:$0xff] }
 0x3c8   : > { %3868 = vset.pattern.permute.xlu0 %v6795_v37  ;;  %3867 = vset.pattern.permute.xlu1 %v6800_v14 }
 0x3c9   : > { %1546 = vperm.xlu0 %3868, %v920_v6   ;;  %1425 = vperm.xlu1 %3867, %v920_v6  }
 0x3cd   : > { %3870 = vset.pattern.permute.xlu0 %v6796_v28  ;;  %3869 = vset.pattern.permute.xlu1 %v6791_v8 }
 0x3ce   : > { %1788 = vperm.xlu0 %3870, %v920_v6   ;;  %1667 = vperm.xlu1 %3869, %v920_v6   ;;  %v4075_v6 = vmov 32  }
 0x3d2   : > { %3871 = vset.pattern.permute.xlu0 %v6794_v1  ;;  %3873 = vset.pattern.permute.xlu1 %v6789_v38  ;;  %v4668_v38 = vld [vmem:[%s6532_s5 + $0x8] sm:$0xff]  ;;  %v4076_v1 = vmov 20  }
 0x3d3   : > { %1058 = vperm.xlu1 %3873, %v919_v26   ;;  %933 = vperm.xlu0 %3871, %v919_v26  }
 0x3d7   : > { %3874 = vset.pattern.permute.xlu1 %v6798_v24  ;;  %3872 = vset.pattern.permute.xlu0 %v4074_v11  ;;  %v4671_v24 = vpop.permute.xlu0 %2501 }
 0x3d8   : > { %1179 = vperm.xlu1 %3874, %v919_v26   ;;  %2851 = vperm.xlu0 %3872, %v4356_v31   ;;  %6808 = vst [vmem:[#allocation70_spill] sm:$0xff] %v4671_v24 }
 0x3dc   : > { %3875 = vset.pattern.permute.xlu1 %v6792_v4  ;;  %3882 = vset.pattern.permute.xlu0 %v4075_v6  ;;  %v4676_v4 = vpop.permute.xlu0 %2521 }
 0x3dd   : > { %1300 = vperm.xlu1 %3875, %v919_v26   ;;  %2637 = vperm.xlu0 %3882, %v4668_v38   ;;  %6809 = vst [vmem:[#allocation71_spill] sm:$0xff] %v4676_v4 }
 0x3e1   : > { %3876 = vset.pattern.permute.xlu1 %v6800_v14  ;;  %3884 = vset.pattern.permute.xlu0 %v4076_v1  ;;  %v4680_v14 = vpop.permute.xlu0 %2549 }
 0x3e2   : > { %1421 = vperm.xlu1 %3876, %v919_v26   ;;  %2867 = vperm.xlu0 %3884, %v4356_v31   ;;  %6810 = vst [vmem:[#allocation72_spill] sm:$0xff] %v4680_v14  ;;  %v3926_v31 = vld [vmem:[%s6532_s5] sm:$0xff]  ;;  %v4079_v14 = vmov 26  }
 0x3e6   : > { %3877 = vset.pattern.permute.xlu1 %v6795_v37  ;;  %3887 = vset.pattern.permute.xlu0 %v4077_v16  ;;  %v4686_v37 = vpop.permute.xlu0 %2573 }
 0x3e7   : > { %1542 = vperm.xlu1 %3877, %v919_v26   ;;  %2653 = vperm.xlu0 %3887, %v4668_v38   ;;  %6811 = vst [vmem:[#allocation73_spill] sm:$0xff] %v4686_v37 }
 0x3ea   : > { %v4689_v4 = vpop.permute.xlu0 %2601 }
 0x3eb   : > { %3878 = vset.pattern.permute.xlu1 %v6791_v8  ;;  %3889 = vset.pattern.permute.xlu0 %v4078_v39  ;;  %6812 = vst [vmem:[#allocation74_spill] sm:$0xff] %v4689_v4  ;;  %v3403_v4 = vld [vmem:[%s4247_s13 + $0x50] sm:$0xff] }
 0x3ec   : > { %1663 = vperm.xlu1 %3878, %v919_v26   ;;  %2883 = vperm.xlu0 %3889, %v3926_v31  }
 0x3ee   : > { %v4691_v8 = vpop.permute.xlu0 %2706 }
 0x3ef   : > { %6813 = vst [vmem:[#allocation75_spill] sm:$0xff] %v4691_v8  ;;  %v3402_v8 = vld [vmem:[%s4247_s13 + $0x48] sm:$0xff] }
 0x3f0   : > { %3879 = vset.pattern.permute.xlu1 %v6796_v28  ;;  %v4696_v28 = vpop.permute.xlu1 %2734 }
 0x3f1   : > { %1784 = vperm.xlu1 %3879, %v919_v26   ;;  %6815 = vst [vmem:[#allocation77_spill] sm:$0xff] %v4696_v28  ;;  %v4080_v26 = vmov 46   ;;  %v3420_v28 = vld [vmem:[%s4247_s13 + $0x98] sm:$0xff] }
 0x3f2   : > { %v4694_v24 = vpop.permute.xlu0 %2617  ;;  %3892 = vset.pattern.permute.xlu0 %v4080_v26 }
 0x3f3   : > { %6814 = vst [vmem:[#allocation76_spill] sm:$0xff] %v4694_v24  ;;  %2669 = vperm.xlu0 %3892, %v4668_v38  }
 0x3f5   : > { %3880 = vset.pattern.permute.xlu1 %v4074_v11 }
 0x3f6   : > { %2855 = vperm.xlu1 %3880, %v4668_v38   ;;  %v4700_v11 = vpop.permute.xlu0 %2738 }
 0x3f7   : > { %6816 = vst [vmem:[#allocation78_spill] sm:$0xff] %v4700_v11  ;;  %3894 = vset.pattern.permute.xlu0 %v4082_v0 }
 0x3f8   : > { %2899 = vperm.xlu0 %3894, %v3926_v31  }
 0x3fa   : > { %3881 = vset.pattern.permute.xlu1 %v4075_v6  ;;  %v4702_v6 = vpop.permute.xlu1 %2835 }
 0x3fb   : > { %2633 = vperm.xlu1 %3881, %v3926_v31   ;;  %6817 = vst [vmem:[#allocation79_spill] sm:$0xff] %v4702_v6  ;;  %v3498_v6 = vld [vmem:[%s4247_s13 + $0x1c8] sm:$0xff] }
 0x3fe   : > { %v4706_v48 = vpop.permute.xlu1 %2839 }
 0x3ff   : > { %3883 = vset.pattern.permute.xlu1 %v4079_v14  ;;  %v4704_v14 = vpop.permute.xlu0 %2324  ;;  %6819 = vst [vmem:[#allocation81_spill] sm:$0xff] %v4706_v48 }
 0x400   : > { %2750 = vperm.xlu1 %3883, %v3926_v31   ;;  %6818 = vst [vmem:[#allocation80_spill] sm:$0xff] %v4704_v14 }
 0x404   : > { %2754 = vperm.xlu1 %3883, %v4668_v38  }
 0x408   : > { %3885 = vset.pattern.permute.xlu1 %v4076_v1 }
 0x409   : > { %2871 = vperm.xlu1 %3885, %v4668_v38  }
 0x40d   : > { %3886 = vset.pattern.permute.xlu1 %v4077_v16 }
 0x40e   : > { %2649 = vperm.xlu1 %3886, %v3926_v31  }
 0x412   : > { %3888 = vset.pattern.permute.xlu1 %v4081_v47 }
 0x413   : > { %2766 = vperm.xlu1 %3888, %v3926_v31  }
 0x416   : > { %v929_v18 = vpop.permute.xlu1 %928  ;;  %v4708_v56 = vpop.permute.xlu0 %1175 }
 0x417   : > { %2770 = vperm.xlu1 %3888, %v4668_v38  }
 0x41b   : > { %3890 = vset.pattern.permute.xlu1 %v4078_v39  ;;  %v1055_v1 = vpop.permute.xlu1 %1054  ;;  %v4711_v13 = vpop.permute.xlu0 %1417  ;;  %v4084_v39 = vmov 47  }
 0x41c   : > { %2887 = vperm.xlu1 %3890, %v4668_v38   ;;  %3897 = vset.pattern.permute.xlu0 %v4084_v39 }
 0x420   : > { %v4714_v16 = vpop.permute.xlu1 %1296  ;;  %v4716_v11 = vpop.permute.xlu0 %1659  ;;  %3891 = vset.pattern.permute.xlu1 %v4080_v26 }
 0x421   : > { %2665 = vperm.xlu1 %3891, %v3926_v31  }
 0x425   : > { %v4718_v47 = vpop.permute.xlu1 %1538  ;;  %v924_v55 = vpop.permute.xlu0 %923  ;;  %3893 = vset.pattern.permute.xlu1 %v4083_v9 }
 0x426   : > { %2782 = vperm.xlu1 %3893, %v3926_v31   ;;  %v4765_v48 = vmul.f32 %v924_v55, %v909_v22  ;;  %v4767_v58 = vmul.f32 %v924_v55, %v910_v27  ;;  %v3468_v22 = vld [vmem:[%s4247_s13 + $0x158] sm:$0xff]  ;;  %v3418_v55 = vld [vmem:[%s4247_s13 + $0x88] sm:$0xff]  ;;  %v4785_v27 = vmul.f32 %v3451_v35, %v4711_v13  ;;  %v4803_v35 = vmul.f32 %v3484_v63, %v4716_v11  ;;  %v3499_v63 = vld [vmem:[%s4247_s13 + $0x1d0] sm:$0xff] }
 0x427   : > { %v4813_v17 = vmul.f32 %v3467_v19, %v4718_v47 }
 0x428   : > { %6823 = vst [vmem:[#allocation85_spill] sm:$0xff] %v4765_v48  ;;  %6824 = vst [vmem:[#allocation86_spill] sm:$0xff] %v4767_v58 }
 0x429   : > { %6829 = vst [vmem:[#allocation91_spill] sm:$0xff] %v4785_v27  ;;  %6834 = vst [vmem:[#allocation96_spill] sm:$0xff] %v4803_v35 }
 0x42a   : > { %v4720_v25 = vpop.permute.xlu1 %1780  ;;  %v1051_v46 = vpop.permute.xlu0 %1050  ;;  %2786 = vperm.xlu1 %3893, %v4668_v38   ;;  %6837 = vst [vmem:[#allocation99_spill] sm:$0xff] %v4813_v17 }
 0x42e   : > { %3895 = vset.pattern.permute.xlu1 %v4082_v0  ;;  %v4085_v0 = vmov 1966171168  }
 0x42f   : > { %v4723_v26 = vpop.permute.xlu1 %1171  ;;  %v4725_v3 = vpop.permute.xlu0 %1292  ;;  %2903 = vperm.xlu1 %3895, %v4668_v38   ;;  %v979_v45 = vunpack.c.l.s4 %v4085_v0  ;;  %v911_v38 = vld [vmem:[%s4247_s13 + $0x10] sm:$0xff]  ;;  %v3404_v0 = vld [vmem:[%s4247_s13 + $0x58] sm:$0xff] }
 0x430   : > { %v4760_v42 = vmul.f32 %v929_v18, %v911_v38  ;;  %v4777_v38 = vmul.f32 %v3403_v4, %v1055_v1  ;;  %v3433_v4 = vld [vmem:[%s4247_s13 + $0xc0] sm:$0xff]  ;;  %v4833_v19 = vmul.f32 %v3418_v55, %v4723_v26 }
 0x431   : > { %v980_v52 = vunpack.c.0.s8 %v979_v45  ;;  %v3436_v45 = vld [vmem:[%s4247_s13 + $0xd8] sm:$0xff] }
 0x432   : > { %6821 = vst [vmem:[#allocation83_spill] sm:$0xff] %v4760_v42  ;;  %6827 = vst [vmem:[#allocation89_spill] sm:$0xff] %v4777_v38 }
 0x433   : > { %3896 = vset.pattern.permute.xlu1 %v4084_v39  ;;  %v912_v39 = vld [vmem:[%s4247_s13 + $0x18] sm:$0xff]  ;;  %v4758_v7 = vsub.s32 %v980_v52, %v4739_v43  ;;  %v4775_v52 = vmul.f32 %v3420_v28, %v4708_v56  ;;  %v4788_v43 = vmul.f32 %v3452_v51, %v4711_v13  ;;  %v3434_v28 = vld [vmem:[%s4247_s13 + $0xc8] sm:$0xff]  ;;  %v4805_v51 = vmul.f32 %v3401_v21, %v1051_v46 }
 0x434   : > { %v4728_v9 = vpop.permute.xlu1 %1413  ;;  %v4730_v54 = vpop.permute.xlu0 %1534  ;;  %2798 = vperm.xlu1 %3896, %v3926_v31   ;;  %v3419_v31 = vld [vmem:[%s4247_s13 + $0x90] sm:$0xff]  ;;  %v4762_v34 = vmul.f32 %v929_v18, %v912_v39  ;;  %v4779_v18 = vmul.f32 %v3404_v0, %v1055_v1  ;;  %v3417_v39 = vld [vmem:[%s4247_s13 + $0x80] sm:$0xff]  ;;  %v4800_v0 = vmul.f32 %v3483_v32, %v4716_v11  ;;  %v4807_v13 = vmul.f32 %v3402_v8, %v1051_v46  ;;  %v3500_v8 = vld [vmem:[%s4247_s13 + $0x1d8] sm:$0xff] }
 0x435   : > { %v4772_v50 = vmul.f32 %v3419_v31, %v4708_v56  ;;  %6826 = vst [vmem:[#allocation88_spill] sm:$0xff] %v4775_v52  ;;  %6830 = vst [vmem:[#allocation92_spill] sm:$0xff] %v4788_v43  ;;  %v4791_v31 = vmul.f32 %v3435_v10, %v4714_v16  ;;  %v4794_v56 = vmul.f32 %v3436_v45, %v4714_v16  ;;  %v3449_v1 = vld [vmem:[%s4247_s13 + $0x100] sm:$0xff]  ;;  %v3450_v10 = vld [vmem:[%s4247_s13 + $0x108] sm:$0xff] }
 0x436   : > { %6822 = vst [vmem:[#allocation84_spill] sm:$0xff] %v4762_v34  ;;  %6828 = vst [vmem:[#allocation90_spill] sm:$0xff] %v4779_v18  ;;  %v3465_v16 = vld [vmem:[%s4247_s13 + $0x140] sm:$0xff]  ;;  %v3466_v45 = vld [vmem:[%s4247_s13 + $0x148] sm:$0xff]  ;;  %v4816_v32 = vmul.f32 %v3468_v22, %v4718_v47  ;;  %v4820_v21 = vadd.f32 %v4760_v42, %v4765_v48  ;;  %v4824_v46 = vadd.f32 %v4762_v34, %v4767_v58 }
 0x437   : > { %6825 = vst [vmem:[#allocation87_spill] sm:$0xff] %v4772_v50  ;;  %6831 = vst [vmem:[#allocation93_spill] sm:$0xff] %v4791_v31  ;;  %v3481_v11 = vld [vmem:[%s4247_s13 + $0x180] sm:$0xff]  ;;  %v4830_v14 = vmul.f32 %v3417_v39, %v4723_v26  ;;  %v4836_v47 = vmul.f32 %v3433_v4, %v4725_v3  ;;  %v4839_v22 = vmul.f32 %v3434_v28, %v4725_v3 }
 0x438   : > { %6832 = vst [vmem:[#allocation94_spill] sm:$0xff] %v4794_v56  ;;  %6833 = vst [vmem:[#allocation95_spill] sm:$0xff] %v4800_v0  ;;  %v4845_v33 = vmul.f32 %v3449_v1, %v4728_v9  ;;  %v4848_v39 = vmul.f32 %v3450_v10, %v4728_v9  ;;  %v4851_v26 = vmul.f32 %v3465_v16, %v4730_v54  ;;  %v915_v1 = vld [vmem:[%s4247_s13 + $0x30] sm:$0xff] }
 0x439   : > { %v4732_v61 = vpop.permute.xlu1 %1655  ;;  %v4734_v23 = vpop.permute.xlu0 %1776  ;;  %6835 = vst [vmem:[#allocation97_spill] sm:$0xff] %v4805_v51  ;;  %6836 = vst [vmem:[#allocation98_spill] sm:$0xff] %v4807_v13  ;;  %v4854_v55 = vmul.f32 %v3466_v45, %v4730_v54  ;;  %v4857_v3 = vmul.f32 %v3499_v63, %v4720_v25  ;;  %v4860_v4 = vmul.f32 %v3500_v8, %v4720_v25  ;;  %v916_v45 = vld [vmem:[%s4247_s13 + $0x38] sm:$0xff]  ;;  %v3407_v63 = vld [vmem:[%s4247_s13 + $0x70] sm:$0xff] }
 0x43a   : > { %6838 = vst [vmem:[#allocation100_spill] sm:$0xff] %v4816_v32  ;;  %6839 = vst [vmem:[#allocation101_spill] sm:$0xff] %v4830_v14  ;;  %v4864_v28 = vadd.f32 %v4777_v38, %v4805_v51  ;;  %v4868_v9 = vadd.f32 %v4779_v18, %v4807_v13  ;;  %v4872_v54 = vmul.f32 %v3481_v11, %v4732_v61  ;;  %v3408_v8 = vld [vmem:[%s4247_s13 + $0x78] sm:$0xff] }
 0x43b   : > { %6840 = vst [vmem:[#allocation102_spill] sm:$0xff] %v4833_v19  ;;  %6841 = vst [vmem:[#allocation103_spill] sm:$0xff] %v4836_v47  ;;  %v4875_v10 = vmul.f32 %v3482_v49, %v4732_v61  ;;  %v4878_v25 = vmul.f32 %v3497_v5, %v4734_v23  ;;  %v4881_v16 = vmul.f32 %v3498_v6, %v4734_v23  ;;  %v3423_v5 = vld [vmem:[%s4247_s13 + $0xb0] sm:$0xff]  ;;  %v3424_v6 = vld [vmem:[%s4247_s13 + $0xb8] sm:$0xff] }
 0x43c   : > { %6842 = vst [vmem:[#allocation104_spill] sm:$0xff] %v4839_v22  ;;  %6843 = vst [vmem:[#allocation105_spill] sm:$0xff] %v4845_v33  ;;  %v4888_v11 = vadd.f32 %v4772_v50, %v4830_v14  ;;  %v4892_v49 = vadd.f32 %v4775_v52, %v4833_v19  ;;  %v4896_v61 = vadd.f32 %v4791_v31, %v4836_v47 }
 0x43d   : > { %6844 = vst [vmem:[#allocation106_spill] sm:$0xff] %v4848_v39  ;;  %6845 = vst [vmem:[#allocation107_spill] sm:$0xff] %v4851_v26  ;;  %v4900_v23 = vadd.f32 %v4794_v56, %v4839_v22  ;;  %v4906_v57 = vadd.f32 %v4785_v27, %v4845_v33  ;;  %v4910_v20 = vadd.f32 %v4788_v43, %v4848_v39 }
 0x43e   : > { %v4750_v30 = vpop.permute.xlu1 %938  ;;  %v4752_v59 = vpop.permute.xlu0 %1062  ;;  %6846 = vst [vmem:[#allocation108_spill] sm:$0xff] %v4854_v55  ;;  %6847 = vst [vmem:[#allocation109_spill] sm:$0xff] %v4857_v3  ;;  %v4914_v40 = vadd.f32 %v4813_v17, %v4851_v26  ;;  %v4918_v60 = vadd.f32 %v4816_v32, %v4854_v55  ;;  %v3472_v55 = vld [vmem:[%s4247_s13 + $0x178] sm:$0xff]  ;;  %v4940_v26 = vadd.f32 %v4800_v0, %v4872_v54 }
 0x43f   : > { %6848 = vst [vmem:[#allocation110_spill] sm:$0xff] %v4860_v4  ;;  %6849 = vst [vmem:[#allocation111_spill] sm:$0xff] %v4872_v54  ;;  %v4924_v62 = vmul.f32 %v4750_v30, %v915_v1  ;;  %v4927_v24 = vmul.f32 %v4750_v30, %v916_v45  ;;  %v4930_v44 = vmul.f32 %v3407_v63, %v4752_v59  ;;  %v3487_v45 = vld [vmem:[%s4247_s13 + $0x1b0] sm:$0xff] }
 0x440   : > { %6850 = vst [vmem:[#allocation112_spill] sm:$0xff] %v4875_v10  ;;  %6851 = vst [vmem:[#allocation113_spill] sm:$0xff] %v4878_v25  ;;  %v4933_v2 = vmul.f32 %v3408_v8, %v4752_v59  ;;  %v4944_v1 = vadd.f32 %v4803_v35, %v4875_v10  ;;  %v4948_v30 = vadd.f32 %v4857_v3, %v4878_v25  ;;  %v3488_v10 = vld [vmem:[%s4247_s13 + $0x1b8] sm:$0xff] }
 0x441   : > { %6852 = vst [vmem:[#allocation114_spill] sm:$0xff] %v4881_v16  ;;  %6853 = vst [vmem:[#allocation115_spill] sm:$0xff] %v4906_v57  ;;  %v4952_v59 = vadd.f32 %v4860_v4, %v4881_v16  ;;  %v3504_v25 = vld [vmem:[%s4247_s13 + $0x1f8] sm:$0xff] }
 0x442   : > { %6854 = vst [vmem:[#allocation116_spill] sm:$0xff] %v4910_v20  ;;  %6855 = vst [vmem:[#allocation117_spill] sm:$0xff] %v4914_v40  ;;  %v3456_v40 = vld [vmem:[%s4247_s13 + $0x138] sm:$0xff]  ;;  %v3503_v20 = vld [vmem:[%s4247_s13 + $0x1f0] sm:$0xff] }
 0x443   : > { %v1184_v41 = vpop.permute.xlu1 %1183  ;;  %v1305_v37 = vpop.permute.xlu0 %1304  ;;  %6856 = vst [vmem:[#allocation118_spill] sm:$0xff] %v4918_v60  ;;  %6857 = vst [vmem:[#allocation119_spill] sm:$0xff] %v4924_v62  ;;  %v3471_v60 = vld [vmem:[%s4247_s13 + $0x170] sm:$0xff] }
 0x444   : > { %6858 = vst [vmem:[#allocation120_spill] sm:$0xff] %v4927_v24  ;;  %6859 = vst [vmem:[#allocation121_spill] sm:$0xff] %v4930_v44  ;;  %v4955_v63 = vmul.f32 %v3423_v5, %v1184_v41  ;;  %v4957_v8 = vmul.f32 %v3424_v6, %v1184_v41  ;;  %v4959_v54 = vmul.f32 %v3439_v36, %v1305_v37 }
 0x445   : > { %6860 = vst [vmem:[#allocation122_spill] sm:$0xff] %v4933_v2  ;;  %6861 = vst [vmem:[#allocation123_spill] sm:$0xff] %v4940_v26  ;;  %v4961_v26 = vmul.f32 %v3440_v15, %v1305_v37  ;;  %v958_v15 = vmax.f32 %v4760_v42, %v4924_v62  ;;  %v967_v36 = vmax.f32 %v4762_v34, %v4927_v24  ;;  %v914_v42 = vld [vmem:[%s4247_s13 + $0x28] sm:$0xff] }
 0x446   : > { %6862 = vst [vmem:[#allocation124_spill] sm:$0xff] %v4944_v1  ;;  %6863 = vst [vmem:[#allocation125_spill] sm:$0xff] %v4948_v30  ;;  %v1083_v37 = vmax.f32 %v4777_v38, %v4930_v44  ;;  %v1092_v6 = vmax.f32 %v4779_v18, %v4933_v2 }
 0x447   : > { %6864 = vst [vmem:[#allocation126_spill] sm:$0xff] %v4952_v59  ;;  %6865 = vst [vmem:[#allocation127_spill] sm:$0xff] %v4955_v63 }
 0x448   : > { %v1426_v29 = vpop.permute.xlu1 %1425  ;;  %v1547_v12 = vpop.permute.xlu0 %1546  ;;  %6866 = vst [vmem:[#allocation128_spill] sm:$0xff] %v4957_v8  ;;  %6867 = vst [vmem:[#allocation129_spill] sm:$0xff] %v4959_v54 }
 0x449   : > { %6868 = vst [vmem:[#allocation130_spill] sm:$0xff] %v4961_v26  ;;  %v4966_v16 = vmul.f32 %v3455_v53, %v1426_v29  ;;  %v4968_v59 = vmul.f32 %v3456_v40, %v1426_v29  ;;  %v4970_v5 = vmul.f32 %v3471_v60, %v1547_v12  ;;  %v4972_v41 = vmul.f32 %v3472_v55, %v1547_v12  ;;  %v3405_v53 = vld [vmem:[%s4247_s13 + $0x60] sm:$0xff]  ;;  %v3406_v60 = vld [vmem:[%s4247_s13 + $0x68] sm:$0xff] }
 0x44a   : > { %v913_v55 = vld [vmem:[%s4247_s13 + $0x20] sm:$0xff] }
 0x44b   : > { %6869 = vst [vmem:[#allocation131_spill] sm:$0xff] %v4966_v16  ;;  %6870 = vst [vmem:[#allocation132_spill] sm:$0xff] %v4968_v59 }
 0x44c   : > { %6871 = vst [vmem:[#allocation133_spill] sm:$0xff] %v4970_v5  ;;  %6872 = vst [vmem:[#allocation134_spill] sm:$0xff] %v4972_v41 }
 0x44d   : > { %v1668_v1 = vpop.permute.xlu1 %1667  ;;  %v1789_v30 = vpop.permute.xlu0 %1788 }
 0x44e   : > { %v4983_v57 = vmul.f32 %v3487_v45, %v1668_v1  ;;  %v4985_v40 = vmul.f32 %v3488_v10, %v1668_v1  ;;  %v4987_v29 = vmul.f32 %v3503_v20, %v1789_v30  ;;  %v4989_v12 = vmul.f32 %v3504_v25, %v1789_v30 }
 0x450   : > { %6873 = vst [vmem:[#allocation135_spill] sm:$0xff] %v4983_v57  ;;  %6874 = vst [vmem:[#allocation136_spill] sm:$0xff] %v4985_v40 }
 0x451   : > { %6875 = vst [vmem:[#allocation137_spill] sm:$0xff] %v4987_v29  ;;  %6876 = vst [vmem:[#allocation138_spill] sm:$0xff] %v4989_v12 }
 0x452   : > { %v1059_v45 = vpop.permute.xlu1 %1058  ;;  %v934_v38 = vpop.permute.xlu0 %933 }
 0x453   : > { %v5010_v34 = vmul.f32 %v3405_v53, %v1059_v45  ;;  %v5012_v18 = vmul.f32 %v3406_v60, %v1059_v45  ;;  %v5014_v39 = vmul.f32 %v934_v38, %v913_v55  ;;  %v5016_v10 = vmul.f32 %v934_v38, %v914_v42 }
 0x455   : > { %6877 = vst [vmem:[#allocation139_spill] sm:$0xff] %v5010_v34  ;;  %6878 = vst [vmem:[#allocation140_spill] sm:$0xff] %v5012_v18  ;;  %v1082_v53 = vmax.f32 %v4805_v51, %v5010_v34  ;;  %v1091_v60 = vmax.f32 %v4807_v13, %v5012_v18  ;;  %v1122_v42 = vadd.f32 %v4864_v28, %v5010_v34 }
 0x456   : > { %6879 = vst [vmem:[#allocation141_spill] sm:$0xff] %v5014_v39  ;;  %6880 = vst [vmem:[#allocation142_spill] sm:$0xff] %v5016_v10  ;;  %v1131_v38 = vadd.f32 %v4868_v9, %v5012_v18  ;;  %v957_v55 = vmax.f32 %v4765_v48, %v5014_v39  ;;  %v966_v45 = vmax.f32 %v4767_v58, %v5016_v10 }
 0x457   : > { %v1000_v30 = vadd.f32 %v4820_v21, %v5014_v39  ;;  %v1009_v1 = vadd.f32 %v4824_v46, %v5016_v10  ;;  %v1084_v25 = vmax.f32 %v1082_v53, %v1083_v37  ;;  %v1093_v20 = vmax.f32 %v1091_v60, %v1092_v6 }
 0x458   : > { %v1123_v13 = vadd.f32 %v1122_v42, %v4930_v44  ;;  %v1132_v28 = vadd.f32 %v1131_v38, %v4933_v2  ;;  %v959_v34 = vmax.f32 %v957_v55, %v958_v15  ;;  %v968_v9 = vmax.f32 %v966_v45, %v967_v36 }
 0x459   : > { %v1001_v18 = vadd.f32 %v1000_v30, %v4924_v62  ;;  %v1010_v51 = vadd.f32 %v1009_v1, %v4927_v24  ;;  %v1085_v48 = vrot.slane %v1084_v25, 4  ;;  %v1094_v58 = vrot.slane %v1093_v20, 4 }
 0x45a   : > { %v1124_v12 = vrot.slane %v1123_v13, 4  ;;  %v1133_v4 = vrot.slane %v1132_v28, 4  ;;  %v960_v21 = vrot.slane %v959_v34, 4  ;;  %v969_v39 = vrot.slane %v968_v9, 4 }
 0x45b   : > { %v1002_v29 = vrot.slane %v1001_v18, 4  ;;  %v1011_v46 = vrot.slane %v1010_v51, 4  ;;  %v1086_v37 = vmax.f32 %v1084_v25, %v1085_v48  ;;  %v1095_v6 = vmax.f32 %v1093_v20, %v1094_v58 }
 0x45c   : > { %v1125_v53 = vadd.f32 %v1124_v12, %v1123_v13  ;;  %v1134_v60 = vadd.f32 %v1133_v4, %v1132_v28  ;;  %v961_v42 = vmax.f32 %v959_v34, %v960_v21  ;;  %v970_v38 = vmax.f32 %v968_v9, %v969_v39 }
 0x45d   : > { %v1003_v15 = vadd.f32 %v1002_v29, %v1001_v18  ;;  %v1012_v36 = vadd.f32 %v1011_v46, %v1010_v51  ;;  %v1087_v55 = vrot.slane %v1086_v37, 2  ;;  %v1096_v30 = vrot.slane %v1095_v6, 2  ;;  %v3421_v46 = vld [vmem:[%s4247_s13 + $0xa0] sm:$0xff] }
 0x45e   : > { %v1126_v45 = vrot.slane %v1125_v53, 2  ;;  %v1135_v1 = vrot.slane %v1134_v60, 2  ;;  %v962_v2 = vrot.slane %v961_v42, 2  ;;  %v971_v44 = vrot.slane %v970_v38, 2 }
 0x45f   : > { %v1004_v24 = vrot.slane %v1003_v15, 2  ;;  %v1013_v10 = vrot.slane %v1012_v36, 2  ;;  %v1088_v62 = vmax.f32 %v1086_v37, %v1087_v55  ;;  %v1097_v3 = vmax.f32 %v1095_v6, %v1096_v30  ;;  %v1180_v37 = vpop.permute.xlu1 %1179  ;;  %v3422_v30 = vld [vmem:[%s4247_s13 + $0xa8] sm:$0xff] }
 0x460   : > { %v1127_v40 = vadd.f32 %v1126_v45, %v1125_v53  ;;  %v1136_v48 = vadd.f32 %v1135_v1, %v1134_v60  ;;  %v6881_v58 = vlaneseq  ;;  %v963_v34 = vmax.f32 %v961_v42, %v962_v2 }
 0x461   : > { %v972_v18 = vmax.f32 %v970_v38, %v971_v44  ;;  %v1005_v51 = vadd.f32 %v1004_v24, %v1003_v15  ;;  %v1014_v39 = vadd.f32 %v1013_v10, %v1012_v36  ;;  %v1089_v4 = vrot.slane %v1088_v62, 1 }
 0x462   : > { %vm5047_vm4 = vcmp.lt.s32.totalorder %v6881_v58, 256  ;;  %v1098_v29 = vrot.slane %v1097_v3, 1  ;;  %v1128_v12 = vrot.slane %v1127_v40, 1  ;;  %v1137_v20 = vrot.slane %v1136_v48, 1 }
 0x463   : > { %v964_v25 = vrot.slane %v963_v34, 1  ;;  %v973_v28 = vrot.slane %v972_v18, 1  ;;  %v1006_v9 = vrot.slane %v1005_v51, 1  ;;  %v1015_v21 = vrot.slane %v1014_v39, 1 }
 0x464   : > { %v1090_v6 = vmax.f32 %v1088_v62, %v1089_v4  ;;  %v1099_v53 = vmax.f32 %v1097_v3, %v1098_v29  ;;  %v1129_v60 = vadd.f32 %v1128_v12, %v1127_v40  ;;  %v1138_v55 = vadd.f32 %v1137_v20, %v1136_v48  ;;  %v3437_v4 = vld [vmem:[%s4247_s13 + $0xe0] sm:$0xff]  ;;  %v1301_v29 = vpop.permute.xlu1 %1300 }
 0x465   : > { %v965_v2 = vmax.f32 %v963_v34, %v964_v25  ;;  %v974_v44 = vmax.f32 %v972_v18, %v973_v28  ;;  %v1007_v24 = vadd.f32 %v1006_v9, %v1005_v51  ;;  %v1016_v42 = vadd.f32 %v1015_v21, %v1014_v39  ;;  %v3438_v9 = vld [vmem:[%s4247_s13 + $0xe8] sm:$0xff] }
 0x466   : > { %v1102_v10 = vcombine.low %v1090_v6, %v1099_v53  ;;  %v1139_v38 = vmul.f32 0.03125, %v1129_v60  ;;  %v1140_v15 = vmul.f32 0.03125, %v1138_v55  ;;  %v5053_v36 = vmul.f32 %v3421_v46, %v1180_v37 }
 0x467   : > { %v977_v45 = vcombine.low %v965_v2, %v974_v44  ;;  %v1018_v1 = vmul.f32 0.03125, %v1007_v24  ;;  %v1019_v58 = vmul.f32 0.03125, %v1016_v42  ;;  %v5055_v35 = vmul.f32 %v3422_v30, %v1180_v37 }
 0x468   : > { %6884 = vst [vmem:[#allocation143_spill] sm:$0xff] %v5053_v36  ;;  %v1109_v62 = vrot.slane %v1102_v10, %v4758_v7  ;;  %v1143_v3 = vcombine.low %v1139_v38, %v1140_v15  ;;  %v1203_v40 = vmax.f32 %v4830_v14, %v5053_v36  ;;  %v1243_v48 = vadd.f32 %v4888_v11, %v5053_v36 }
 0x469   : > { %6885 = vst [vmem:[#allocation144_spill] sm:$0xff] %v5055_v35  ;;  %v984_v34 = vrot.slane %v977_v45, %v4758_v7  ;;  %v1022_v18 = vcombine.low %v1018_v1, %v1019_v58  ;;  %v1212_v51 = vmax.f32 %v4833_v19, %v5055_v35  ;;  %v1252_v39 = vadd.f32 %v4892_v49, %v5055_v35 }
 0x46a   : > { %v1116_v12 = vrot.slane %v1109_v62, %v4758_v7  ;;  %v1150_v20 = vrot.slane %v1143_v3, %v4758_v7  ;;  %v6886_v25 = vmax.f32 %v4772_v50, %v4955_v63  ;;  %v1244_v11 = vadd.f32 %v1243_v48, %v4955_v63 }
 0x46b   : > { %v991_v58 = vrot.slane %v984_v34, %v4758_v7  ;;  %v1029_v21 = vrot.slane %v1022_v18, %v4758_v7  ;;  %v6887_v49 = vmax.f32 %v4775_v52, %v4957_v8  ;;  %v1253_v37 = vadd.f32 %v1252_v39, %v4957_v8 }
 0x46c   : > { %v1205_v28 = vmax.f32 %v1203_v40, %v6886_v25  ;;  %1119 = vst.msk [vmem:[#allocation3 + $0x1] ss:$8 sm:$0x3] %vm5047_vm4, %v1116_v12  ;;  %v1157_v6 = vrot.slane %v1150_v20, %v4758_v7  ;;  %v1245_v60 = vrot.slane %v1244_v11, 4  ;;  %v5084_v55 = vmul.f32 %v3437_v4, %v1301_v29 }
 0x46d   : > { %v1214_v46 = vmax.f32 %v1212_v51, %v6887_v49  ;;  %997 = vst.msk [vmem:[#allocation3] ss:$8 sm:$0x3] %vm5047_vm4, %v991_v58  ;;  %v1036_v30 = vrot.slane %v1029_v21, %v4758_v7  ;;  %v1254_v44 = vrot.slane %v1253_v37, 4  ;;  %v5089_v24 = vmul.f32 %v3438_v9, %v1301_v29 }
 0x46e   : > { %v1206_v53 = vrot.slane %v1205_v28, 4  ;;  %6888 = vst [vmem:[#allocation145_spill] sm:$0xff] %v5084_v55  ;;  %1160 = vst.msk [vmem:[#allocation3 + $0x11] ss:$8 sm:$0x3] %vm5047_vm4, %v1157_v6  ;;  %v1246_v10 = vadd.f32 %v1245_v60, %v1244_v11  ;;  %v1324_v38 = vmax.f32 %v4836_v47, %v5084_v55  ;;  %v1364_v15 = vadd.f32 %v4896_v61, %v5084_v55  ;;  %v6973_v55 = vld [vmem:[#allocation53_spill] sm:$0xff] }
 0x46f   : > { %v1215_v2 = vrot.slane %v1214_v46, 4  ;;  %6889 = vst [vmem:[#allocation146_spill] sm:$0xff] %v5089_v24  ;;  %1039 = vst.msk [vmem:[#allocation3 + $0x10] ss:$8 sm:$0x3] %vm5047_vm4, %v1036_v30  ;;  %v1255_v1 = vadd.f32 %v1254_v44, %v1253_v37  ;;  %v1333_v62 = vmax.f32 %v4839_v22, %v5089_v24  ;;  %v1373_v3 = vadd.f32 %v4900_v23, %v5089_v24  ;;  %v3453_v44 = vld [vmem:[%s4247_s13 + $0x120] sm:$0xff] }
 0x470   : > { %v1207_v42 = vmax.f32 %v1205_v28, %v1206_v53  ;;  %v1247_v48 = vrot.slane %v1246_v10, 2  ;;  %v6890_v34 = vmax.f32 %v4791_v31, %v4959_v54  ;;  %v1365_v51 = vadd.f32 %v1364_v15, %v4959_v54 }
 0x471   : > { %v1216_v45 = vmax.f32 %v1214_v46, %v1215_v2  ;;  %v1256_v39 = vrot.slane %v1255_v1, 2  ;;  %v6891_v4 = vmax.f32 %v4794_v56, %v4961_v26  ;;  %v1374_v12 = vadd.f32 %v1373_v3, %v4961_v26 }
 0x472   : > { %v1208_v40 = vrot.slane %v1207_v42, 2  ;;  %v1326_v18 = vmax.f32 %v1324_v38, %v6890_v34  ;;  %v1248_v25 = vadd.f32 %v1247_v48, %v1246_v10  ;;  %v1366_v28 = vrot.slane %v1365_v51, 4  ;;  %v1422_v38 = vpop.permute.xlu1 %1421  ;;  %v3454_v48 = vld [vmem:[%s4247_s13 + $0x128] sm:$0xff] }
 0x473   : > { %v1217_v61 = vrot.slane %v1216_v45, 2  ;;  %v1335_v29 = vmax.f32 %v1333_v62, %v6891_v4  ;;  %v1257_v9 = vadd.f32 %v1256_v39, %v1255_v1  ;;  %v1375_v21 = vrot.slane %v1374_v12, 4 }
 0x474   : > { %v1209_v20 = vmax.f32 %v1207_v42, %v1208_v40  ;;  %v1327_v23 = vrot.slane %v1326_v18, 4  ;;  %v1249_v46 = vrot.slane %v1248_v25, 1  ;;  %v1367_v6 = vadd.f32 %v1366_v28, %v1365_v51 }
 0x475   : > { %v1218_v11 = vmax.f32 %v1216_v45, %v1217_v61  ;;  %v1336_v58 = vrot.slane %v1335_v29, 4  ;;  %v1258_v60 = vrot.slane %v1257_v9, 1  ;;  %v1376_v2 = vadd.f32 %v1375_v21, %v1374_v12 }
 0x476   : > { %v1210_v49 = vrot.slane %v1209_v20, 1  ;;  %v1328_v37 = vmax.f32 %v1326_v18, %v1327_v23  ;;  %v1250_v15 = vadd.f32 %v1249_v46, %v1248_v25  ;;  %v1368_v62 = vrot.slane %v1367_v6, 2 }
 0x477   : > { %v1219_v53 = vrot.slane %v1218_v11, 1  ;;  %v1337_v30 = vmax.f32 %v1335_v29, %v1336_v58  ;;  %v1259_v45 = vadd.f32 %v1258_v60, %v1257_v9  ;;  %v1377_v40 = vrot.slane %v1376_v2, 2  ;;  %v6895_v60 = vld [vmem:[#allocation106_spill] sm:$0xff] }
 0x478   : > { %v1211_v42 = vmax.f32 %v1209_v20, %v1210_v49  ;;  %v1329_v10 = vrot.slane %v1328_v37, 2  ;;  %v1260_v34 = vmul.f32 0.03125, %v1250_v15  ;;  %v1369_v18 = vadd.f32 %v1368_v62, %v1367_v6  ;;  %v1543_v49 = vpop.permute.xlu1 %1542  ;;  %v3469_v15 = vld [vmem:[%s4247_s13 + $0x160] sm:$0xff] }
 0x479   : > { %v1220_v3 = vmax.f32 %v1218_v11, %v1219_v53  ;;  %v1338_v1 = vrot.slane %v1337_v30, 2  ;;  %v5113_v39 = vmul.f32 %v3453_v44, %v1422_v38  ;;  %v1261_v4 = vmul.f32 0.03125, %v1259_v45 }
 0x47a   : > { %v1330_v61 = vmax.f32 %v1328_v37, %v1329_v10  ;;  %v1378_v12 = vadd.f32 %v1377_v40, %v1376_v2  ;;  %v1370_v28 = vrot.slane %v1369_v18, 1  ;;  %v5115_v20 = vmul.f32 %v3454_v48, %v1422_v38  ;;  %v3470_v48 = vld [vmem:[%s4247_s13 + $0x168] sm:$0xff] }
 0x47b   : > { %6892 = vst [vmem:[#allocation147_spill] sm:$0xff] %v5113_v39  ;;  %v1223_v51 = vcombine.low %v1211_v42, %v1220_v3  ;;  %v1339_v29 = vmax.f32 %v1337_v30, %v1338_v1  ;;  %v1445_v25 = vmax.f32 %v4845_v33, %v5113_v39  ;;  %v1264_v9 = vcombine.low %v1260_v34, %v1261_v4  ;;  %v6897_v1 = vld [vmem:[#allocation115_spill] sm:$0xff] }
 0x47c   : > { %v1331_v23 = vrot.slane %v1330_v61, 1  ;;  %6893 = vst [vmem:[#allocation148_spill] sm:$0xff] %v5115_v20  ;;  %v1379_v21 = vrot.slane %v1378_v12, 1  ;;  %v1371_v37 = vadd.f32 %v1370_v28, %v1369_v18  ;;  %v6894_v6 = vmax.f32 %v4785_v27, %v4966_v16  ;;  %v6964_v27 = vld [vmem:[#allocation32_spill] sm:$0xff] }
 0x47d   : > { %v1230_v11 = vrot.slane %v1223_v51, %v4758_v7  ;;  %v1340_v58 = vrot.slane %v1339_v29, 1  ;;  %v1454_v30 = vmax.f32 %v6895_v60, %v5115_v20  ;;  %v1271_v44 = vrot.slane %v1264_v9, %v4758_v7  ;;  %v6898_v51 = vld [vmem:[#allocation116_spill] sm:$0xff] }
 0x47e   : > { %v1332_v46 = vmax.f32 %v1330_v61, %v1331_v23  ;;  %v1447_v53 = vmax.f32 %v1445_v25, %v6894_v6  ;;  %v1380_v42 = vadd.f32 %v1379_v21, %v1378_v12  ;;  %v1381_v10 = vmul.f32 0.03125, %v1371_v37  ;;  %v1664_v21 = vpop.permute.xlu1 %1663 }
 0x47f   : > { %v1237_v2 = vrot.slane %v1230_v11, %v4758_v7  ;;  %v1341_v38 = vmax.f32 %v1339_v29, %v1340_v58  ;;  %v6896_v3 = vmax.f32 %v4788_v43, %v4968_v59  ;;  %v1485_v40 = vadd.f32 %v6897_v1, %v5113_v39 }
 0x480   : > { %v1448_v62 = vrot.slane %v1447_v53, 4  ;;  %v1278_v34 = vrot.slane %v1271_v44, %v4758_v7  ;;  %v1382_v18 = vmul.f32 0.03125, %v1380_v42  ;;  %v1494_v4 = vadd.f32 %v6898_v51, %v5115_v20  ;;  %v6902_v42 = vld [vmem:[#allocation108_spill] sm:$0xff] }
 0x481   : > { %v1456_v45 = vmax.f32 %v1454_v30, %v6896_v3  ;;  %1240 = vst.msk [vmem:[#allocation3 + $0x2] ss:$8 sm:$0x3] %vm5047_vm4, %v1237_v2  ;;  %v1344_v61 = vcombine.low %v1332_v46, %v1341_v38  ;;  %v1486_v23 = vadd.f32 %v1485_v40, %v4966_v16  ;;  %v5140_v28 = vmul.f32 %v3469_v15, %v1543_v49  ;;  %v6958_v20 = vld [vmem:[#allocation76_spill] sm:$0xff] }
 0x482   : > { %v1449_v29 = vmax.f32 %v1447_v53, %v1448_v62  ;;  %1281 = vst.msk [vmem:[#allocation3 + $0x12] ss:$8 sm:$0x3] %vm5047_vm4, %v1278_v34  ;;  %v1385_v11 = vcombine.low %v1381_v10, %v1382_v18  ;;  %v1495_v9 = vadd.f32 %v1494_v4, %v4968_v59  ;;  %v5146_v58 = vmul.f32 %v3470_v48, %v1543_v49  ;;  %v6901_v53 = vld [vmem:[#allocation107_spill] sm:$0xff]  ;;  %v6956_v59 = vld [vmem:[#allocation14_spill] sm:$0xff] }
 0x483   : > { %v1457_v12 = vrot.slane %v1456_v45, 4  ;;  %6899 = vst [vmem:[#allocation115_spill] sm:$0xff] %v5140_v28  ;;  %v1351_v25 = vrot.slane %v1344_v61, %v4758_v7  ;;  %v1487_v6 = vrot.slane %v1486_v23, 4  ;;  %v1566_v30 = vmax.f32 %v6901_v53, %v5140_v28  ;;  %v6905_v61 = vld [vmem:[#allocation117_spill] sm:$0xff] }
 0x484   : > { %6900 = vst [vmem:[#allocation116_spill] sm:$0xff] %v5146_v58  ;;  %v1450_v46 = vrot.slane %v1449_v29, 2  ;;  %v1392_v44 = vrot.slane %v1385_v11, %v4758_v7  ;;  %v1496_v38 = vrot.slane %v1495_v9, 4  ;;  %v1575_v15 = vmax.f32 %v6902_v42, %v5146_v58 }
 0x485   : > { %v1458_v37 = vmax.f32 %v1456_v45, %v1457_v12  ;;  %v1358_v2 = vrot.slane %v1351_v25, %v4758_v7  ;;  %v1488_v3 = vadd.f32 %v1487_v6, %v1486_v23  ;;  %v6903_v49 = vmax.f32 %v4813_v17, %v4970_v5  ;;  %v3485_v6 = vld [vmem:[%s4247_s13 + $0x1a0] sm:$0xff] }
 0x486   : > { %v1451_v10 = vmax.f32 %v1449_v29, %v1450_v46  ;;  %v1399_v1 = vrot.slane %v1392_v44, %v4758_v7  ;;  %v1497_v40 = vadd.f32 %v1496_v38, %v1495_v9  ;;  %v6904_v48 = vmax.f32 %v4816_v32, %v4972_v41  ;;  %v6906_v9 = vld [vmem:[#allocation118_spill] sm:$0xff] }
 0x487   : > { %v1459_v62 = vrot.slane %v1458_v37, 2  ;;  %v1568_v45 = vmax.f32 %v1566_v30, %v6903_v49  ;;  %1361 = vst.msk [vmem:[#allocation3 + $0x3] ss:$8 sm:$0x3] %vm5047_vm4, %v1358_v2  ;;  %v1606_v18 = vadd.f32 %v6905_v61, %v5140_v28  ;;  %v1489_v29 = vrot.slane %v1488_v3, 2  ;;  %v5171_v30 = vpop.permute.xlu1 %1784 }
 0x488   : > { %v1577_v34 = vmax.f32 %v1575_v15, %v6904_v48  ;;  %v1452_v51 = vrot.slane %v1451_v10, 1  ;;  %1402 = vst.msk [vmem:[#allocation3 + $0x13] ss:$8 sm:$0x3] %vm5047_vm4, %v1399_v1  ;;  %v1498_v23 = vrot.slane %v1497_v40, 2  ;;  %v1615_v46 = vadd.f32 %v6906_v9, %v5146_v58  ;;  %v3486_v1 = vld [vmem:[%s4247_s13 + $0x1a8] sm:$0xff] }
 0x489   : > { %v1460_v4 = vmax.f32 %v1458_v37, %v1459_v62  ;;  %v1569_v12 = vrot.slane %v1568_v45, 4  ;;  %v1607_v11 = vadd.f32 %v1606_v18, %v4970_v5  ;;  %v1490_v38 = vadd.f32 %v1489_v29, %v1488_v3 }
 0x48a   : > { %v1578_v25 = vrot.slane %v1577_v34, 4  ;;  %v1453_v2 = vmax.f32 %v1451_v10, %v1452_v51  ;;  %v1499_v15 = vadd.f32 %v1498_v23, %v1497_v40  ;;  %v1616_v48 = vadd.f32 %v1615_v46, %v4972_v41  ;;  %v6910_v46 = vld [vmem:[#allocation111_spill] sm:$0xff] }
 0x48b   : > { %v1461_v44 = vrot.slane %v1460_v4, 1  ;;  %v1570_v37 = vmax.f32 %v1568_v45, %v1569_v12  ;;  %v1608_v49 = vrot.slane %v1607_v11, 4  ;;  %v1491_v28 = vrot.slane %v1490_v38, 1  ;;  %v5177_v42 = vpop.permute.xlu1 %2855 }
 0x48c   : > { %v1579_v62 = vmax.f32 %v1577_v34, %v1578_v25  ;;  %v5175_v18 = vmul.f32 %v3485_v6, %v1664_v21  ;;  %v1500_v5 = vrot.slane %v1499_v15, 1  ;;  %v1617_v17 = vrot.slane %v1616_v48, 4  ;;  %6908 = vst [vmem:[#allocation118_spill] sm:$0xff] %v5177_v42 }
 0x48d   : > { %v1462_v61 = vmax.f32 %v1460_v4, %v1461_v44  ;;  %v1571_v32 = vrot.slane %v1570_v37, 2  ;;  %v1609_v58 = vadd.f32 %v1608_v49, %v1607_v11  ;;  %v1492_v3 = vadd.f32 %v1491_v28, %v1490_v38 }
 0x48e   : > { %6907 = vst [vmem:[#allocation117_spill] sm:$0xff] %v5175_v18  ;;  %v1580_v9 = vrot.slane %v1579_v62, 2  ;;  %v5179_v40 = vmul.f32 %v3486_v1, %v1664_v21  ;;  %v1501_v34 = vadd.f32 %v1500_v5, %v1499_v15  ;;  %v1618_v12 = vadd.f32 %v1617_v17, %v1616_v48  ;;  %v6912_v17 = vld [vmem:[#allocation112_spill] sm:$0xff] }
 0x48f   : > { %v1465_v10 = vcombine.low %v1453_v2, %v1462_v61  ;;  %v1572_v45 = vmax.f32 %v1570_v37, %v1571_v32  ;;  %v1610_v29 = vrot.slane %v1609_v58, 2  ;;  %v1502_v23 = vmul.f32 0.03125, %v1492_v3  ;;  %v5190_v48 = vpop.permute.xlu1 %2633  ;;  %v6913_v1 = vld [vmem:[#allocation96_spill] sm:$0xff]  ;;  %v6916_v3 = vld [vmem:[#allocation123_spill] sm:$0xff] }
 0x490   : > { %6909 = vst [vmem:[#allocation149_spill] sm:$0xff] %v5179_v40  ;;  %v1581_v51 = vmax.f32 %v1579_v62, %v1580_v9  ;;  %v1687_v6 = vmax.f32 %v6910_v46, %v5175_v18  ;;  %v1503_v11 = vmul.f32 0.03125, %v1501_v34  ;;  %v1619_v41 = vrot.slane %v1618_v12, 2  ;;  %v6914_v61 = vld [vmem:[#allocation136_spill] sm:$0xff]  ;;  %v6955_v46 = vld [vmem:[#allocation61_spill] sm:$0xff] }
 0x491   : > { %v1472_v4 = vrot.slane %v1465_v10, %v4758_v7  ;;  %v1573_v25 = vrot.slane %v1572_v45, 1  ;;  %v1611_v49 = vadd.f32 %v1610_v29, %v1609_v58  ;;  %v6911_v5 = vmax.f32 %v4800_v0, %v4983_v57  ;;  %v6917_v34 = vld [vmem:[#allocation124_spill] sm:$0xff] }
 0x492   : > { %v1582_v44 = vrot.slane %v1581_v51, 1  ;;  %v1696_v2 = vmax.f32 %v6912_v17, %v5179_v40  ;;  %v1506_v38 = vcombine.low %v1502_v23, %v1503_v11  ;;  %v1620_v62 = vadd.f32 %v1619_v41, %v1618_v12 }
 0x493   : > { %v1479_v28 = vrot.slane %v1472_v4, %v4758_v7  ;;  %v1574_v32 = vmax.f32 %v1572_v45, %v1573_v25  ;;  %v1689_v21 = vmax.f32 %v1687_v6, %v6911_v5  ;;  %v1612_v15 = vrot.slane %v1611_v49, 1 }
 0x494   : > { %v1583_v37 = vmax.f32 %v1581_v51, %v1582_v44  ;;  %v6915_v9 = vmax.f32 %v6913_v1, %v6914_v61  ;;  %v1727_v45 = vadd.f32 %v6916_v3, %v5175_v18  ;;  %v1736_v51 = vadd.f32 %v6917_v34, %v5179_v40  ;;  %v3501_v44 = vld [vmem:[%s4247_s13 + $0x1e0] sm:$0xff] }
 0x495   : > { %1482 = vst.msk [vmem:[#allocation3 + $0x4] ss:$8 sm:$0x3] %vm5047_vm4, %v1479_v28  ;;  %v1690_v58 = vrot.slane %v1689_v21, 4  ;;  %v1513_v29 = vrot.slane %v1506_v38, %v4758_v7  ;;  %v1613_v12 = vadd.f32 %v1612_v15, %v1611_v49  ;;  %v1621_v4 = vrot.slane %v1620_v62, 1  ;;  %v3502_v28 = vld [vmem:[%s4247_s13 + $0x1e8] sm:$0xff] }
 0x496   : > { %v1698_v10 = vmax.f32 %v1696_v2, %v6915_v9  ;;  %v1586_v41 = vcombine.low %v1574_v32, %v1583_v37  ;;  %v1728_v6 = vadd.f32 %v1727_v45, %v4983_v57  ;;  %v1737_v11 = vadd.f32 %v1736_v51, %v6914_v61  ;;  %s4087_s13 = smov 48  }
 0x497   : > { %v1691_v23 = vmax.f32 %v1689_v21, %v1690_v58  ;;  %v1520_v5 = vrot.slane %v1513_v29, %v4758_v7  ;;  %v1622_v9 = vadd.f32 %v1621_v4, %v1620_v62  ;;  %v1623_v3 = vmul.f32 0.03125, %v1613_v12  ;;  %v5217_v58 = vpop.permute.xlu1 %2750  ;;  %v6921_v4 = vld [vmem:[#allocation114_spill] sm:$0xff] }
 0x498   : > { %v1699_v25 = vrot.slane %v1698_v10, 4  ;;  %v1593_v2 = vrot.slane %v1586_v41, %v4758_v7  ;;  %v1729_v38 = vrot.slane %v1728_v6, 4  ;;  %v1738_v32 = vrot.slane %v1737_v11, 4  ;;  %v6920_v41 = vld [vmem:[#allocation113_spill] sm:$0xff] }
 0x499   : > { %v1692_v34 = vrot.slane %v1691_v23, 2  ;;  %1523 = vst.msk [vmem:[#allocation3 + $0x14] ss:$8 sm:$0x3] %vm5047_vm4, %v1520_v5  ;;  %v1624_v21 = vmul.f32 0.03125, %v1622_v9  ;;  %v5212_v37 = vmul.f32 %v3501_v44, %v5171_v30  ;;  %v5215_v15 = vmul.f32 %v3502_v28, %v5171_v30  ;;  %v6922_v44 = vld [vmem:[#allocation125_spill] sm:$0xff] }
 0x49a   : > { %v1700_v40 = vmax.f32 %v1698_v10, %v1699_v25  ;;  %v1600_v49 = vrot.slane %v1593_v2, %v4758_v7  ;;  %v1730_v51 = vadd.f32 %v1729_v38, %v1728_v6  ;;  %v1739_v10 = vadd.f32 %v1738_v32, %v1737_v11  ;;  %v6923_v11 = vld [vmem:[#allocation109_spill] sm:$0xff]  ;;  %v6927_v32 = vld [vmem:[#allocation138_spill] sm:$0xff] }
 0x49b   : > { %6918 = vst [vmem:[#allocation123_spill] sm:$0xff] %v5212_v37  ;;  %6919 = vst [vmem:[#allocation124_spill] sm:$0xff] %v5215_v15  ;;  %v1693_v62 = vmax.f32 %v1691_v23, %v1692_v34  ;;  %v1627_v29 = vcombine.low %v1623_v3, %v1624_v21  ;;  %v1808_v12 = vmax.f32 %v6920_v41, %v5212_v37  ;;  %v6924_v9 = vld [vmem:[#allocation137_spill] sm:$0xff]  ;;  %v6926_v3 = vld [vmem:[#allocation110_spill] sm:$0xff]  ;;  %v5238_v1 = vpop.permute.xlu1 %2754 }
 0x49c   : > { %v1701_v45 = vrot.slane %v1700_v40, 2  ;;  %1603 = vst.msk [vmem:[#allocation3 + $0x5] ss:$8 sm:$0x3] %vm5047_vm4, %v1600_v49  ;;  %v1817_v25 = vmax.f32 %v6921_v4, %v5215_v15  ;;  %v1848_v30 = vadd.f32 %v6922_v44, %v5212_v37  ;;  %v1731_v2 = vrot.slane %v1730_v51, 2  ;;  %v5235_v37 = vpop.permute.xlu0 %2851 }
 0x49d   : > { %v1694_v28 = vrot.slane %v1693_v62, 1  ;;  %v1740_v23 = vrot.slane %v1739_v10, 2  ;;  %v1634_v6 = vrot.slane %v1627_v29, %v4758_v7  ;;  %v6925_v34 = vmax.f32 %v6923_v11, %v6924_v9  ;;  %6929 = vst [vmem:[#allocation125_spill] sm:$0xff] %v5235_v37 }
 0x49e   : > { %v1702_v5 = vmax.f32 %v1700_v40, %v1701_v45  ;;  %v6928_v49 = vmax.f32 %v6926_v3, %v6927_v32  ;;  %v1849_v41 = vadd.f32 %v1848_v30, %v6924_v9  ;;  %v1732_v57 = vadd.f32 %v1731_v2, %v1730_v51 }
 0x49f   : > { %v1810_v38 = vmax.f32 %v1808_v12, %v6925_v34  ;;  %v1695_v4 = vmax.f32 %v1693_v62, %v1694_v28  ;;  %v1741_v44 = vadd.f32 %v1740_v23, %v1739_v10  ;;  %v1641_v40 = vrot.slane %v1634_v6, %v4758_v7 }
 0x4a0   : > { %v1819_v21 = vmax.f32 %v1817_v25, %v6928_v49  ;;  %v1703_v61 = vrot.slane %v1702_v5, 1  ;;  %v1850_v18 = vrot.slane %v1849_v41, 4  ;;  %v1733_v34 = vrot.slane %v1732_v57, 1  ;;  %v6930_v25 = vld [vmem:[#allocation126_spill] sm:$0xff]  ;;  %v5246_v17 = vpop.permute.xlu0 %2637 }
 0x4a1   : > { %v1811_v45 = vrot.slane %v1810_v38, 4  ;;  %v1742_v11 = vrot.slane %v1741_v44, 1  ;;  %v1857_v49 = vadd.f32 %v6930_v25, %v5215_v15  ;;  %1644 = vst.msk [vmem:[#allocation3 + $0x15] ss:$8 sm:$0x3] %vm5047_vm4, %v1641_v40  ;;  %v4086_v6 = vmov 41  }
 0x4a2   : > { %v1820_v29 = vrot.slane %v1819_v21, 4  ;;  %v1704_v12 = vmax.f32 %v1702_v5, %v1703_v61  ;;  %v1851_v10 = vadd.f32 %v1850_v18, %v1849_v41  ;;  %v1734_v28 = vadd.f32 %v1733_v34, %v1732_v57  ;;  %3898 = vset.pattern.permute.xlu1 %v4086_v6  ;;  %v5248_v41 = vpop.permute.xlu1 %2871 }
 0x4a3   : > { %v1812_v62 = vmax.f32 %v1810_v38, %v1811_v45  ;;  %v1743_v2 = vadd.f32 %v1742_v11, %v1741_v44  ;;  %v1858_v23 = vadd.f32 %v1857_v49, %v6927_v32  ;;  %6931 = vst [vmem:[#allocation126_spill] sm:$0xff] %v5248_v41 }
 0x4a4   : > { %v1821_v51 = vmax.f32 %v1819_v21, %v1820_v29  ;;  %v1707_v30 = vcombine.low %v1695_v4, %v1704_v12  ;;  %v1852_v5 = vrot.slane %v1851_v10, 2  ;;  %v1744_v0 = vmul.f32 0.03125, %v1734_v28 }
 0x4a5   : > { %v1813_v9 = vrot.slane %v1812_v62, 2  ;;  %v1745_v25 = vmul.f32 0.03125, %v1743_v2  ;;  %v1859_v15 = vrot.slane %v1858_v23, 4 }
 0x4a6   : > { %v1822_v61 = vrot.slane %v1821_v51, 2  ;;  %v1714_v3 = vrot.slane %v1707_v30, %v4758_v7  ;;  %v1853_v18 = vadd.f32 %v1852_v5, %v1851_v10  ;;  %v5255_v10 = vpop.permute.xlu0 %2867 }
 0x4a7   : > { %v1814_v38 = vmax.f32 %v1812_v62, %v1813_v9  ;;  %v1748_v4 = vcombine.low %v1744_v0, %v1745_v25  ;;  %v1860_v11 = vadd.f32 %v1859_v15, %v1858_v23  ;;  %6932 = vst [vmem:[#allocation150_spill] sm:$0xff] %v5255_v10  ;;  %v5257_v0 = vpop.permute.xlu1 %2649 }
 0x4a8   : > { %v1823_v21 = vmax.f32 %v1821_v51, %v1822_v61  ;;  %v1721_v57 = vrot.slane %v1714_v3, %v4758_v7  ;;  %v1854_v45 = vrot.slane %v1853_v18, 1  ;;  %6933 = vst [vmem:[#allocation151_spill] sm:$0xff] %v5257_v0 }
 0x4a9   : > { %v1815_v44 = vrot.slane %v1814_v38, 1  ;;  %v1755_v29 = vrot.slane %v1748_v4, %v4758_v7  ;;  %v1861_v12 = vrot.slane %v1860_v11, 2 }
 0x4aa   : > { %v1824_v40 = vrot.slane %v1823_v21, 1  ;;  %1724 = vst.msk [vmem:[#allocation3 + $0x6] ss:$8 sm:$0x3] %vm5047_vm4, %v1721_v57  ;;  %v1855_v62 = vadd.f32 %v1854_v45, %v1853_v18  ;;  %v5263_v61 = vpop.permute.xlu0 %2653 }
 0x4ab   : > { %v1816_v34 = vmax.f32 %v1814_v38, %v1815_v44  ;;  %v1762_v9 = vrot.slane %v1755_v29, %v4758_v7  ;;  %v1862_v51 = vadd.f32 %v1861_v12, %v1860_v11  ;;  %6934 = vst [vmem:[#allocation152_spill] sm:$0xff] %v5263_v61  ;;  %v5267_v5 = vpop.permute.xlu1 %2766  ;;  %v7006_v61 = vld [vmem:[#allocation81_spill] sm:$0xff] }
 0x4ac   : > { %v1825_v49 = vmax.f32 %v1823_v21, %v1824_v40  ;;  %v1865_v2 = vmul.f32 0.03125, %v1855_v62  ;;  %6935 = vst [vmem:[#allocation153_spill] sm:$0xff] %v5267_v5  ;;  %v3928_v62 = vld [vmem:[%s6532_s5 + $0x8] sm:$0xff]  ;;  %v6996_v5 = vld [vmem:[#allocation80_spill] sm:$0xff] }
 0x4ad   : > { %1765 = vst.msk [vmem:[#allocation3 + $0x16] ss:$8 sm:$0x3] %vm5047_vm4, %v1762_v9  ;;  %v1863_v15 = vrot.slane %v1862_v51, 1 }
 0x4ae   : > { %v1828_v3 = vcombine.low %v1816_v34, %v1825_v49  ;;  %v2884_v18 = vpop.permute.xlu0 %2883 }
 0x4af   : > { %v1864_v28 = vadd.f32 %v1863_v15, %v1862_v51  ;;  %v5271_v57 = vpop.permute.xlu1 %2770  ;;  %v4093_v51 = vmov 48  }
 0x4b0   : > { %v1835_v30 = vrot.slane %v1828_v3, %v4758_v7  ;;  %6936 = vst [vmem:[#allocation154_spill] sm:$0xff] %v5271_v57  ;;  %v6995_v57 = vld [vmem:[#allocation19_spill] sm:$0xff] }
 0x4b1   : > { %v1866_v6 = vmul.f32 0.03125, %v1864_v28  ;;  %v6948_v28 = vlaneseq }
 0x4b2   : > { %v1842_v23 = vrot.slane %v1835_v30, %v4758_v7 }
 0x4b3   : > { %v1869_v25 = vcombine.low %v1865_v2, %v1866_v6  ;;  %v2888_v13 = vpop.permute.xlu1 %2887  ;;  %v5352_v2 = vand.u32 127, %v6948_v28 }
 0x4b4   : > { %1845 = vst.msk [vmem:[#allocation3 + $0x7] ss:$8 sm:$0x3] %vm5047_vm4, %v1842_v23 }
 0x4b5   : > { %v1876_v38 = vrot.slane %v1869_v25, %v4758_v7  ;;  %6949 = vst [vmem:[#allocation166_spill] sm:$0xff] %v5352_v2  ;;  %v5357_v6 = vadd.s32 128, %v5352_v2  ;;  %v1895_v25 = vshra.s32 %v5352_v2, 4  ;;  %vm1907_vm7 = vcmp.lt.s32.totalorder %v5352_v2, 48 }
 0x4b6   : > { %vm1932_vm11 = vcmp.lt.s32.totalorder %v5352_v2, 32  ;;  %vm1957_vm2 = vcmp.lt.s32.totalorder %v5352_v2, 16 }
 0x4b7   : > { %v1883_v21 = vrot.slane %v1876_v38, %v4758_v7  ;;  %v5345_v3 = vpop.permute.xlu1 %2665  ;;  %6951 = vst [vmem:[#allocation168_spill] sm:$0xff] %v5357_v6  ;;  %v1896_v38 = vshra.s32 %v5357_v6, 4  ;;  %v5453_v36 = vadd.s32 4294967295, %v1895_v25  ;;  %v5457_v50 = vadd.s32 1, %v1895_v25  ;;  %v6982_v6 = vld [vmem:[#allocation59_spill] sm:$0xff] }
 0x4b8   : > { %6945 = vst [vmem:[#allocation163_spill] sm:$0xff] %v5345_v3  ;;  %v5465_v14 = vadd.s32 3, %v1895_v25 }
 0x4b9   : > { %1886 = vst.msk [vmem:[#allocation3 + $0x17] ss:$8 sm:$0x3] %vm5047_vm4, %v1883_v21  ;;  %v5365_v28 = vadd.s32 4294967294, %v1896_v38  ;;  %v5455_v52 = vadd.s32 4294967295, %v1896_v38  ;;  %v5459_v19 = vadd.s32 1, %v1896_v38 }
 0x4ba   : > { %vm1964_vm3 = vcmp.ge.s32.totalorder %v5453_v36, 0  ;;  %vm1966_vm4 = vcmp.lt.s32.totalorder %v5453_v36, 16 }
 0x4bb   : > { %v5275_v4 = vld [vmem:[#allocation3] sm:$0xff]  ;;  %v5277_v11 = vld [vmem:[#allocation3 + $0x8] sm:$0xff]  ;;  %v5347_v15 = vpop.permute.xlu1 %2782  ;;  %vm1940_vm14 = vcmp.ge.s32.totalorder %v5365_v28, 0  ;;  %vm1942_vm0 = vcmp.lt.s32.totalorder %v5365_v28, 16 }
 0x4bc   : > { %v5281_v44 = vmul.f32 %v5217_v58, %v5275_v4  ;;  %v5285_v40 = vmul.f32 %v5217_v58, %v5277_v11  ;;  %v5288_v7 = vmul.f32 %v2884_v18, %v5275_v4  ;;  %v5291_v45 = vmul.f32 %v2884_v18, %v5277_v11  ;;  %1899 = vrot.lane.b32.xlu1 %v5275_v4, %s4087_s13  ;;  %v5363_v18 = vpop.permute.xlu0 %2669  ;;  %v6994_v28 = vld [vmem:[#allocation54_spill] sm:$0xff] }
 0x4bd   : > { %6946 = vst [vmem:[#allocation164_spill] sm:$0xff] %v5347_v15  ;;  %6953 = vst [vmem:[#allocation170_spill] sm:$0xff] %v5363_v18  ;;  %v5372_v53 = vmul.f32 %v6955_v46, %v5277_v11  ;;  %v5376_v16 = vmul.f32 %v6956_v59, %v5275_v4  ;;  %v5384_v39 = vmul.f32 %v6956_v59, %v5277_v11 }
 0x4be   : > { %6937 = vst [vmem:[#allocation155_spill] sm:$0xff] %v5281_v44  ;;  %6938 = vst [vmem:[#allocation156_spill] sm:$0xff] %v5285_v40  ;;  %v5397_v60 = vmul.f32 %v6964_v27, %v5275_v4  ;;  %v5401_v33 = vmul.f32 %v6964_v27, %v5277_v11  ;;  %v5405_v59 = vmul.f32 %v6958_v20, %v5275_v4  ;;  %v6998_v44 = vld [vmem:[#allocation73_spill] sm:$0xff] }
 0x4bf   : > { %6939 = vst [vmem:[#allocation157_spill] sm:$0xff] %v5288_v7  ;;  %6940 = vst [vmem:[#allocation158_spill] sm:$0xff] %v5291_v45  ;;  %v5349_v30 = vpop.permute.xlu1 %2786 }
 0x4c0   : > { %1903 = vrot.lane.b32.xlu1 %v5277_v11, %s4087_s13  ;;  %v5295_v29 = vld [vmem:[#allocation3 + $0x10] sm:$0xff]  ;;  %v5297_v12 = vld [vmem:[#allocation3 + $0x18] sm:$0xff]  ;;  %6947 = vst [vmem:[#allocation165_spill] sm:$0xff] %v5349_v30  ;;  %v5367_v32 = vpop.permute.xlu0 %2899  ;;  %6957 = vst [vmem:[#allocation61_spill] sm:$0xff] %v5376_v16 }
 0x4c1   : > { %v5301_v58 = vmul.f32 %v5238_v1, %v5295_v29  ;;  %v5305_v34 = vmul.f32 %v5238_v1, %v5297_v12  ;;  %1901 = vrot.lane.b32.xlu0 %v5295_v29, %s4087_s13  ;;  %v5309_v49 = vmul.f32 %v2888_v13, %v5295_v29  ;;  %v5312_v9 = vmul.f32 %v2888_v13, %v5297_v12  ;;  %v3927_v1 = vld [vmem:[%s6532_s5] sm:$0xff] }
 0x4c2   : > { %v1912_v13 = vadd.s32 4294967293, %v1895_v25  ;;  %6954 = vst [vmem:[#allocation171_spill] sm:$0xff] %v5367_v32  ;;  %6960 = vst [vmem:[#allocation76_spill] sm:$0xff] %v5384_v39  ;;  %v5427_v56 = vmul.f32 %v6973_v55, %v5297_v12 }
 0x4c3   : > { %6941 = vst [vmem:[#allocation159_spill] sm:$0xff] %v5301_v58  ;;  %6942 = vst [vmem:[#allocation160_spill] sm:$0xff] %v5305_v34  ;;  %v5354_v23 = vpop.permute.xlu1 %2903 }
 0x4c4   : > { %6943 = vst [vmem:[#allocation161_spill] sm:$0xff] %v5309_v49  ;;  %6944 = vst [vmem:[#allocation162_spill] sm:$0xff] %v5312_v9  ;;  %1924 = vrot.lane.b32.xlu1 %v5275_v4, %s4088_s11  ;;  %vm1914_vm5 = vcmp.ge.s32.totalorder %v1912_v13, 0  ;;  %vm1916_vm6 = vcmp.lt.s32.totalorder %v1912_v13, 16  ;;  %v5380_v13 = vmul.f32 %v6958_v20, %v5277_v11  ;;  %v6970_v20 = vld [vmem:[#allocation23_spill] sm:$0xff]  ;;  %v6984_v49 = vld [vmem:[#allocation68_spill] sm:$0xff] }
 0x4c5   : > { %1905 = vrot.lane.b32.xlu0 %v5297_v12, %s4087_s13  ;;  %6950 = vst [vmem:[#allocation167_spill] sm:$0xff] %v5354_v23  ;;  %vm5386_vm10 = vmand %vm1914_vm5, %vm1916_vm6  ;;  %v5435_v22 = vmul.f32 %v6970_v20, %v5295_v29  ;;  %vm1965_vm6 = vcmp.ge.s32.totalorder %v5455_v52, 0  ;;  %s4097_s13 = smov 126  }
 0x4c6   : > { %6959 = vst [vmem:[#allocation14_spill] sm:$0xff] %v5380_v13  ;;  %6965 = vst [vmem:[#allocation32_spill] sm:$0xff] %v5397_v60  ;;  %v6985_v60 = vld [vmem:[#allocation46_spill] sm:$0xff] }
 0x4c7   : > { %v5361_v21 = vpop.permute.xlu1 %2798  ;;  %6966 = vst [vmem:[#allocation173_spill] sm:$0xff] %v5401_v33  ;;  %6967 = vst [vmem:[#allocation174_spill] sm:$0xff] %v5405_v59 }
 0x4c8   : > { %1928 = vrot.lane.b32.xlu1 %v5277_v11, %s4088_s11  ;;  %6952 = vst [vmem:[#allocation169_spill] sm:$0xff] %v5361_v21  ;;  %6976 = vst [vmem:[#allocation175_spill] sm:$0xff] %v5435_v22  ;;  %v6999_v22 = vld [vmem:[#allocation11_spill] sm:$0xff] }
 0x4c9   : > { %1926 = vrot.lane.b32.xlu0 %v5295_v29, %s4088_s11  ;;  %vm5514_vm5 = vmand %vm1940_vm14, %vm1942_vm0  ;;  %vm1982_vm14 = vcmp.lt.s32.totalorder %v5352_v2, 112 }
 0x4cc   : > { %1949 = vrot.lane.b32.xlu1 %v5275_v4, %s4089_s14 }
 0x4cd   : > { %1930 = vrot.lane.b32.xlu0 %v5297_v12, %s4088_s11  ;;  %s4098_s11 = smov 1  }
 0x4d0   : > { %1953 = vrot.lane.b32.xlu1 %v5277_v11, %s4089_s14 }
 0x4d1   : > { %1951 = vrot.lane.b32.xlu0 %v5295_v29, %s4089_s14 }
 0x4d4   : > { %1974 = vrot.lane.b32.xlu1 %v5275_v4, %s4090_s15 }
 0x4d5   : > { %1955 = vrot.lane.b32.xlu0 %v5297_v12, %s4089_s14 }
 0x4d8   : > { %1978 = vrot.lane.b32.xlu1 %v5277_v11, %s4090_s15 }
 0x4d9   : > { %1976 = vrot.lane.b32.xlu0 %v5295_v29, %s4090_s15 }
 0x4dc   : > { %1999 = vrot.lane.b32.xlu1 %v5275_v4, %s4091_s17 }
 0x4dd   : > { %1980 = vrot.lane.b32.xlu0 %v5297_v12, %s4090_s15  ;;  %s4099_s15 = smov 125  }
 0x4e0   : > { %2003 = vrot.lane.b32.xlu1 %v5277_v11, %s4091_s17 }
 0x4e1   : > { %2001 = vrot.lane.b32.xlu0 %v5295_v29, %s4091_s17 }
 0x4e4   : > { %2024 = vrot.lane.b32.xlu1 %v5275_v4, %s4092_s26 }
 0x4e5   : > { %2005 = vrot.lane.b32.xlu0 %v5297_v12, %s4091_s17  ;;  %s6329_s17 = scalar_lea.vmem [#allocation7], %s3333_s7  ;;  %s3636_s7 = sshll.u32 %s4158_s25, 13 }
 0x4e6   : > { %s6464_s12 = scalar_lea.hbm %s6533_s6, %s3636_s7 }
 0x4e8   : > { %2028 = vrot.lane.b32.xlu1 %v5277_v11, %s4092_s26  ;;  %v6971_v11 = vld [vmem:[#allocation56_spill] sm:$0xff] }
 0x4e9   : > { %2026 = vrot.lane.b32.xlu0 %v5295_v29, %s4092_s26  ;;  %v5423_v24 = vmul.f32 %v6971_v11, %v5295_v29  ;;  %6974 = vst [vmem:[#allocation56_spill] sm:$0xff] %v5427_v56  ;;  %v5431_v31 = vmul.f32 %v6971_v11, %v5297_v12  ;;  %v5451_v11 = vmul.f32 %v6973_v55, %v5295_v29 }
 0x4eb   : > { %6972 = vst [vmem:[#allocation23_spill] sm:$0xff] %v5423_v24  ;;  %6975 = vst [vmem:[#allocation53_spill] sm:$0xff] %v5431_v31 }
 0x4ec   : > { %2915 = vperm.xlu1 %3898, %v3927_v1   ;;  %6980 = vst [vmem:[#allocation177_spill] sm:$0xff] %v5451_v11 }
 0x4ed   : > { %2030 = vrot.lane.b32.xlu0 %v5297_v12, %s4092_s26  ;;  %s3252_s26 = sshll.u32 %s6329_s17, 4  ;;  %s6474_s26 = int_to_ptr.vmem [resolvable:$true] %s3252_s26 }
 0x4ee   : > { %s3963_s16 = scalar_lea.vmem %s6474_s26, 8192 }
 0x4ef   : > { %p3964_p6 = scmp.ne.s32.totalorder %s6474_s26, %s3963_s16 }
 0x4f0   : > { %2919 = vperm.xlu1 %3898, %v3928_v62  }
 0x4f1   : > { %2802 = vperm.xlu0 %3897, %v3928_v62   ;;  %p3965_p12 = pnand %p3964_p6, %p7235_p11 }
 0x4f3   : > { %p3966_p13 = pneg %p3965_p12 }
 0x4f4   : > { %3900 = vset.pattern.permute.xlu1 %v4093_v51 }
 0x4f5   : > { %2935 = vperm.xlu1 %3900, %v3928_v62   ;;  %3899 = vset.pattern.permute.xlu0 %v4093_v51  ;;  %v1937_v51 = vadd.s32 4294967294, %v1895_v25 }
 0x4f6   : > { %2931 = vperm.xlu0 %3899, %v3927_v1   ;;  %v1913_v1 = vadd.s32 4294967293, %v1896_v38 }
 0x4f7   : > { %vm1939_vm13 = vcmp.ge.s32.totalorder %v1937_v51, 0  ;;  %vm1941_vm15 = vcmp.lt.s32.totalorder %v1937_v51, 16 }
 0x4f8   : > { %vm1915_vm8 = vcmp.ge.s32.totalorder %v1913_v1, 0  ;;  %vm1917_vm9 = vcmp.lt.s32.totalorder %v1913_v1, 16  ;;  %v5393_v1 = vmul.f32 %v6955_v46, %v5275_v4  ;;  %v5419_v4 = vmul.f32 %v6970_v20, %v5297_v12  ;;  %vm5503_vm1 = vmand %vm1939_vm13, %vm1941_vm15 }
 0x4f9   : > { %vm5407_vm12 = vmand %vm1915_vm8, %vm1917_vm9  ;;  %vm1992_vm13 = vcmp.lt.s32.totalorder %v5459_v19, 16 }
 0x4fa   : > { %6963 = vst [vmem:[#allocation172_spill] sm:$0xff] %v5393_v1  ;;  %vm5632_vm8 = vmand %vm1964_vm3, %vm1966_vm4 }
 0x52e   : > { %v1900_v62 = vpop.permute.xlu1 %1899 }
 0x532   : > { %v1904_v54 = vpop.permute.xlu1 %1903 }
 0x533   : > { %v1908_v46 = vsel %vm1907_vm7, %v1900_v62, %v1904_v54  ;;  %v1910_v27 = vsel %vm1907_vm7, %v1904_v54, %v1900_v62  ;;  %v6977_v54 = vld [vmem:[#allocation65_spill] sm:$0xff]  ;;  %v1902_v47 = vpop.permute.xlu0 %1901 }
 0x534   : > { %v5439_v62 = vmul.f32 %v6977_v54, %v5295_v29  ;;  %v1920_v8 = vsel %vm5386_vm10, %v1910_v27, 0.0  ;;  %v1921_v63 = vsel %vm5407_vm12, %v1908_v46, 0.0  ;;  %v5447_v35 = vmul.f32 %v6977_v54, %v5297_v12  ;;  %v6981_v54 = vld [vmem:[#allocation10_spill] sm:$0xff] }
 0x535   : > { %v5461_v27 = vadd.s32 2, %v1895_v25  ;;  %v5463_v46 = vadd.s32 2, %v1896_v38  ;;  %v5467_v12 = vadd.s32 3, %v1896_v38  ;;  %v2061_v55 = vmul.f32 %v6981_v54, %v1920_v8 }
 0x536   : > { %6978 = vst [vmem:[#allocation65_spill] sm:$0xff] %v5439_v62  ;;  %6979 = vst [vmem:[#allocation176_spill] sm:$0xff] %v5447_v35  ;;  %v1925_v20 = vpop.permute.xlu1 %1924  ;;  %v2062_v29 = vmul.f32 %v6981_v54, %v1921_v63  ;;  %v2194_v11 = vmul.f32 %v6982_v6, %v1920_v8  ;;  %v2195_v59 = vmul.f32 %v6982_v6, %v1921_v63  ;;  %v6983_v35 = vld [vmem:[#allocation28_spill] sm:$0xff] }
 0x537   : > { %v5474_v33 = vmul.f32 %v6983_v35, %v1920_v8  ;;  %v5477_v9 = vmul.f32 %v6983_v35, %v1921_v63  ;;  %v2460_v62 = vmul.f32 %v6984_v49, %v1920_v8  ;;  %v2461_v25 = vmul.f32 %v6984_v49, %v1921_v63  ;;  %v1906_v38 = vpop.permute.xlu0 %1905  ;;  %v6986_v35 = vld [vmem:[#allocation50_spill] sm:$0xff] }
 0x538   : > { %v5482_v23 = vmul.f32 %v6985_v60, %v1920_v8  ;;  %v5485_v54 = vmul.f32 %v6985_v60, %v1921_v63  ;;  %v1909_v6 = vsel %vm1907_vm7, %v1902_v47, %v1906_v38  ;;  %v1911_v41 = vsel %vm1907_vm7, %v1906_v38, %v1902_v47 }
 0x539   : > { %v5492_v21 = vmul.f32 %v6986_v35, %v1920_v8  ;;  %v5495_v30 = vmul.f32 %v6986_v35, %v1921_v63  ;;  %v1922_v49 = vsel %vm5386_vm10, %v1911_v41, 0.0  ;;  %v1923_v60 = vsel %vm5407_vm12, %v1909_v6, 0.0  ;;  %v6991_v41 = vld [vmem:[#allocation79_spill] sm:$0xff] }
 0x53a   : > { %v1929_v42 = vpop.permute.xlu1 %1928  ;;  %vm1967_vm7 = vcmp.lt.s32.totalorder %v5455_v52, 16  ;;  %v5525_v51 = vmul.f32 %v6991_v41, %v1920_v8  ;;  %v5528_v38 = vmul.f32 %v6991_v41, %v1921_v63  ;;  %v5531_v6 = vmul.f32 %v6994_v28, %v1922_v49  ;;  %v6997_v63 = vld [vmem:[#allocation37_spill] sm:$0xff] }
 0x53b   : > { %v1933_v47 = vsel %vm1932_vm11, %v1925_v20, %v1929_v42  ;;  %v1935_v26 = vsel %vm1932_vm11, %v1929_v42, %v1925_v20  ;;  %v5534_v35 = vmul.f32 %v6994_v28, %v1923_v60  ;;  %v5537_v34 = vmul.f32 %v6995_v57, %v1922_v49  ;;  %v1927_v20 = vpop.permute.xlu0 %1926  ;;  %vm5660_vm9 = vmand %vm1965_vm6, %vm1967_vm7 }
 0x53c   : > { %6992 = vst [vmem:[#allocation10_spill] sm:$0xff] %v5525_v51  ;;  %6993 = vst [vmem:[#allocation59_spill] sm:$0xff] %v5528_v38  ;;  %v5540_v42 = vmul.f32 %v6995_v57, %v1923_v60  ;;  %v5543_v58 = vmul.f32 %v6996_v5, %v1922_v49  ;;  %v5546_v8 = vmul.f32 %v6996_v5, %v1923_v60  ;;  %v5562_v7 = vsel %vm5503_vm1, %v1935_v26, 0.0  ;;  %v7000_v38 = vld [vmem:[#allocation20_spill] sm:$0xff]  ;;  %v7001_v51 = vld [vmem:[#allocation75_spill] sm:$0xff] }
 0x53d   : > { %v5549_v41 = vmul.f32 %v6997_v63, %v1922_v49  ;;  %v5552_v40 = vmul.f32 %v6997_v63, %v1923_v60  ;;  %v5555_v45 = vmul.f32 %v6998_v44, %v1922_v49  ;;  %v5558_v57 = vmul.f32 %v6998_v44, %v1923_v60 }
 0x53e   : > { %v1950_v28 = vpop.permute.xlu1 %1949  ;;  %v5566_v5 = vsel %vm5514_vm5, %v1933_v47, 0.0  ;;  %v2077_v1 = vmul.f32 %v6999_v22, %v5562_v7  ;;  %v2210_v32 = vmul.f32 %v7000_v38, %v5562_v7  ;;  %v5577_v10 = vmul.f32 %v7001_v51, %v1922_v49  ;;  %v7004_v47 = vld [vmem:[#allocation38_spill] sm:$0xff] }
 0x53f   : > { %v2078_v63 = vmul.f32 %v6999_v22, %v5566_v5  ;;  %v2211_v44 = vmul.f32 %v7000_v38, %v5566_v5  ;;  %v5580_v26 = vmul.f32 %v7001_v51, %v1923_v60  ;;  %v2476_v37 = vmul.f32 %v7004_v47, %v5562_v7  ;;  %v1931_v39 = vpop.permute.xlu0 %1930  ;;  %v7005_v22 = vld [vmem:[#allocation29_spill] sm:$0xff] }
 0x540   : > { %7002 = vst [vmem:[#allocation28_spill] sm:$0xff] %v5577_v10  ;;  %v2477_v31 = vmul.f32 %v7004_v47, %v5566_v5  ;;  %v2343_v18 = vmul.f32 %v7005_v22, %v5562_v7  ;;  %v2344_v3 = vmul.f32 %v7005_v22, %v5566_v5  ;;  %v5591_v0 = vmul.f32 %v7006_v61, %v1922_v49  ;;  %v7009_v22 = vld [vmem:[#allocation47_spill] sm:$0xff] }
 0x541   : > { %7003 = vst [vmem:[#allocation68_spill] sm:$0xff] %v5580_v26  ;;  %v5594_v51 = vmul.f32 %v7006_v61, %v1923_v60  ;;  %v5596_v26 = vadd.f32 %v2077_v1, %v2061_v55  ;;  %v5598_v10 = vadd.f32 %v2078_v63, %v2062_v29  ;;  %v5600_v56 = vadd.f32 %v2476_v37, %v2460_v62  ;;  %v7010_v61 = vld [vmem:[#allocation51_spill] sm:$0xff] }
 0x542   : > { %v1954_v38 = vpop.permute.xlu1 %1953  ;;  %7007 = vst [vmem:[#allocation46_spill] sm:$0xff] %v5591_v0  ;;  %v5602_v47 = vadd.f32 %v2477_v31, %v2461_v25  ;;  %v5604_v13 = vadd.f32 %v2210_v32, %v2194_v11  ;;  %v5606_v24 = vadd.f32 %v2211_v44, %v2195_v59  ;;  %v2592_v16 = vmul.f32 %v7009_v22, %v5562_v7 }
 0x543   : > { %7008 = vst [vmem:[#allocation50_spill] sm:$0xff] %v5594_v51  ;;  %v2593_v49 = vmul.f32 %v7009_v22, %v5566_v5  ;;  %v2725_v1 = vmul.f32 %v7010_v61, %v5562_v7  ;;  %v2726_v55 = vmul.f32 %v7010_v61, %v5566_v5  ;;  %v1934_v31 = vsel %vm1932_vm11, %v1927_v20, %v1931_v39  ;;  %v5620_v32 = vpop.permute.xlu0 %1951  ;;  %v7022_v22 = vld [vmem:[#allocation30_spill] sm:$0xff]  ;;  %v7029_v51 = vld [vmem:[#allocation39_spill] sm:$0xff] }
 0x544   : > { %v1936_v37 = vsel %vm1932_vm11, %v1931_v39, %v1927_v20  ;;  %v5623_v59 = vadd.f32 %v2343_v18, %v5474_v33  ;;  %v5626_v62 = vadd.f32 %v2344_v3, %v5477_v9  ;;  %v1958_v29 = vsel %vm1957_vm2, %v1950_v28, %v1954_v38 }
 0x545   : > { %v1960_v39 = vsel %vm1957_vm2, %v1954_v38, %v1950_v28  ;;  %v5643_v33 = vadd.f32 %v2592_v16, %v5482_v23  ;;  %v5646_v9 = vadd.f32 %v2593_v49, %v5485_v54  ;;  %v5650_v36 = vsel %vm5503_vm1, %v1936_v37, 0.0  ;;  %v7017_v16 = vld [vmem:[#allocation12_spill] sm:$0xff]  ;;  %v7021_v28 = vld [vmem:[#allocation69_spill] sm:$0xff] }
 0x546   : > { %v5640_v25 = vpop.permute.xlu1 %1974  ;;  %7013 = vst [vmem:[#allocation79_spill] sm:$0xff] %v5650_v36  ;;  %v5654_v3 = vsel %vm5514_vm5, %v1934_v31, 0.0  ;;  %v2079_v23 = vmul.f32 %v7017_v16, %v5650_v36  ;;  %v7018_v54 = vld [vmem:[#allocation60_spill] sm:$0xff]  ;;  %v5673_v20 = vadd.f32 %v2725_v1, %v5492_v21  ;;  %v5676_v52 = vadd.f32 %v2726_v55, %v5495_v30 }
 0x547   : > { %7014 = vst [vmem:[#allocation54_spill] sm:$0xff] %v5654_v3  ;;  %v2080_v15 = vmul.f32 %v7017_v16, %v5654_v3  ;;  %v2212_v60 = vmul.f32 %v7018_v54, %v5650_v36  ;;  %v2213_v43 = vmul.f32 %v7018_v54, %v5654_v3  ;;  %v2478_v63 = vmul.f32 %v7021_v28, %v5650_v36  ;;  %v1956_v38 = vpop.permute.xlu0 %1955  ;;  %v7025_v54 = vld [vmem:[#allocation21_spill] sm:$0xff] }
 0x548   : > { %7019 = vst [vmem:[#allocation19_spill] sm:$0xff] %v5673_v20  ;;  %7020 = vst [vmem:[#allocation80_spill] sm:$0xff] %v5676_v52  ;;  %v2479_v44 = vmul.f32 %v7021_v28, %v5654_v3  ;;  %v2345_v49 = vmul.f32 %v7022_v22, %v5650_v36  ;;  %v2346_v61 = vmul.f32 %v7022_v22, %v5654_v3  ;;  %v5688_v21 = vsel %vm5632_vm8, %v1960_v39, 0.0 }
 0x549   : > { %v5692_v30 = vsel %vm5660_vm9, %v1958_v29, 0.0  ;;  %vm1989_vm10 = vcmp.ge.s32.totalorder %v5457_v50, 0  ;;  %vm1991_vm11 = vcmp.lt.s32.totalorder %v5457_v50, 16  ;;  %v5699_v55 = vadd.f32 %v2079_v23, %v5531_v6  ;;  %v7023_v6 = vld [vmem:[#allocation48_spill] sm:$0xff]  ;;  %v7024_v23 = vld [vmem:[#allocation55_spill] sm:$0xff] }
 0x54a   : > { %v5696_v1 = vpop.permute.xlu1 %1978  ;;  %v5702_v31 = vadd.f32 %v2080_v15, %v5534_v35  ;;  %v5705_v37 = vadd.f32 %v2478_v63, %v5549_v41  ;;  %v5708_v39 = vadd.f32 %v2479_v44, %v5552_v40  ;;  %vm1990_vm12 = vcmp.ge.s32.totalorder %v5459_v19, 0  ;;  %v7026_v63 = vld [vmem:[#allocation52_spill] sm:$0xff]  ;;  %v7051_v19 = vld [vmem:[#allocation49_spill] sm:$0xff] }
 0x54b   : > { %v5713_v29 = vadd.f32 %v2212_v60, %v5537_v34  ;;  %v5716_v16 = vadd.f32 %v2213_v43, %v5540_v42  ;;  %v2594_v35 = vmul.f32 %v7023_v6, %v5650_v36  ;;  %v2595_v41 = vmul.f32 %v7023_v6, %v5654_v3  ;;  %v5730_v42 = vpop.permute.xlu0 %1976 }
 0x54c   : > { %v2093_v40 = vmul.f32 %v7024_v23, %v5688_v21  ;;  %v2094_v15 = vmul.f32 %v7024_v23, %v5692_v30  ;;  %v2226_v28 = vmul.f32 %v7025_v54, %v5688_v21  ;;  %v2227_v34 = vmul.f32 %v7025_v54, %v5692_v30 }
 0x54d   : > { %v5734_v60 = vadd.f32 %v2345_v49, %v5543_v58  ;;  %v5737_v43 = vadd.f32 %v2346_v61, %v5546_v8  ;;  %v5741_v44 = vmul.f32 %v7026_v63, %v5650_v36  ;;  %v5745_v22 = vmul.f32 %v7026_v63, %v5654_v3  ;;  %v7028_v58 = vld [vmem:[#allocation64_spill] sm:$0xff]  ;;  %v7086_v3 = vld [vmem:[#allocation58_spill] sm:$0xff] }
 0x54e   : > { %v5747_v6 = vpop.permute.xlu1 %1999  ;;  %v5750_v23 = vadd.f32 %v2594_v35, %v5555_v45  ;;  %v5753_v54 = vadd.f32 %v2595_v41, %v5558_v57  ;;  %v2359_v8 = vmul.f32 %v7028_v58, %v5688_v21  ;;  %v2360_v49 = vmul.f32 %v7028_v58, %v5692_v30  ;;  %v7030_v41 = vld [vmem:[#allocation74_spill] sm:$0xff] }
 0x54f   : > { %7027 = vst [vmem:[#allocation37_spill] sm:$0xff] %v5745_v22  ;;  %v5760_v61 = vadd.f32 %v2093_v40, %v5596_v26  ;;  %v5763_v63 = vadd.f32 %v2094_v15, %v5598_v10  ;;  %v2492_v0 = vmul.f32 %v7029_v51, %v5688_v21  ;;  %v2493_v45 = vmul.f32 %v7029_v51, %v5692_v30  ;;  %v1981_v10 = vpop.permute.xlu0 %1980 }
 0x550   : > { %v5770_v57 = vadd.f32 %v2226_v28, %v5604_v13  ;;  %v5773_v35 = vadd.f32 %v2227_v34, %v5606_v24  ;;  %v2608_v58 = vmul.f32 %v7030_v41, %v5688_v21  ;;  %v2609_v26 = vmul.f32 %v7030_v41, %v5692_v30  ;;  %v7041_v34 = vld [vmem:[#allocation22_spill] sm:$0xff] }
 0x551   : > { %vm2014_vm15 = vcmp.ge.s32.totalorder %v5461_v27, 0  ;;  %vm2016_vm0 = vcmp.lt.s32.totalorder %v5461_v27, 16  ;;  %v5782_v40 = vadd.f32 %v2492_v0, %v5600_v56  ;;  %v5785_v13 = vadd.f32 %v2493_v45, %v5602_v47  ;;  %v7042_v45 = vld [vmem:[#allocation40_spill] sm:$0xff] }
 0x552   : > { %v1959_v24 = vsel %vm1957_vm2, %v5620_v32, %v1956_v38  ;;  %v1961_v51 = vsel %vm1957_vm2, %v1956_v38, %v5620_v32  ;;  %vm2007_vm1 = vcmp.lt.s32.totalorder %v5352_v2, 96  ;;  %vm2015_vm3 = vcmp.ge.s32.totalorder %v5463_v46, 0  ;;  %v2004_v15 = vpop.permute.xlu1 %2003  ;;  %v7037_v38 = vld [vmem:[#allocation77_spill] sm:$0xff] }
 0x553   : > { %7031 = vst [vmem:[#allocation73_spill] sm:$0xff] %v5782_v40  ;;  %7032 = vst [vmem:[#allocation11_spill] sm:$0xff] %v5785_v13  ;;  %vm2017_vm4 = vcmp.lt.s32.totalorder %v5463_v46, 16  ;;  %v5797_v56 = vadd.f32 %v2359_v8, %v5623_v59  ;;  %v5800_v0 = vadd.f32 %v2360_v49, %v5626_v62  ;;  %v5804_v47 = vsel %vm5632_vm8, %v1961_v51, 0.0  ;;  %v7040_v62 = vld [vmem:[#allocation13_spill] sm:$0xff]  ;;  %v7046_v13 = vld [vmem:[#allocation31_spill] sm:$0xff] }
 0x554   : > { %7035 = vst [vmem:[#allocation38_spill] sm:$0xff] %v5804_v47  ;;  %v5808_v32 = vsel %vm5660_vm9, %v1959_v24, 0.0  ;;  %vm2039_vm2 = vcmp.ge.s32.totalorder %v5465_v14, 0  ;;  %vm2041_vm5 = vcmp.lt.s32.totalorder %v5465_v14, 16  ;;  %v5814_v28 = vmul.f32 %v7037_v38, %v5688_v21  ;;  %vm5838_vm8 = vmand %vm1989_vm10, %vm1991_vm11  ;;  %v7082_v14 = vld [vmem:[#allocation23_spill] sm:$0xff] }
 0x555   : > { %7033 = vst [vmem:[#allocation20_spill] sm:$0xff] %v5797_v56  ;;  %7034 = vst [vmem:[#allocation75_spill] sm:$0xff] %v5800_v0  ;;  %v5818_v59 = vmul.f32 %v7037_v38, %v5692_v30  ;;  %v2095_v11 = vmul.f32 %v7040_v62, %v5804_v47  ;;  %v2096_v18 = vmul.f32 %v7040_v62, %v5808_v32  ;;  %vm2040_vm6 = vcmp.ge.s32.totalorder %v5467_v12, 0  ;;  %v2002_v38 = vpop.permute.xlu0 %2001 }
 0x556   : > { %7036 = vst [vmem:[#allocation29_spill] sm:$0xff] %v5808_v32  ;;  %7038 = vst [vmem:[#allocation81_spill] sm:$0xff] %v5814_v28  ;;  %vm2042_vm7 = vcmp.lt.s32.totalorder %v5467_v12, 16  ;;  %v2228_v8 = vmul.f32 %v7041_v34, %v5804_v47  ;;  %v2229_v49 = vmul.f32 %v7041_v34, %v5808_v32  ;;  %v2494_v41 = vmul.f32 %v7042_v45, %v5804_v47  ;;  %v7089_v28 = vld [vmem:[#allocation151_spill] sm:$0xff] }
 0x557   : > { %7039 = vst [vmem:[#allocation47_spill] sm:$0xff] %v5818_v59  ;;  %v2495_v24 = vmul.f32 %v7042_v45, %v5808_v32  ;;  %v5843_v62 = vadd.f32 %v2608_v58, %v5643_v33  ;;  %v5846_v34 = vadd.f32 %v2609_v26, %v5646_v9  ;;  %v2361_v40 = vmul.f32 %v7046_v13, %v5804_v47  ;;  %vm5856_vm9 = vmand %vm1990_vm12, %vm1992_vm13 }
 0x558   : > { %v2362_v45 = vmul.f32 %v7046_v13, %v5808_v32  ;;  %vm2032_vm10 = vcmp.lt.s32.totalorder %v5352_v2, 80  ;;  %v5862_v33 = vadd.f32 %v2095_v11, %v5699_v55  ;;  %v5865_v9 = vadd.f32 %v2096_v18, %v5702_v31  ;;  %vm5937_vm11 = vmand %vm2014_vm15, %vm2016_vm0 }
 0x559   : > { %7045 = vst [vmem:[#allocation51_spill] sm:$0xff] %v5843_v62  ;;  %v5868_v58 = vadd.f32 %v2494_v41, %v5705_v37  ;;  %v5871_v26 = vadd.f32 %v2495_v24, %v5708_v39  ;;  %v2610_v13 = vmul.f32 %v7051_v19, %v5804_v47  ;;  %v2611_v62 = vmul.f32 %v7051_v19, %v5808_v32  ;;  %v2025_v37 = vpop.permute.xlu1 %2024  ;;  %v2006_v24 = vpop.permute.xlu0 %2005  ;;  %vm5953_vm12 = vmand %vm2015_vm3, %vm2017_vm4 }
 0x55a   : > { %v1983_v55 = vsel %vm1982_vm14, %v5640_v25, %v5696_v1  ;;  %v1985_v31 = vsel %vm1982_vm14, %v5696_v1, %v5640_v25  ;;  %v5886_v39 = vadd.f32 %v2228_v8, %v5713_v29  ;;  %v2233_v11 = vadd.f32 %v2229_v49, %v5716_v16  ;;  %v7055_v49 = vld [vmem:[#allocation15_spill] sm:$0xff]  ;;  %vm5979_vm13 = vmand %vm2039_vm2, %vm2041_vm5 }
 0x55b   : > { %7049 = vst [vmem:[#allocation12_spill] sm:$0xff] %v5868_v58  ;;  %7050 = vst [vmem:[#allocation60_spill] sm:$0xff] %v5871_v26  ;;  %v5891_v18 = vsel %vm5838_vm8, %v1983_v55, 0.0  ;;  %v5895_v41 = vsel %vm5856_vm9, %v1985_v31, 0.0  ;;  %v5898_v19 = vadd.f32 %v2361_v40, %v5734_v60  ;;  %v5901_v25 = vadd.f32 %v2362_v45, %v5737_v43  ;;  %v7056_v40 = vld [vmem:[#allocation24_spill] sm:$0xff]  ;;  %v7071_v58 = vld [vmem:[#allocation34_spill] sm:$0xff] }
 0x55c   : > { %v1984_v1 = vsel %vm1982_vm14, %v5730_v42, %v1981_v10  ;;  %v1986_v29 = vsel %vm1982_vm14, %v1981_v10, %v5730_v42  ;;  %v5910_v16 = vadd.f32 %v2610_v13, %v5750_v23  ;;  %v2615_v8 = vadd.f32 %v2611_v62, %v5753_v54  ;;  %v7057_v42 = vld [vmem:[#allocation33_spill] sm:$0xff]  ;;  %vm6001_vm14 = vmand %vm2040_vm6, %vm2042_vm7 }
 0x55d   : > { %7052 = vst [vmem:[#allocation69_spill] sm:$0xff] %v5898_v19  ;;  %7053 = vst [vmem:[#allocation30_spill] sm:$0xff] %v5901_v25  ;;  %v2125_v60 = vmul.f32 %v7055_v49, %v5891_v18  ;;  %v5917_v43 = vmul.f32 %v7055_v49, %v5895_v41  ;;  %v5921_v45 = vmul.f32 %v7056_v40, %v5891_v18  ;;  %v5943_v62 = vsel %vm5838_vm8, %v1984_v1, 0.0  ;;  %v2027_v1 = vpop.permute.xlu0 %2026  ;;  %v7084_v19 = vld [vmem:[#allocation17_spill] sm:$0xff] }
 0x55e   : > { %7054 = vst [vmem:[#allocation48_spill] sm:$0xff] %v5910_v16  ;;  %v2259_v55 = vmul.f32 %v7056_v40, %v5895_v41  ;;  %v5927_v23 = vmul.f32 %v7057_v42, %v5891_v18  ;;  %v5931_v54 = vmul.f32 %v7057_v42, %v5895_v41  ;;  %7062 = vst [vmem:[#allocation52_spill] sm:$0xff] %v5943_v62  ;;  %v5947_v13 = vsel %vm5856_vm9, %v1986_v29, 0.0  ;;  %v7067_v29 = vld [vmem:[#allocation16_spill] sm:$0xff]  ;;  %v7070_v42 = vld [vmem:[#allocation62_spill] sm:$0xff] }
 0x55f   : > { %7063 = vst [vmem:[#allocation64_spill] sm:$0xff] %v5947_v13  ;;  %v2008_v27 = vsel %vm2007_vm1, %v5747_v6, %v2004_v15  ;;  %v2010_v51 = vsel %vm2007_vm1, %v2004_v15, %v5747_v6  ;;  %v5965_v50 = vmul.f32 %v5190_v48, %v5891_v18  ;;  %v2641_v46 = vmul.f32 %v5190_v48, %v5895_v41  ;;  %v2029_v15 = vpop.permute.xlu1 %2028  ;;  %v7081_v6 = vld [vmem:[#allocation61_spill] sm:$0xff] }
 0x560   : > { %7058 = vst [vmem:[#allocation55_spill] sm:$0xff] %v5927_v23  ;;  %7059 = vst [vmem:[#allocation21_spill] sm:$0xff] %v5931_v54  ;;  %v2127_v49 = vmul.f32 %v7067_v29, %v5943_v62  ;;  %v5973_v40 = vmul.f32 %v7067_v29, %v5947_v13  ;;  %v5985_v26 = vmul.f32 %v7070_v42, %v5943_v62  ;;  %v6013_v54 = vsel %vm5937_vm11, %v2008_v27, 0.0 }
 0x561   : > { %7066 = vst [vmem:[#allocation39_spill] sm:$0xff] %v5965_v50  ;;  %v2261_v48 = vmul.f32 %v7070_v42, %v5947_v13  ;;  %v5991_v29 = vmul.f32 %v7071_v58, %v5943_v62  ;;  %v5995_v50 = vmul.f32 %v7071_v58, %v5947_v13  ;;  %v6007_v16 = vmul.f32 %v5246_v17, %v5943_v62  ;;  %v2031_v25 = vpop.permute.xlu0 %2030 }
 0x562   : > { %v2643_v42 = vmul.f32 %v5246_v17, %v5947_v13  ;;  %v6017_v58 = vsel %vm5953_vm12, %v2010_v51, 0.0  ;;  %v2009_v12 = vsel %vm2007_vm1, %v2002_v38, %v2006_v24  ;;  %v2035_v17 = vsel %vm2032_vm10, %v2029_v15, %v2025_v37 }
 0x563   : > { %7072 = vst [vmem:[#allocation74_spill] sm:$0xff] %v5991_v29  ;;  %7073 = vst [vmem:[#allocation77_spill] sm:$0xff] %v5995_v50  ;;  %v2011_v50 = vsel %vm2007_vm1, %v2006_v24, %v2002_v38  ;;  %v6029_v27 = vsel %vm5937_vm11, %v2009_v12, 0.0  ;;  %v6041_v38 = vsel %vm6001_vm14, %v2035_v17, 0.0  ;;  %v2036_v24 = vsel %vm2032_vm10, %v2031_v25, %v2027_v1  ;;  %v7078_v17 = vld [vmem:[#allocation26_spill] sm:$0xff]  ;;  %v7083_v29 = vld [vmem:[#allocation57_spill] sm:$0xff] }
 0x564   : > { %7076 = vst [vmem:[#allocation13_spill] sm:$0xff] %v6007_v16  ;;  %v2033_v16 = vsel %vm2032_vm10, %v2025_v37, %v2029_v15  ;;  %v6033_v51 = vsel %vm5953_vm12, %v2011_v50, 0.0  ;;  %v2034_v37 = vsel %vm2032_vm10, %v2027_v1, %v2031_v25  ;;  %v2247_v10 = vadd.f32 %v5372_v53, %v5773_v35  ;;  %v7077_v15 = vld [vmem:[#allocation25_spill] sm:$0xff]  ;;  %v7079_v53 = vld [vmem:[#allocation63_spill] sm:$0xff] }
 0x565   : > { %v6037_v0 = vsel %vm5979_vm13, %v2033_v16, 0.0  ;;  %v2249_v31 = vadd.f32 %v5419_v4, %v2233_v11  ;;  %v6052_v50 = vsel %vm5979_vm13, %v2034_v37, 0.0  ;;  %v6056_v16 = vsel %vm6001_vm14, %v2036_v24, 0.0  ;;  %v7080_v4 = vld [vmem:[#allocation27_spill] sm:$0xff] }
 0x566   : > { %v2275_v12 = vmul.f32 %v7077_v15, %v6017_v58  ;;  %v2277_v2 = vmul.f32 %v7078_v17, %v6033_v51  ;;  %v2263_v25 = vadd.f32 %v2259_v55, %v2247_v10  ;;  %v2291_v35 = vmul.f32 %v7079_v53, %v6041_v38  ;;  %v7085_v10 = vld [vmem:[#allocation18_spill] sm:$0xff] }
 0x567   : > { %v2265_v1 = vadd.f32 %v2261_v48, %v2249_v31  ;;  %v2293_v11 = vmul.f32 %v7080_v4, %v6056_v16  ;;  %v2113_v37 = vadd.f32 %v7081_v6, %v5760_v61  ;;  %v2115_v24 = vadd.f32 %v7082_v14, %v5862_v33  ;;  %v7087_v61 = vld [vmem:[#allocation14_spill] sm:$0xff]  ;;  %v7088_v33 = vld [vmem:[#allocation56_spill] sm:$0xff] }
 0x568   : > { %v2141_v23 = vmul.f32 %v7083_v29, %v6013_v54  ;;  %v2143_v56 = vmul.f32 %v7084_v19, %v6029_v27  ;;  %v2279_v55 = vadd.f32 %v2275_v12, %v2263_v25  ;;  %v2157_v31 = vmul.f32 %v7085_v10, %v6037_v0 }
 0x569   : > { %v2281_v48 = vadd.f32 %v2277_v2, %v2265_v1  ;;  %v2159_v36 = vmul.f32 %v7086_v3, %v6052_v50  ;;  %v2129_v13 = vadd.f32 %v2125_v60, %v2113_v37  ;;  %v2131_v62 = vadd.f32 %v2127_v49, %v2115_v24  ;;  %v7090_v2 = vld [vmem:[#allocation152_spill] sm:$0xff]  ;;  %v7091_v60 = vld [vmem:[#allocation163_spill] sm:$0xff] }
 0x56a   : > { %v2629_v6 = vadd.f32 %v7087_v61, %v5846_v34  ;;  %v2631_v14 = vadd.f32 %v7088_v33, %v2615_v8  ;;  %v2295_v59 = vadd.f32 %v2291_v35, %v2279_v55  ;;  %v2657_v20 = vmul.f32 %v7089_v28, %v6017_v58  ;;  %v7092_v34 = vld [vmem:[#allocation170_spill] sm:$0xff]  ;;  %v7093_v8 = vld [vmem:[#allocation76_spill] sm:$0xff]  ;;  %v7098_v33 = vld [vmem:[#allocation171_spill] sm:$0xff] }
 0x56b   : > { %v2297_v52 = vadd.f32 %v2293_v11, %v2281_v48  ;;  %v2659_v12 = vmul.f32 %v7090_v2, %v6033_v51  ;;  %v2145_v25 = vadd.f32 %v2141_v23, %v2129_v13  ;;  %v2147_v1 = vadd.f32 %v2143_v56, %v2131_v62  ;;  %v7094_v56 = vld [vmem:[#allocation53_spill] sm:$0xff] }
 0x56c   : > { %v2645_v32 = vadd.f32 %v2641_v46, %v2629_v6  ;;  %v2647_v47 = vadd.f32 %v2643_v42, %v2631_v14  ;;  %v2673_v49 = vmul.f32 %v7091_v60, %v6041_v38  ;;  %v2675_v37 = vmul.f32 %v7092_v34, %v6056_v16  ;;  %v7096_v42 = vld [vmem:[#allocation150_spill] sm:$0xff]  ;;  %v7099_v14 = vld [vmem:[#allocation59_spill] sm:$0xff] }
 0x56d   : > { %v2299_v22 = vadd.f32 %v2297_v52, %v2295_v59  ;;  %v2114_v35 = vadd.f32 %v7093_v8, %v5763_v63  ;;  %v2161_v11 = vadd.f32 %v2157_v31, %v2145_v25  ;;  %v2163_v24 = vadd.f32 %v2159_v36, %v2147_v1  ;;  %v7101_v8 = vld [vmem:[#allocation175_spill] sm:$0xff] }
 0x56e   : > { %v2661_v55 = vadd.f32 %v2657_v20, %v2645_v32  ;;  %v2663_v48 = vadd.f32 %v2659_v12, %v2647_v47  ;;  %v2116_v23 = vadd.f32 %v7094_v56, %v5865_v9  ;;  %v2142_v59 = vmul.f32 %v7083_v29, %v6017_v58  ;;  %v2916_v32 = vpop.permute.xlu1 %2915  ;;  %v7095_v9 = vld [vmem:[#allocation125_spill] sm:$0xff] }
 0x56f   : > { %2302 = vrot.lane.b32.xlu0 %v2299_v22, %s4094_s18  ;;  %v2130_v52 = vadd.f32 %v5917_v43, %v2114_v35  ;;  %v2144_v62 = vmul.f32 %v7084_v19, %v6033_v51  ;;  %v2165_v13 = vadd.f32 %v2163_v24, %v2161_v11  ;;  %v2158_v36 = vmul.f32 %v7085_v10, %v6041_v38 }
 0x570   : > { %v2677_v63 = vadd.f32 %v2673_v49, %v2661_v55  ;;  %v2679_v46 = vadd.f32 %v2675_v37, %v2663_v48  ;;  %v2132_v20 = vadd.f32 %v5973_v40, %v2116_v23  ;;  %v2160_v47 = vmul.f32 %v7086_v3, %v6056_v16  ;;  %v7097_v3 = vld [vmem:[#allocation10_spill] sm:$0xff]  ;;  %v7100_v49 = vld [vmem:[#allocation172_spill] sm:$0xff]  ;;  %v7102_v23 = vld [vmem:[#allocation157_spill] sm:$0xff] }
 0x571   : > { %v2146_v22 = vadd.f32 %v2142_v59, %v2130_v52  ;;  %v2858_v43 = vmul.f32 %v7095_v9, %v5562_v7  ;;  %2167 = vrot.lane.b32.xlu1 %v2165_v13, %s4095_s19  ;;  %v2859_v29 = vmul.f32 %v7095_v9, %v5566_v5  ;;  %v2874_v10 = vmul.f32 %v7096_v42, %v5688_v21  ;;  %v7109_v9 = vld [vmem:[#allocation29_spill] sm:$0xff] }
 0x572   : > { %v2681_v19 = vadd.f32 %v2679_v46, %v2677_v63  ;;  %v2875_v40 = vmul.f32 %v7096_v42, %v5692_v30  ;;  %v2148_v31 = vadd.f32 %v2144_v62, %v2132_v20  ;;  %v2906_v7 = vmul.f32 %v7098_v33, %v5891_v18  ;;  %v7103_v62 = vld [vmem:[#allocation158_spill] sm:$0xff]  ;;  %v7104_v63 = vld [vmem:[#allocation28_spill] sm:$0xff] }
 0x573   : > { %v2162_v61 = vadd.f32 %v2158_v36, %v2146_v22  ;;  %v2862_v6 = vadd.f32 %v2858_v43, %v7097_v3  ;;  %v2863_v12 = vadd.f32 %v2859_v29, %v7099_v14  ;;  %v2907_v5 = vmul.f32 %v7098_v33, %v5895_v41  ;;  %v7105_v46 = vld [vmem:[#allocation68_spill] sm:$0xff] }
 0x574   : > { %2684 = vrot.lane.b32.xlu0 %v2681_v19, %s4096_s20  ;;  %v2922_v21 = vmul.f32 %v2916_v32, %v6013_v54  ;;  %v2923_v25 = vmul.f32 %v2916_v32, %v6017_v58  ;;  %v2164_v30 = vadd.f32 %v2160_v47, %v2148_v31  ;;  %v2246_v37 = vadd.f32 %v7100_v49, %v5770_v57  ;;  %v7107_v47 = vld [vmem:[#allocation38_spill] sm:$0xff]  ;;  %v7110_v19 = vld [vmem:[#allocation19_spill] sm:$0xff]  ;;  %v7112_v42 = vld [vmem:[#allocation80_spill] sm:$0xff] }
 0x575   : > { %v2878_v1 = vadd.f32 %v2874_v10, %v2862_v6  ;;  %v2248_v35 = vadd.f32 %v7101_v8, %v5886_v39  ;;  %v2879_v11 = vadd.f32 %v2875_v40, %v2863_v12  ;;  %v2274_v24 = vmul.f32 %v7077_v15, %v6013_v54  ;;  %v7115_v12 = vld [vmem:[#allocation156_spill] sm:$0xff] }
 0x576   : > { %v2276_v55 = vmul.f32 %v7078_v17, %v6029_v27  ;;  %v2290_v48 = vmul.f32 %v7079_v53, %v6037_v0  ;;  %v2166_v56 = vadd.f32 %v2164_v30, %v2162_v61  ;;  %v2262_v59 = vadd.f32 %v5921_v45, %v2246_v37  ;;  %v7106_v17 = vld [vmem:[#allocation37_spill] sm:$0xff]  ;;  %v7108_v45 = vld [vmem:[#allocation78_spill] sm:$0xff] }
 0x577   : > { %v2894_v52 = vadd.f32 %v7102_v23, %v2878_v1  ;;  %v2264_v57 = vadd.f32 %v5985_v26, %v2248_v35  ;;  %v2895_v13 = vadd.f32 %v7103_v62, %v2879_v11  ;;  %v2292_v39 = vmul.f32 %v7080_v4, %v6052_v50  ;;  %v7111_v4 = vld [vmem:[#allocation81_spill] sm:$0xff]  ;;  %v7116_v1 = vld [vmem:[#allocation159_spill] sm:$0xff]  ;;  %v7118_v35 = vld [vmem:[#allocation160_spill] sm:$0xff] }
 0x578   : > { %v2731_v15 = vadd.f32 %v5741_v44, %v7104_v63  ;;  %v2732_v36 = vadd.f32 %v7106_v17, %v7105_v46  ;;  %2169 = vrot.lane.b32.xlu1 %v2166_v56, %s4095_s19  ;;  %v2278_v20 = vadd.f32 %v2274_v24, %v2262_v59  ;;  %v2743_v32 = vmul.f32 %v7108_v45, %v7107_v47  ;;  %v7113_v44 = vld [vmem:[#allocation47_spill] sm:$0xff]  ;;  %v7117_v37 = vld [vmem:[#allocation153_spill] sm:$0xff]  ;;  %v7119_v24 = vld [vmem:[#allocation52_spill] sm:$0xff]  ;;  %v2803_v59 = vpop.permute.xlu0 %2802 }
 0x579   : > { %v2910_v53 = vadd.f32 %v2906_v7, %v2894_v52  ;;  %v2280_v22 = vadd.f32 %v2276_v55, %v2264_v57  ;;  %v2911_v26 = vadd.f32 %v2907_v5, %v2895_v13  ;;  %v2744_v43 = vmul.f32 %v7108_v45, %v7109_v9  ;;  %v7114_v7 = vld [vmem:[#allocation155_spill] sm:$0xff]  ;;  %v7120_v55 = vld [vmem:[#allocation154_spill] sm:$0xff]  ;;  %v7122_v23 = vld [vmem:[#allocation164_spill] sm:$0xff] }
 0x57a   : > { %v2745_v29 = vadd.f32 %v7111_v4, %v7110_v19  ;;  %v2746_v10 = vadd.f32 %v7113_v44, %v7112_v42  ;;  %v2294_v31 = vadd.f32 %v2290_v48, %v2278_v20  ;;  %v2747_v3 = vadd.f32 %v2743_v32, %v2731_v15  ;;  %v7121_v48 = vld [vmem:[#allocation64_spill] sm:$0xff]  ;;  %v7126_v42 = vld [vmem:[#allocation118_spill] sm:$0xff] }
 0x57b   : > { %v6151_v40 = vadd.f32 %v2922_v21, %v2910_v53  ;;  %v2296_v61 = vadd.f32 %v2292_v39, %v2280_v22  ;;  %v6153_v6 = vadd.f32 %v2923_v25, %v2911_v26  ;;  %v2748_v33 = vadd.f32 %v2744_v43, %v2732_v36  ;;  %v7123_v39 = vld [vmem:[#allocation165_spill] sm:$0xff]  ;;  %v2920_v26 = vpop.permute.xlu1 %2919 }
 0x57c   : > { %v2761_v14 = vadd.f32 %v7114_v7, %v2745_v29  ;;  %v2762_v5 = vadd.f32 %v7115_v12, %v2746_v10  ;;  %v2763_v49 = vadd.f32 %v7116_v1, %v2747_v3  ;;  %v2773_v8 = vmul.f32 %v7117_v37, %v5891_v18  ;;  %v7124_v36 = vld [vmem:[#allocation169_spill] sm:$0xff]  ;;  %v7125_v29 = vld [vmem:[#allocation79_spill] sm:$0xff] }
 0x57d   : > { %v2298_v30 = vadd.f32 %v2296_v61, %v2294_v31  ;;  %v2774_v21 = vmul.f32 %v7117_v37, %v5895_v41  ;;  %v2764_v11 = vadd.f32 %v7118_v35, %v2748_v33  ;;  %v2775_v25 = vmul.f32 %v7120_v55, %v7119_v24  ;;  %v7127_v61 = vld [vmem:[#allocation54_spill] sm:$0xff] }
 0x57e   : > { %v2776_v56 = vmul.f32 %v7120_v55, %v7121_v48  ;;  %v2789_v52 = vmul.f32 %v7122_v23, %v6013_v54  ;;  %v2777_v57 = vadd.f32 %v2773_v8, %v2761_v14  ;;  %v2790_v13 = vmul.f32 %v7122_v23, %v6017_v58  ;;  %v7128_v33 = vld [vmem:[#allocation126_spill] sm:$0xff]  ;;  %v7131_v8 = vld [vmem:[#allocation167_spill] sm:$0xff]  ;;  %v2932_v23 = vpop.permute.xlu0 %2931 }
 0x57f   : > { %2300 = vrot.lane.b32.xlu1 %v2298_v30, %s4094_s18  ;;  %v2778_v62 = vadd.f32 %v2774_v21, %v2762_v5  ;;  %v2791_v63 = vmul.f32 %v7123_v39, %v6029_v27  ;;  %v2779_v15 = vadd.f32 %v2775_v25, %v2763_v49  ;;  %v2792_v17 = vmul.f32 %v7123_v39, %v6033_v51  ;;  %v7129_v5 = vld [vmem:[#allocation46_spill] sm:$0xff]  ;;  %s4100_s18 = smov [#allocation7]  }
 0x580   : > { %v2780_v46 = vadd.f32 %v2776_v56, %v2764_v11  ;;  %v2805_v53 = vmul.f32 %v7124_v36, %v6037_v0  ;;  %v2793_v20 = vadd.f32 %v2789_v52, %v2777_v57  ;;  %v2806_v45 = vmul.f32 %v7124_v36, %v6041_v38  ;;  %v7130_v49 = vld [vmem:[#allocation50_spill] sm:$0xff]  ;;  %s3967_s19 = sshll.u32 %s4100_s18, 4  ;;  %s3968_s19 = int_to_ptr.vmem [resolvable:$false] %s3967_s19 }
 0x581   : > { %v2794_v22 = vadd.f32 %v2790_v13, %v2778_v62  ;;  %v2807_v32 = vmul.f32 %v2803_v59, %v6052_v50  ;;  %v2795_v43 = vadd.f32 %v2791_v63, %v2779_v15  ;;  %v2808_v4 = vmul.f32 %v2803_v59, %v6056_v16  ;;  %v7132_v59 = vld [vmem:[#allocation20_spill] sm:$0xff]  ;;  %v7134_v62 = vld [vmem:[#allocation69_spill] sm:$0xff]  ;;  %v7136_v63 = vld [vmem:[#allocation66_spill] sm:$0xff]  ;;  %p3970_p8 = scmp.lt.s32.totalorder %s6474_s26, %s3968_s19 }
 0x582   : > { %v2796_v19 = vadd.f32 %v2792_v17, %v2780_v46  ;;  %v2860_v44 = vmul.f32 %v7126_v42, %v7125_v29  ;;  %v2809_v10 = vadd.f32 %v2805_v53, %v2793_v20  ;;  %v2861_v3 = vmul.f32 %v7126_v42, %v7127_v61  ;;  %v7135_v13 = vld [vmem:[#allocation65_spill] sm:$0xff]  ;;  %v2936_v46 = vpop.permute.xlu1 %2935  ;;  %v7138_v53 = vld [vmem:[#allocation35_spill] sm:$0xff]  ;;  %v7143_v42 = vld [vmem:[#allocation74_spill] sm:$0xff] }
 0x583   : > { %v2810_v31 = vadd.f32 %v2806_v45, %v2794_v22  ;;  %v2876_v7 = vmul.f32 %v7128_v33, %v7107_v47  ;;  %v2811_v14 = vadd.f32 %v2807_v32, %v2795_v43  ;;  %v2877_v1 = vmul.f32 %v7128_v33, %v7109_v9  ;;  %v7133_v9 = vld [vmem:[#allocation32_spill] sm:$0xff]  ;;  %v7137_v17 = vld [vmem:[#allocation161_spill] sm:$0xff]  ;;  %v7140_v32 = vld [vmem:[#allocation67_spill] sm:$0xff] }
 0x584   : > { %v2812_v12 = vadd.f32 %v2808_v4, %v2796_v19  ;;  %v2864_v30 = vadd.f32 %v2860_v44, %v7129_v5  ;;  %v2865_v37 = vadd.f32 %v2861_v3, %v7130_v49  ;;  %v2908_v21 = vmul.f32 %v7131_v8, %v7119_v24  ;;  %v7139_v22 = vld [vmem:[#allocation36_spill] sm:$0xff]  ;;  %v7141_v43 = vld [vmem:[#allocation162_spill] sm:$0xff]  ;;  %v7142_v4 = vld [vmem:[#allocation55_spill] sm:$0xff] }
 0x585   : > { %v2909_v35 = vmul.f32 %v7131_v8, %v7121_v48  ;;  %v2924_v11 = vmul.f32 %v2920_v26, %v6029_v27  ;;  %v6197_v55 = vadd.f32 %v2811_v14, %v2809_v10  ;;  %v2925_v56 = vmul.f32 %v2920_v26, %v6033_v51  ;;  %v7144_v49 = vld [vmem:[#allocation75_spill] sm:$0xff] }
 0x586   : > { %v2814_v47 = vadd.f32 %v2812_v12, %v2810_v31  ;;  %v2880_v25 = vadd.f32 %v2876_v7, %v2864_v30  ;;  %v2881_v52 = vadd.f32 %v2877_v1, %v2865_v37  ;;  %v2379_v57 = vadd.f32 %v7133_v9, %v7132_v59  ;;  %v7145_v37 = vld [vmem:[#allocation173_spill] sm:$0xff] }
 0x587   : > { %v2381_v39 = vadd.f32 %v7135_v13, %v7134_v62  ;;  %v2407_v15 = vmul.f32 %v7136_v63, %v6013_v54  ;;  %v2409_v20 = vmul.f32 %v7138_v53, %v6029_v27  ;;  %v2423_v45 = vmul.f32 %v7139_v22, %v6037_v0  ;;  %v7149_v13 = vld [vmem:[#allocation77_spill] sm:$0xff] }
 0x588   : > { %v2896_v36 = vadd.f32 %v7137_v17, %v2880_v25  ;;  %v2425_v26 = vmul.f32 %v7140_v32, %v6052_v50  ;;  %2817 = vrot.lane.b32.xlu0 %v2814_v47, %s4097_s13  ;;  %v2897_v19 = vadd.f32 %v7141_v43, %v2881_v52  ;;  %v2395_v29 = vadd.f32 %v7142_v4, %v2379_v57  ;;  %v7146_v47 = vld [vmem:[#allocation30_spill] sm:$0xff]  ;;  %v7147_v25 = vld [vmem:[#allocation176_spill] sm:$0xff]  ;;  %v7148_v57 = vld [vmem:[#allocation21_spill] sm:$0xff] }
 0x589   : > { %v2397_v44 = vadd.f32 %v7143_v42, %v2381_v39  ;;  %v2938_v10 = vmul.f32 %v2932_v23, %v6037_v0  ;;  %v2939_v61 = vmul.f32 %v2932_v23, %v6041_v38  ;;  %v2940_v3 = vmul.f32 %v2936_v46, %v6052_v50  ;;  %v7152_v43 = vld [vmem:[#allocation48_spill] sm:$0xff]  ;;  %v7154_v42 = vld [vmem:[#allocation39_spill] sm:$0xff] }
 0x58a   : > { %v2912_v31 = vadd.f32 %v2908_v21, %v2896_v36  ;;  %v2941_v33 = vmul.f32 %v2936_v46, %v6056_v16  ;;  %v2913_v7 = vadd.f32 %v2909_v35, %v2897_v19  ;;  %v2411_v14 = vadd.f32 %v2407_v15, %v2395_v29  ;;  %v7150_v36 = vld [vmem:[#allocation51_spill] sm:$0xff] }
 0x58b   : > { %v2413_v12 = vadd.f32 %v2409_v20, %v2397_v44  ;;  %v2942_v5 = vadd.f32 %v2938_v10, %v6151_v40  ;;  %v2943_v1 = vadd.f32 %v2939_v61, %v6153_v6  ;;  %v2380_v8 = vadd.f32 %v7145_v37, %v7144_v49  ;;  %v7151_v20 = vld [vmem:[#allocation174_spill] sm:$0xff]  ;;  %v7155_v10 = vld [vmem:[#allocation13_spill] sm:$0xff] }
 0x58c   : > { %v2928_v30 = vadd.f32 %v2924_v11, %v2912_v31  ;;  %v2382_v21 = vadd.f32 %v7147_v25, %v7146_v47  ;;  %v2929_v52 = vadd.f32 %v2925_v56, %v2913_v7  ;;  %v2427_v23 = vadd.f32 %v2423_v45, %v2411_v14  ;;  %v3929_v14 = vld [vmem:[#allocation3] sm:$0xff]  ;;  %v7158_v37 = vld [vmem:[#allocation41_spill] sm:$0xff] }
 0x58d   : > { %v2429_v59 = vadd.f32 %v2425_v26, %v2413_v12  ;;  %v2408_v9 = vmul.f32 %v7136_v63, %v6017_v58  ;;  %v2396_v62 = vadd.f32 %v7148_v57, %v2380_v8  ;;  %v2410_v6 = vmul.f32 %v7138_v53, %v6033_v51  ;;  %v7153_v53 = vld [vmem:[#allocation177_spill] sm:$0xff] }
 0x58e   : > { %v2944_v35 = vadd.f32 %v2940_v3, %v2928_v30  ;;  %v2398_v40 = vadd.f32 %v7149_v13, %v2382_v21  ;;  %v2945_v39 = vadd.f32 %v2941_v33, %v2929_v52  ;;  %v2424_v15 = vmul.f32 %v7139_v22, %v6041_v38  ;;  %v3932_v47 = vld [vmem:[#allocation3 + $0x18] sm:$0xff]  ;;  %v7159_v21 = vld [vmem:[#allocation71_spill] sm:$0xff]  ;;  %v7162_v13 = vld [vmem:[#allocation12_spill] sm:$0xff] }
 0x58f   : > { %v2431_v11 = vadd.f32 %v2429_v59, %v2427_v23  ;;  %v2426_v56 = vmul.f32 %v7140_v32, %v6056_v16  ;;  %v2412_v17 = vadd.f32 %v2408_v9, %v2396_v62  ;;  %v2628_v45 = vadd.f32 %v7151_v20, %v7150_v36  ;;  %v7161_v62 = vld [vmem:[#allocation11_spill] sm:$0xff]  ;;  %v7165_v36 = vld [vmem:[#allocation44_spill] sm:$0xff] }
 0x590   : > { %v6237_v46 = vadd.f32 %v2944_v35, %v2942_v5  ;;  %v2414_v63 = vadd.f32 %v2410_v6, %v2398_v40  ;;  %v2947_v26 = vadd.f32 %v2945_v39, %v2943_v1  ;;  %v2630_v19 = vadd.f32 %v7153_v53, %v7152_v43  ;;  %v3930_v5 = vld [vmem:[#allocation3 + $0x8] sm:$0xff]  ;;  %v7157_v1 = vld [vmem:[#allocation42_spill] sm:$0xff]  ;;  %v7160_v35 = vld [vmem:[#allocation73_spill] sm:$0xff] }
 0x591   : > { %2433 = vrot.lane.b32.xlu1 %v2431_v11, %s4098_s11  ;;  %v2656_v4 = vmul.f32 %v7089_v28, %v6013_v54  ;;  %v2658_v22 = vmul.f32 %v7090_v2, %v6029_v27  ;;  %v2428_v32 = vadd.f32 %v2424_v15, %v2412_v17  ;;  %v2644_v44 = vadd.f32 %v7154_v42, %v2628_v45  ;;  %v7156_v2 = vld [vmem:[#allocation70_spill] sm:$0xff]  ;;  %v7163_v6 = vld [vmem:[#allocation60_spill] sm:$0xff]  ;;  %v7164_v15 = vld [vmem:[#allocation43_spill] sm:$0xff] }
 0x592   : > { %v2430_v29 = vadd.f32 %v2426_v56, %v2414_v63  ;;  %v2646_v31 = vadd.f32 %v7155_v10, %v2630_v19  ;;  %v2672_v61 = vmul.f32 %v7091_v60, %v6037_v0  ;;  %v2674_v3 = vmul.f32 %v7092_v34, %v6052_v50  ;;  %2950 = vrot.lane.b32.xlu0 %v2947_v26, %s4099_s15  ;;  %v3931_v34 = vld [vmem:[#allocation3 + $0x10] sm:$0xff] }
 0x593   : > { %v2660_v28 = vadd.f32 %v2656_v4, %v2644_v44  ;;  %v2508_v12 = vmul.f32 %v3929_v14, %v7156_v2  ;;  %v2509_v30 = vmul.f32 %v3930_v5, %v7156_v2  ;;  %v2524_v49 = vmul.f32 %v7157_v1, %v5891_v18  ;;  %v7166_v43 = vld [vmem:[#allocation72_spill] sm:$0xff]  ;;  %v7167_v4 = vld [vmem:[#allocation45_spill] sm:$0xff] }
 0x594   : > { %v2432_v33 = vadd.f32 %v2430_v29, %v2428_v32  ;;  %v2662_v7 = vadd.f32 %v2658_v22, %v2646_v31  ;;  %v2525_v60 = vmul.f32 %v7157_v1, %v5895_v41  ;;  %v2510_v8 = vmul.f32 %v3931_v34, %v7158_v37 }
 0x595   : > { %v2511_v25 = vmul.f32 %v3932_v47, %v7158_v37  ;;  %v2526_v52 = vmul.f32 %v7159_v21, %v7119_v24  ;;  %v2527_v23 = vmul.f32 %v7159_v21, %v7121_v48  ;;  %v2676_v59 = vadd.f32 %v2672_v61, %v2660_v28 }
 0x596   : > { %2435 = vrot.lane.b32.xlu1 %v2432_v33, %s4098_s11  ;;  %v2678_v9 = vadd.f32 %v2674_v3, %v2662_v7  ;;  %v2512_v18 = vadd.f32 %v2508_v12, %v7160_v35  ;;  %v2513_v41 = vadd.f32 %v2509_v30, %v7161_v62  ;;  %v2514_v40 = vadd.f32 %v2510_v8, %v7162_v13  ;;  %v7169_v33 = vld [vmem:[#allocation168_spill] sm:$0xff] }
 0x597   : > { %v2515_v11 = vadd.f32 %v2511_v25, %v7163_v6  ;;  %v2540_v56 = vmul.f32 %v7164_v15, %v6013_v54  ;;  %v2541_v24 = vmul.f32 %v7164_v15, %v6017_v58  ;;  %v2542_v20 = vmul.f32 %v7165_v36, %v6029_v27 }
 0x598   : > { %v2680_v57 = vadd.f32 %v2678_v9, %v2676_v59  ;;  %v2528_v39 = vadd.f32 %v2524_v49, %v2512_v18  ;;  %v2529_v48 = vadd.f32 %v2525_v60, %v2513_v41  ;;  %v2530_v17 = vadd.f32 %v2526_v52, %v2514_v40 }
 0x599   : > { %v2531_v63 = vadd.f32 %v2527_v23, %v2515_v11  ;;  %v2543_v45 = vmul.f32 %v7165_v36, %v6033_v51  ;;  %v2556_v53 = vmul.f32 %v7166_v43, %v6037_v0  ;;  %v2557_v54 = vmul.f32 %v7166_v43, %v6041_v38 }
 0x59a   : > { %2682 = vrot.lane.b32.xlu1 %v2680_v57, %s4096_s20  ;;  %v2544_v26 = vadd.f32 %v2540_v56, %v2528_v39  ;;  %v2545_v19 = vadd.f32 %v2541_v24, %v2529_v48  ;;  %v2546_v58 = vadd.f32 %v2542_v20, %v2530_v17  ;;  %v2558_v22 = vmul.f32 %v7167_v4, %v6052_v50  ;;  %v7168_v50 = vld [vmem:[#allocation166_spill] sm:$0xff]  ;;  %s3969_s20 = scalar_lea.vmem %s3968_s19, 16384 }
 0x59b   : > { %v2559_v32 = vmul.f32 %v7167_v4, %v6056_v16  ;;  %v2547_v29 = vadd.f32 %v2543_v45, %v2531_v63  ;;  %v1897_v3 = vand.u32 15, %v7168_v50  ;;  %v1898_v16 = vand.u32 15, %v7169_v33  ;;  %p3971_p10 = scmp.lt.s32.totalorder %s3969_s20, %s3963_s16 }
 0x59c   : > { %v2560_v27 = vadd.f32 %v2556_v53, %v2544_v26  ;;  %v2561_v51 = vadd.f32 %v2557_v54, %v2545_v19  ;;  %v2562_v42 = vadd.f32 %v2558_v22, %v2546_v58  ;;  %vm2304_vm15 = vcmp.lt.s32.totalorder %v7168_v50, 2 }
 0x59d   : > { %v2563_v44 = vadd.f32 %v2559_v32, %v2547_v29  ;;  %v2307_v28 = vadd.s32 4294967294, %v1897_v3  ;;  %v2308_v7 = vadd.s32 4294967294, %v1898_v16  ;;  %v2175_v14 = vadd.s32 4294967293, %v1898_v16  ;;  %p3972_p0 = por %p3971_p10, %p3970_p8 }
 0x59e   : > { %2815 = vrot.lane.b32.xlu1 %v6197_v55, %s4097_s13  ;;  %v2564_v0 = vadd.f32 %v2562_v42, %v2560_v27  ;;  %v2174_v55 = vadd.s32 4294967293, %v1897_v3  ;;  %vm2171_vm0 = vcmp.lt.s32.totalorder %v7168_v50, 3  ;;  %v2440_v5 = vadd.s32 4294967295, %v1897_v3 }
 0x59f   : > { %v2565_v10 = vadd.f32 %v2563_v44, %v2561_v51  ;;  %v2441_v30 = vadd.s32 4294967295, %v1898_v16  ;;  %vm2309_vm1 = vcmp.ge.s32.totalorder %v2307_v28, 0  ;;  %vm2310_vm3 = vcmp.ge.s32.totalorder %v2308_v7, 0  ;;  %p3973_p2 = pnand %p3972_p0, %p3966_p13 }
 0x5a0   : > { %vm2437_vm4 = vcmp.lt.s32.totalorder %v7168_v50, 1  ;;  %vm2176_vm2 = vcmp.ge.s32.totalorder %v2174_v55, 0  ;;  %vm2177_vm5 = vcmp.ge.s32.totalorder %v2175_v14, 0  ;;  %vm2442_vm6 = vcmp.ge.s32.totalorder %v2440_v5, 0 }
 0x5a1   : > { %vm2443_vm7 = vcmp.ge.s32.totalorder %v2441_v30, 0  ;;  %v2689_v47 = vadd.s32 1, %v1897_v3  ;;  %v2690_v25 = vadd.s32 1, %v1898_v16  ;;  %vm2686_vm8 = vcmp.lt.s32.totalorder %v7168_v50, 127 }
 0x5a2   : > { %2948 = vrot.lane.b32.xlu1 %v6237_v46, %s4099_s15  ;;  %v2822_v62 = vadd.s32 2, %v1897_v3  ;;  %v2823_v40 = vadd.s32 2, %v1898_v16  ;;  %vm2819_vm11 = vcmp.lt.s32.totalorder %v7168_v50, 126  ;;  %v2955_v56 = vadd.s32 3, %v1897_v3 }
 0x5a3   : > { %vm2693_vm9 = vcmp.lt.s32.totalorder %v2689_v47, 16  ;;  %vm2694_vm10 = vcmp.lt.s32.totalorder %v2690_v25, 16  ;;  %v2956_v17 = vadd.s32 3, %v1898_v16  ;;  %vm2952_vm14 = vcmp.lt.s32.totalorder %v7168_v50, 125  ;;  %v7170_v16 = vld [vmem:[#allocation82_spill] sm:$0xff] }
 0x5a4   : > { %vm2826_vm12 = vcmp.lt.s32.totalorder %v2822_v62, 16  ;;  %vm2827_vm13 = vcmp.lt.s32.totalorder %v2823_v40, 16  ;;  %v2991_v28 = vsub.s32 0, %v7170_v16  ;;  %v3023_v7 = vsub.s32 1, %v7170_v16  ;;  %v7175_v40 = vld [vmem:[#allocation86_spill] sm:$0xff] }
 0x5a5   : > { %v3055_v55 = vsub.s32 2, %v7170_v16  ;;  %v3087_v14 = vsub.s32 3, %v7170_v16  ;;  %v3119_v5 = vsub.s32 4, %v7170_v16 }
 0x5e1   : > { %v2303_v2 = vpop.permute.xlu0 %2302 }
 0x5e3   : > { %v2168_v38 = vpop.permute.xlu1 %2167 }
 0x5e6   : > { %v2685_v6 = vpop.permute.xlu0 %2684 }
 0x5ea   : > { %v2170_v31 = vpop.permute.xlu1 %2169 }
 0x5eb   : > { %v2172_v49 = vsel %vm2171_vm0, %v2168_v38, %v2170_v31  ;;  %v2173_v60 = vsel %vm2171_vm0, %v2170_v31, %v2168_v38  ;;  %vm2960_vm0 = vcmp.lt.s32.totalorder %v2956_v17, 16  ;;  %v7179_v17 = vld [vmem:[#allocation97_spill] sm:$0xff] }
 0x5ec   : > { %v2182_v21 = vsel %vm2176_vm2, %v2173_v60, 0.0  ;;  %v2183_v52 = vsel %vm2177_vm5, %v2172_v49, 0.0  ;;  %v3215_v49 = vsub.s32 7, %v7170_v16 }
 0x5f1   : > { %v2301_v61 = vpop.permute.xlu1 %2300 }
 0x5f2   : > { %v2305_v46 = vsel %vm2304_vm15, %v2301_v61, %v2303_v2  ;;  %v2306_v1 = vsel %vm2304_vm15, %v2303_v2, %v2301_v61  ;;  %vm2959_vm15 = vcmp.lt.s32.totalorder %v2955_v56, 16 }
 0x5f3   : > { %v2315_v34 = vsel %vm2309_vm1, %v2306_v1, 0.0  ;;  %v2316_v37 = vsel %vm2310_vm3, %v2305_v46, 0.0  ;;  %v3151_v46 = vsub.s32 5, %v7170_v16  ;;  %v3183_v1 = vsub.s32 6, %v7170_v16 }
 0x5f4   : > { %v2317_v9 = vadd.f32 %v2315_v34, %v2182_v21  ;;  %v2318_v35 = vadd.f32 %v2316_v37, %v2183_v52 }
 0x5fa   : > { %v2818_v63 = vpop.permute.xlu0 %2817 }
 0x603   : > { %v2434_v12 = vpop.permute.xlu1 %2433 }
 0x604   : > { %v2951_v4 = vpop.permute.xlu0 %2950 }
 0x608   : > { %v2436_v8 = vpop.permute.xlu1 %2435 }
 0x609   : > { %v2438_v23 = vsel %vm2437_vm4, %v2434_v12, %v2436_v8  ;;  %v2439_v59 = vsel %vm2437_vm4, %v2436_v8, %v2434_v12 }
 0x60a   : > { %v2448_v18 = vsel %vm2442_vm6, %v2439_v59, 0.0  ;;  %v2449_v57 = vsel %vm2443_vm7, %v2438_v23, 0.0  ;;  %v7171_v59 = vld [vmem:[#allocation85_spill] sm:$0xff] }
 0x60b   : > { %v2450_v41 = vadd.f32 %v2448_v18, %v2317_v9  ;;  %v2451_v13 = vadd.f32 %v2449_v57, %v2318_v35  ;;  %v7172_v35 = vld [vmem:[#allocation83_spill] sm:$0xff]  ;;  %v7173_v57 = vld [vmem:[#allocation141_spill] sm:$0xff] }
 0x60c   : > { %v2683_v11 = vpop.permute.xlu1 %2682 }
 0x60d   : > { %v2687_v39 = vsel %vm2686_vm8, %v2683_v11, %v2685_v6  ;;  %v2688_v15 = vsel %vm2686_vm8, %v2685_v6, %v2683_v11  ;;  %v2566_v24 = vadd.f32 %v2564_v0, %v2450_v41  ;;  %v2567_v48 = vadd.f32 %v2565_v10, %v2451_v13  ;;  %v7174_v41 = vld [vmem:[#allocation119_spill] sm:$0xff]  ;;  %v7176_v11 = vld [vmem:[#allocation84_spill] sm:$0xff] }
 0x60e   : > { %v2697_v36 = vsel %vm2693_vm9, %v2687_v39, 0.0  ;;  %v2698_v20 = vsel %vm2694_vm10, %v2688_v15, 0.0  ;;  %v7177_v15 = vld [vmem:[#allocation142_spill] sm:$0xff] }
 0x60f   : > { %v2699_v19 = vadd.f32 %v2697_v36, %v2566_v24  ;;  %v2700_v58 = vadd.f32 %v2698_v20, %v2567_v48  ;;  %v7178_v24 = vld [vmem:[#allocation120_spill] sm:$0xff]  ;;  %v7180_v36 = vld [vmem:[#allocation98_spill] sm:$0xff] }
 0x610   : > { %v2816_v45 = vpop.permute.xlu1 %2815 }
 0x611   : > { %v2820_v26 = vsel %vm2819_vm11, %v2816_v45, %v2818_v63  ;;  %v2821_v43 = vsel %vm2819_vm11, %v2818_v63, %v2816_v45  ;;  %v7181_v45 = vld [vmem:[#allocation89_spill] sm:$0xff] }
 0x612   : > { %v2830_v53 = vsel %vm2826_vm12, %v2820_v26, 0.0  ;;  %v2831_v54 = vsel %vm2827_vm13, %v2821_v43, 0.0  ;;  %v7182_v43 = vld [vmem:[#allocation90_spill] sm:$0xff] }
 0x613   : > { %v2832_v32 = vadd.f32 %v2830_v53, %v2699_v19  ;;  %v2833_v29 = vadd.f32 %v2831_v54, %v2700_v58  ;;  %v7183_v54 = vld [vmem:[#allocation139_spill] sm:$0xff]  ;;  %v7184_v58 = vld [vmem:[#allocation140_spill] sm:$0xff] }
 0x614   : > { %v2949_v22 = vpop.permute.xlu1 %2948 }
 0x615   : > { %v2953_v27 = vsel %vm2952_vm14, %v2949_v22, %v2951_v4  ;;  %v2954_v51 = vsel %vm2952_vm14, %v2951_v4, %v2949_v22  ;;  %v7185_v22 = vld [vmem:[#allocation121_spill] sm:$0xff] }
 0x616   : > { %v2963_v42 = vsel %vm2959_vm15, %v2953_v27, 0.0  ;;  %v2964_v44 = vsel %vm2960_vm0, %v2954_v51, 0.0  ;;  %v7187_v51 = vld [vmem:[#allocation101_spill] sm:$0xff] }
 0x617   : > { %v2965_v0 = vadd.f32 %v2963_v42, %v2832_v32  ;;  %v2966_v10 = vadd.f32 %v2964_v44, %v2833_v29  ;;  %v7186_v29 = vld [vmem:[#allocation122_spill] sm:$0xff] }
 0x618   : > { %v7188_v44 = vld [vmem:[#allocation102_spill] sm:$0xff] }
 0x619   : > { %v3513_v38 = vmul.f32 -1.442695, %v2965_v0  ;;  %v3514_v31 = vmul.f32 -1.442695, %v2966_v10  ;;  %v7189_v10 = vld [vmem:[#allocation87_spill] sm:$0xff] }
 0x61b   : > { %3917 = vpow2.f32 %v3513_v38 }
 0x61c   : > { %3919 = vpow2.f32 %v3514_v31  ;;  %v7190_v31 = vld [vmem:[#allocation88_spill] sm:$0xff] }
 0x625   : > { %v3918_v61 = vpop.eup %3917 }
 0x626   : > { %v3920_v50 = vpop.eup %3919  ;;  %v2973_v3 = vadd.f32 1.0, %v3918_v61 }
 0x627   : > { %v2974_v33 = vadd.f32 1.0, %v3920_v50  ;;  %v7191_v50 = vld [vmem:[#allocation143_spill] sm:$0xff] }
 0x628   : > { %3921 = vrcp.f32 %v2973_v3 }
 0x629   : > { %3923 = vrcp.f32 %v2974_v33  ;;  %v7192_v33 = vld [vmem:[#allocation144_spill] sm:$0xff] }
 0x632   : > { %v3922_v2 = vpop.eup %3921 }
 0x633   : > { %v3924_v12 = vpop.eup %3923  ;;  %v6304_v30 = vadd.f32 1.0, %v3922_v2 }
 0x634   : > { %v6309_v60 = vadd.f32 1.0, %v3924_v12  ;;  %v7195_v12 = vld [vmem:[#allocation103_spill] sm:$0xff] }
 0x635   : > { %v2992_v34 = vrot.slane %v6304_v30, %v2991_v28  ;;  %v3024_v37 = vrot.slane %v6304_v30, %v3023_v7  ;;  %v3056_v8 = vrot.slane %v6304_v30, %v3055_v55  ;;  %v3088_v47 = vrot.slane %v6304_v30, %v3087_v14 }
 0x636   : > { %v2996_v25 = vrot.slane %v6309_v60, %v2991_v28  ;;  %v3028_v21 = vrot.slane %v6309_v60, %v3023_v7  ;;  %v3060_v52 = vrot.slane %v6309_v60, %v3055_v55  ;;  %v3092_v23 = vrot.slane %v6309_v60, %v3087_v14  ;;  %v7193_v7 = vld [vmem:[#allocation127_spill] sm:$0xff]  ;;  %v7194_v14 = vld [vmem:[#allocation128_spill] sm:$0xff] }
 0x637   : > { %v2997_v9 = vmul.f32 %v2992_v34, %v7171_v59  ;;  %v2999_v18 = vmul.f32 %v2992_v34, %v7172_v35  ;;  %v3001_v62 = vmul.f32 %v2992_v34, %v7173_v57  ;;  %v3003_v13 = vmul.f32 %v2992_v34, %v7174_v41 }
 0x638   : > { %v2998_v6 = vmul.f32 %v2996_v25, %v7175_v40  ;;  %v3000_v39 = vmul.f32 %v2996_v25, %v7176_v11  ;;  %v3002_v56 = vmul.f32 %v2996_v25, %v7177_v15  ;;  %v3004_v48 = vmul.f32 %v2996_v25, %v7178_v24 }
 0x639   : > { %3005 = vst [vmem:[%s6329_s17] sm:$0xff] %v2997_v9  ;;  %3007 = vst [vmem:[%s6329_s17 + $0x10] sm:$0xff] %v2999_v18  ;;  %v3029_v63 = vmul.f32 %v3024_v37, %v7179_v17  ;;  %v3030_v20 = vmul.f32 %v3028_v21, %v7180_v36  ;;  %v3031_v26 = vmul.f32 %v3024_v37, %v7181_v45  ;;  %v7198_v9 = vld [vmem:[#allocation94_spill] sm:$0xff] }
 0x63a   : > { %3009 = vst [vmem:[%s6329_s17 + $0x20] sm:$0xff] %v3001_v62  ;;  %3011 = vst [vmem:[%s6329_s17 + $0x30] sm:$0xff] %v3003_v13  ;;  %v3032_v53 = vmul.f32 %v3028_v21, %v7182_v43  ;;  %v3033_v19 = vmul.f32 %v3024_v37, %v7183_v54  ;;  %v3034_v4 = vmul.f32 %v3028_v21, %v7184_v58  ;;  %v7200_v18 = vld [vmem:[#allocation146_spill] sm:$0xff]  ;;  %v7201_v62 = vld [vmem:[#allocation129_spill] sm:$0xff] }
 0x63b   : > { %3006 = vst [vmem:[%s6329_s17 + $0x8] sm:$0xff] %v2998_v6  ;;  %3008 = vst [vmem:[%s6329_s17 + $0x18] sm:$0xff] %v3000_v39  ;;  %v3035_v32 = vmul.f32 %v3024_v37, %v7185_v22  ;;  %v3036_v27 = vmul.f32 %v3028_v21, %v7186_v29  ;;  %v3061_v42 = vmul.f32 %v3056_v8, %v7187_v51  ;;  %v7196_v37 = vld [vmem:[#allocation104_spill] sm:$0xff]  ;;  %v7197_v21 = vld [vmem:[#allocation93_spill] sm:$0xff] }
 0x63c   : > { %3010 = vst [vmem:[%s6329_s17 + $0x28] sm:$0xff] %v3002_v56  ;;  %3012 = vst [vmem:[%s6329_s17 + $0x38] sm:$0xff] %v3004_v48  ;;  %v3062_v0 = vmul.f32 %v3060_v52, %v7188_v44  ;;  %v3063_v38 = vmul.f32 %v3056_v8, %v7189_v10  ;;  %v3064_v61 = vmul.f32 %v3060_v52, %v7190_v31  ;;  %v7202_v13 = vld [vmem:[#allocation130_spill] sm:$0xff]  ;;  %v7203_v56 = vld [vmem:[#allocation105_spill] sm:$0xff] }
 0x63d   : > { %3523 = vst [vmem:[%s6329_s17 + $0x40] sm:$0xff] %v3029_v63  ;;  %3524 = vst [vmem:[%s6329_s17 + $0x48] sm:$0xff] %v3030_v20  ;;  %v3065_v3 = vmul.f32 %v3056_v8, %v7191_v50  ;;  %v3066_v28 = vmul.f32 %v3060_v52, %v7192_v33  ;;  %v3067_v55 = vmul.f32 %v3056_v8, %v7193_v7  ;;  %v7199_v8 = vld [vmem:[#allocation145_spill] sm:$0xff]  ;;  %v7204_v48 = vld [vmem:[#allocation106_spill] sm:$0xff] }
 0x63e   : > { %3525 = vst [vmem:[%s6329_s17 + $0x50] sm:$0xff] %v3031_v26  ;;  %3526 = vst [vmem:[%s6329_s17 + $0x58] sm:$0xff] %v3032_v53  ;;  %v3068_v2 = vmul.f32 %v3060_v52, %v7194_v14  ;;  %v3093_v34 = vmul.f32 %v3088_v47, %v7195_v12  ;;  %v3094_v25 = vmul.f32 %v3092_v23, %v7196_v37  ;;  %v7205_v63 = vld [vmem:[#allocation91_spill] sm:$0xff]  ;;  %v7206_v20 = vld [vmem:[#allocation92_spill] sm:$0xff] }
 0x63f   : > { %3527 = vst [vmem:[%s6329_s17 + $0x60] sm:$0xff] %v3033_v19  ;;  %3528 = vst [vmem:[%s6329_s17 + $0x68] sm:$0xff] %v3034_v4  ;;  %v3095_v59 = vmul.f32 %v3088_v47, %v7197_v21  ;;  %v3096_v35 = vmul.f32 %v3092_v23, %v7198_v9  ;;  %v3097_v52 = vmul.f32 %v3088_v47, %v7199_v8  ;;  %v7208_v43 = vld [vmem:[#allocation148_spill] sm:$0xff]  ;;  %v7209_v53 = vld [vmem:[#allocation131_spill] sm:$0xff] }
 0x640   : > { %3529 = vst [vmem:[%s6329_s17 + $0x70] sm:$0xff] %v3035_v32  ;;  %3530 = vst [vmem:[%s6329_s17 + $0x78] sm:$0xff] %v3036_v27  ;;  %v3098_v57 = vmul.f32 %v3092_v23, %v7200_v18  ;;  %v3099_v41 = vmul.f32 %v3088_v47, %v7201_v62  ;;  %v3100_v40 = vmul.f32 %v3092_v23, %v7202_v13  ;;  %v7210_v54 = vld [vmem:[#allocation132_spill] sm:$0xff]  ;;  %v7213_v22 = vld [vmem:[#allocation99_spill] sm:$0xff] }
 0x641   : > { %3539 = vst [vmem:[%s6329_s17 + $0x80] sm:$0xff] %v3061_v42  ;;  %3540 = vst [vmem:[%s6329_s17 + $0x88] sm:$0xff] %v3062_v0  ;;  %v3120_v6 = vrot.slane %v6304_v30, %v3119_v5  ;;  %v3124_v11 = vrot.slane %v6309_v60, %v3119_v5  ;;  %v3152_v39 = vrot.slane %v6304_v30, %v3151_v46  ;;  %v7212_v58 = vld [vmem:[#allocation108_spill] sm:$0xff]  ;;  %v7215_v51 = vld [vmem:[#allocation115_spill] sm:$0xff] }
 0x642   : > { %3541 = vst [vmem:[%s6329_s17 + $0x90] sm:$0xff] %v3063_v38  ;;  %3542 = vst [vmem:[%s6329_s17 + $0x98] sm:$0xff] %v3064_v61  ;;  %v3156_v47 = vrot.slane %v6309_v60, %v3151_v46  ;;  %v3184_v5 = vrot.slane %v6304_v30, %v3183_v1  ;;  %v3188_v23 = vrot.slane %v6309_v60, %v3183_v1  ;;  %v7207_v1 = vld [vmem:[#allocation147_spill] sm:$0xff]  ;;  %v7214_v29 = vld [vmem:[#allocation100_spill] sm:$0xff] }
 0x643   : > { %3543 = vst [vmem:[%s6329_s17 + $0xa0] sm:$0xff] %v3065_v3  ;;  %3544 = vst [vmem:[%s6329_s17 + $0xa8] sm:$0xff] %v3066_v28  ;;  %v3216_v46 = vrot.slane %v6304_v30, %v3215_v49  ;;  %v3220_v15 = vrot.slane %v6309_v60, %v3215_v49  ;;  %v3125_v24 = vmul.f32 %v3120_v6, %v7203_v56  ;;  %v7211_v60 = vld [vmem:[#allocation107_spill] sm:$0xff]  ;;  %v7216_v44 = vld [vmem:[#allocation116_spill] sm:$0xff] }
 0x644   : > { %3545 = vst [vmem:[%s6329_s17 + $0xb0] sm:$0xff] %v3067_v55  ;;  %3546 = vst [vmem:[%s6329_s17 + $0xb8] sm:$0xff] %v3068_v2  ;;  %v3126_v17 = vmul.f32 %v3124_v11, %v7204_v48  ;;  %v3127_v36 = vmul.f32 %v3120_v6, %v7205_v63  ;;  %v3128_v45 = vmul.f32 %v3124_v11, %v7206_v20  ;;  %v7217_v10 = vld [vmem:[#allocation133_spill] sm:$0xff]  ;;  %v7218_v31 = vld [vmem:[#allocation134_spill] sm:$0xff] }
 0x645   : > { %3555 = vst [vmem:[%s6329_s17 + $0xc0] sm:$0xff] %v3093_v34  ;;  %3556 = vst [vmem:[%s6329_s17 + $0xc8] sm:$0xff] %v3094_v25  ;;  %v3129_v26 = vmul.f32 %v3120_v6, %v7207_v1  ;;  %v3130_v30 = vmul.f32 %v3124_v11, %v7208_v43  ;;  %v3131_v16 = vmul.f32 %v3120_v6, %v7209_v53  ;;  %v7219_v50 = vld [vmem:[#allocation111_spill] sm:$0xff]  ;;  %v7220_v33 = vld [vmem:[#allocation112_spill] sm:$0xff] }
 0x646   : > { %3557 = vst [vmem:[%s6329_s17 + $0xd0] sm:$0xff] %v3095_v59  ;;  %3558 = vst [vmem:[%s6329_s17 + $0xd8] sm:$0xff] %v3096_v35  ;;  %v3132_v49 = vmul.f32 %v3124_v11, %v7210_v54  ;;  %v3157_v19 = vmul.f32 %v3152_v39, %v7211_v60  ;;  %v3158_v4 = vmul.f32 %v3156_v47, %v7212_v58  ;;  %v7221_v7 = vld [vmem:[#allocation95_spill] sm:$0xff]  ;;  %v7222_v14 = vld [vmem:[#allocation96_spill] sm:$0xff] }
 0x647   : > { %3559 = vst [vmem:[%s6329_s17 + $0xe0] sm:$0xff] %v3097_v52  ;;  %3560 = vst [vmem:[%s6329_s17 + $0xe8] sm:$0xff] %v3098_v57  ;;  %v3159_v32 = vmul.f32 %v3152_v39, %v7213_v22  ;;  %v3160_v27 = vmul.f32 %v3156_v47, %v7214_v29  ;;  %v3161_v42 = vmul.f32 %v3152_v39, %v7215_v51  ;;  %v7223_v12 = vld [vmem:[#allocation117_spill] sm:$0xff]  ;;  %v7225_v21 = vld [vmem:[#allocation135_spill] sm:$0xff] }
 0x648   : > { %3561 = vst [vmem:[%s6329_s17 + $0xf0] sm:$0xff] %v3099_v41  ;;  %3562 = vst [vmem:[%s6329_s17 + $0xf8] sm:$0xff] %v3100_v40  ;;  %v3162_v0 = vmul.f32 %v3156_v47, %v7216_v44  ;;  %v3163_v38 = vmul.f32 %v3152_v39, %v7217_v10  ;;  %v3164_v61 = vmul.f32 %v3156_v47, %v7218_v31  ;;  %v7224_v37 = vld [vmem:[#allocation149_spill] sm:$0xff]  ;;  %v7226_v9 = vld [vmem:[#allocation136_spill] sm:$0xff] }
 0x649   : > { %3571 = vst [vmem:[%s6329_s17 + $0x100] sm:$0xff] %v3125_v24  ;;  %3572 = vst [vmem:[%s6329_s17 + $0x108] sm:$0xff] %v3126_v17  ;;  %v3189_v3 = vmul.f32 %v3184_v5, %v7219_v50  ;;  %v3190_v28 = vmul.f32 %v3188_v23, %v7220_v33  ;;  %v3191_v55 = vmul.f32 %v3184_v5, %v7221_v7  ;;  %v7227_v8 = vld [vmem:[#allocation113_spill] sm:$0xff]  ;;  %v7228_v18 = vld [vmem:[#allocation114_spill] sm:$0xff] }
 0x64a   : > { %3573 = vst [vmem:[%s6329_s17 + $0x110] sm:$0xff] %v3127_v36  ;;  %3574 = vst [vmem:[%s6329_s17 + $0x118] sm:$0xff] %v3128_v45  ;;  %v3192_v2 = vmul.f32 %v3188_v23, %v7222_v14  ;;  %v3193_v34 = vmul.f32 %v3184_v5, %v7223_v12  ;;  %v3194_v25 = vmul.f32 %v3188_v23, %v7224_v37  ;;  %v7229_v62 = vld [vmem:[#allocation109_spill] sm:$0xff]  ;;  %v7230_v13 = vld [vmem:[#allocation110_spill] sm:$0xff] }
 0x64b   : > { %3575 = vst [vmem:[%s6329_s17 + $0x120] sm:$0xff] %v3129_v26  ;;  %3576 = vst [vmem:[%s6329_s17 + $0x128] sm:$0xff] %v3130_v30  ;;  %v3195_v59 = vmul.f32 %v3184_v5, %v7225_v21  ;;  %v3196_v35 = vmul.f32 %v3188_v23, %v7226_v9  ;;  %v3221_v52 = vmul.f32 %v3216_v46, %v7227_v8  ;;  %v7231_v6 = vld [vmem:[#allocation123_spill] sm:$0xff]  ;;  %v7232_v39 = vld [vmem:[#allocation124_spill] sm:$0xff] }
 0x64c   : > { %3577 = vst [vmem:[%s6329_s17 + $0x130] sm:$0xff] %v3131_v16  ;;  %3578 = vst [vmem:[%s6329_s17 + $0x138] sm:$0xff] %v3132_v49  ;;  %v3222_v57 = vmul.f32 %v3220_v15, %v7228_v18  ;;  %v3223_v41 = vmul.f32 %v3216_v46, %v7229_v62  ;;  %v3224_v40 = vmul.f32 %v3220_v15, %v7230_v13  ;;  %v7233_v5 = vld [vmem:[#allocation137_spill] sm:$0xff]  ;;  %v7234_v56 = vld [vmem:[#allocation138_spill] sm:$0xff] }
 0x64d   : > { %3587 = vst [vmem:[%s6329_s17 + $0x140] sm:$0xff] %v3157_v19  ;;  %3588 = vst [vmem:[%s6329_s17 + $0x148] sm:$0xff] %v3158_v4  ;;  %v3225_v11 = vmul.f32 %v3216_v46, %v7231_v6  ;;  %v3226_v47 = vmul.f32 %v3220_v15, %v7232_v39  ;;  %v3227_v23 = vmul.f32 %v3216_v46, %v7233_v5 }
 0x64e   : > { %3589 = vst [vmem:[%s6329_s17 + $0x150] sm:$0xff] %v3159_v32  ;;  %3590 = vst [vmem:[%s6329_s17 + $0x158] sm:$0xff] %v3160_v27  ;;  %v3228_v24 = vmul.f32 %v3220_v15, %v7234_v56 }
 0x64f   : > { %3591 = vst [vmem:[%s6329_s17 + $0x160] sm:$0xff] %v3161_v42  ;;  %3592 = vst [vmem:[%s6329_s17 + $0x168] sm:$0xff] %v3162_v0 }
 0x650   : > { %3593 = vst [vmem:[%s6329_s17 + $0x170] sm:$0xff] %v3163_v38  ;;  %3594 = vst [vmem:[%s6329_s17 + $0x178] sm:$0xff] %v3164_v61 }
 0x651   : > { %3603 = vst [vmem:[%s6329_s17 + $0x180] sm:$0xff] %v3189_v3  ;;  %3604 = vst [vmem:[%s6329_s17 + $0x188] sm:$0xff] %v3190_v28 }
 0x652   : > { %3605 = vst [vmem:[%s6329_s17 + $0x190] sm:$0xff] %v3191_v55  ;;  %3606 = vst [vmem:[%s6329_s17 + $0x198] sm:$0xff] %v3192_v2 }
 0x653   : > { %3607 = vst [vmem:[%s6329_s17 + $0x1a0] sm:$0xff] %v3193_v34  ;;  %3608 = vst [vmem:[%s6329_s17 + $0x1a8] sm:$0xff] %v3194_v25 }
 0x654   : > { %3609 = vst [vmem:[%s6329_s17 + $0x1b0] sm:$0xff] %v3195_v59  ;;  %3610 = vst [vmem:[%s6329_s17 + $0x1b8] sm:$0xff] %v3196_v35 }
 0x655   : > { %3619 = vst [vmem:[%s6329_s17 + $0x1c0] sm:$0xff] %v3221_v52  ;;  %3620 = vst [vmem:[%s6329_s17 + $0x1c8] sm:$0xff] %v3222_v57 }
 0x656   : > { %3621 = vst [vmem:[%s6329_s17 + $0x1d0] sm:$0xff] %v3223_v41  ;;  %3622 = vst [vmem:[%s6329_s17 + $0x1d8] sm:$0xff] %v3224_v40 }
 0x657   : > { %3623 = vst [vmem:[%s6329_s17 + $0x1e0] sm:$0xff] %v3225_v11  ;;  %3624 = vst [vmem:[%s6329_s17 + $0x1e8] sm:$0xff] %v3226_v47 }
 0x658   : > { %3625 = vst [vmem:[%s6329_s17 + $0x1f0] sm:$0xff] %v3227_v23  ;;  %3626 = vst [vmem:[%s6329_s17 + $0x1f8] sm:$0xff] %v3228_v24 }
 0x659   : > { %3976 = shalt.err (!%p3973_p2)
}
 0x65a   : > { %s3977_s13 = scalar_lea.hbm %s6464_s12, 8192  ;;  %s3981_s17 = scalar_lea.hbm %s6533_s6, 16384 }
 0x65b   : > { %p3978_p4 = scmp.ne.s32.totalorder %s6464_s12, %s3977_s13  ;;  %p3982_p9 = scmp.lt.u32.totalorder %s6464_s12, %s6533_s6 }
 0x65c   : > { %p3983_p1 = scmp.lt.u32.totalorder %s3981_s17, %s3977_s13  ;;  %p3985_p6 = scmp.lt.u32.totalorder %s3977_s13, %s6464_s12 }
 0x65d   : > { %p3979_p5 = pnand %p3978_p4, %p7235_p11 }
 0x65e   : > { %p3984_p3 = por %p3983_p1, %p3982_p9 }
 0x65f   : > { %p3980_p7 = pneg %p3979_p5 }
 0x660   : > { %p3986_p12 = por %p3985_p6, %p3984_p3 }
 0x662   : > { %p3987_p13 = pnand %p3986_p12, %p3980_p7 }
 0x664   : > { %3990 = shalt.err (!%p3987_p13)
}
 0x665   : > { %s4101_s28 = smov 256  }
 0x666   : > { %3674 = dma.vmem_to_hbm [thread:$0]  (%p7235_p11), %s6474_s26, 8192, %s6464_s12, %s3238_s8, %s4101_s28, %s4101_s28, %s4089_s14  }
 0x667 PF: > { %s3267_s16 = sand.u32 1, %s4017_s21   ;;  %p7236_p8 = scmp.ne.s32.totalorder %s6738_s10, 0 }
 0x668   : > { %p7237_p10 = scmp.ge.s32.totalorder %s4029_s24, 2  ;;  %s3268_s18 = scalar_lea.sflag [#allocation6], %s3267_s16 }
 0x66a   : > { %p3681_p0 = pnand %p7237_p10, %p7236_p8 }
 0x66c   : > { %4012 = dma.done.wait (!%p3681_p0), %s3268_s18, 8192  }
 0x66d   : > { %4014 = vsyncadd (!%p3681_p0), %s3268_s18, 4294959104  ;;  %p19_p2 = scmp.ge.s32.totalorder %s4162_s27, 4   ;;  %s7238_s21 = smov %s4021_s22 }
 0x66e   : > { %s7239_s22 = smov %s4025_s23  ;;  %s7240_s23 = smov %s4174_s30 }
 0x66f   : > { %s7241_s24 = smov %s4162_s27  ;;  %21 = sbr.rel (!%p19_p2) target bundleno = 5 (0x5), region = 118 }
 0x676   :  { %3273 = vsyncpa [#allocation5], 1 }
 0x677   :  { %3275 = vsyncpa [#allocation5 + $0x1], 1 }
 0x678   :  { %3276 = vsyncpa [#allocation6], 1 }
 0x679   :  { %3278 = vsyncpa [#allocation6 + $0x1], 1 }

</bundles_post_ra>
